<compile_context>
chip_gen: v6e
topology: v6e:2x2x1
jax: 0.10.0
libtpu: 0.0.40
codegen_flags: <defaults>
</compile_context>

<pallas_src>
import functools
import math

import jax
import jax.numpy as jnp
from jax import lax
from jax.experimental import pallas as pl
from jax.experimental.pallas import tpu as pltpu


# ----------------------------- config ---------------------------------------
CFG = dict(
    hidden_size=32,
    num_attention_heads=4,
    intermediate_size=128,
    num_hidden_layers=2,
    layer_norm_eps=1e-12,
    quantize=dict(percentile=1.0, num_dist_vals=255),
    # attention_probs_dropout_prob = hidden_dropout_prob = 0.0
)


# ----------------------------- fused encoder kernel --------------------------
def _encoder_kernel(x_ref, mask_ref,
                    ln1_g_ref, ln1_b_ref, ln2_g_ref, ln2_b_ref,
                    wqkv_ref, bqkv_ref, wo_ref, bo_ref,
                    w1_ref, b1_ref, w2_ref, b2_ref,
                    lnf_g_ref, lnf_b_ref, invsw_ref,
                    o_ref, ctx_ref,
                    *, num_layers, num_heads, head_dim, batch, seq, eps, q_half):
    """Whole-encoder forward; everything VMEM-resident, one kernel launch."""
    H = num_heads * head_dim
    x = x_ref[...]                                          # (M, H) f32
    neg_mask = (-1000.0) * (1.0 - mask_ref[...])            # (B, S)
    inv_sqrt_dh = 1.0 / math.sqrt(head_dim)

    def layernorm(v, g, b):
        mu = jnp.mean(v, axis=-1, keepdims=True)
        vc = v - mu
        var = jnp.mean(vc * vc, axis=-1, keepdims=True)     # biased var (PyTorch LN)
        return vc / jnp.sqrt(var + eps) * g + b

    def act_scale(v):
        # percentile == 1 path: alpha = max(|v|) clipped at 1e-20
        return q_half / jnp.maximum(jnp.max(jnp.abs(v)), 1e-20)

    def qdot(v, s_v, w_int, inv_sw):
        # quantize(v) @ quantize(w)  ==  (round(v*s_v) @ iW) * (1/s_v) * (1/s_w)
        vi = jnp.round(v * s_v).astype(jnp.bfloat16)        # integer-valued, exact in bf16
        acc = jnp.dot(vi, w_int, preferred_element_type=jnp.float32)
        return acc * ((1.0 / s_v) * inv_sw)

    for l in range(num_layers):                             # static unroll
        # ---------------- attention block (pre-norm) ----------------
        h = layernorm(x, ln1_g_ref[l], ln1_b_ref[l])
        s_h = act_scale(h)
        hi = jnp.round(h * s_h).astype(jnp.bfloat16)
        yqkv = jnp.dot(hi, wqkv_ref[l], preferred_element_type=jnp.float32)  # (M, 3H)
        inv_sh = 1.0 / s_h
        bqkv = bqkv_ref[l]                                  # (1, 3H)
        qf = yqkv[:, 0:H] * (inv_sh * invsw_ref[l, 0]) + bqkv[:, 0:H]
        kf = yqkv[:, H:2 * H] * (inv_sh * invsw_ref[l, 1]) + bqkv[:, H:2 * H]
        vf = yqkv[:, 2 * H:3 * H] * (inv_sh * invsw_ref[l, 2]) + bqkv[:, 2 * H:3 * H]

        # global (all batch / all heads) abs-max scales, as in the torch code
        s_q, s_k, s_v = act_scale(qf), act_scale(kf), act_scale(vf)
        inv_qk = (1.0 / s_q) * (1.0 / s_k)

        # scores + softmax per (batch, head); everything stays in vregs
        probs = []
        for b in range(batch):
            mrow = neg_mask[b:b + 1, :]                     # (1, S)
            for hh in range(num_heads):
                r0, c0 = b * seq, hh * head_dim
                qs = jnp.round(qf[r0:r0 + seq, c0:c0 + head_dim] * s_q).astype(jnp.bfloat16)
                ks = jnp.round(kf[r0:r0 + seq, c0:c0 + head_dim] * s_k).astype(jnp.bfloat16)
                sc = lax.dot_general(qs, ks, (((1,), (1,)), ((), ())),
                                     preferred_element_type=jnp.float32)   # (S, S)
                sc = sc * (inv_qk * inv_sqrt_dh) + mrow
                sc = sc - jnp.max(sc, axis=-1, keepdims=True)
                e = jnp.exp(sc)
                probs.append(e / jnp.sum(e, axis=-1, keepdims=True))

        # global abs-max over ALL probs (all batches / heads), as in torch
        pmax = jnp.max(probs[0])
        for p in probs[1:]:
            pmax = jnp.maximum(pmax, jnp.max(p))
        s_p = q_half / jnp.maximum(pmax, 1e-20)
        inv_pv = (1.0 / s_p) * (1.0 / s_v)

        # context = quantize(P) @ quantize(V), assembled directly in (M, H) layout
        idx = 0
        for b in range(batch):
            for hh in range(num_heads):
                r0, c0 = b * seq, hh * head_dim
                pi = jnp.round(probs[idx] * s_p).astype(jnp.bfloat16)
                vs = jnp.round(vf[r0:r0 + seq, c0:c0 + head_dim] * s_v).astype(jnp.bfloat16)
                ctx_ref[r0:r0 + seq, c0:c0 + head_dim] = (
                    jnp.dot(pi, vs, preferred_element_type=jnp.float32) * inv_pv)
                idx += 1
        ctx = ctx_ref[...]

        # dense projection + residual
        x = x + (qdot(ctx, act_scale(ctx), wo_ref[l], invsw_ref[l, 3]) + bo_ref[l])

        # ---------------- FFN block (pre-norm) ----------------
        h2 = layernorm(x, ln2_g_ref[l], ln2_b_ref[l])
        a1 = qdot(h2, act_scale(h2), w1_ref[l], invsw_ref[l, 4]) + b1_ref[l]
        g = 0.5 * a1 * (1.0 + lax.erf(a1 * 0.7071067811865476))  # exact GELU
        a2 = qdot(g, act_scale(g), w2_ref[l], invsw_ref[l, 5]) + b2_ref[l]
        x = x + a2

    o_ref[...] = layernorm(x, lnf_g_ref[...], lnf_b_ref[...])


# ----------------------------- parameter prep (outside hot path) -------------
def _prepare_params(params, cfg):
    """Precompute quantized (integer-valued bf16) transposed weights and their
    inverse scales; stack per-layer tensors along a leading L axis."""
    H = cfg["hidden_size"]
    I = cfg["intermediate_size"]
    q_half = 0.5 * cfg["quantize"]["num_dist_vals"]

    def qw(w):  # quantize W.T with global abs-max (same abs-max as W)
        alpha = jnp.maximum(jnp.max(jnp.abs(w)), 1e-20)
        s = q_half / alpha
        return jnp.round(w.T * s).astype(jnp.bfloat16), (1.0 / s)

    acc = {k: [] for k in ("ln1_g", "ln1_b", "ln2_g", "ln2_b", "wqkv", "bqkv",
                           "wo", "bo", "w1", "b1", "w2", "b2", "invsw")}
    for lp in params["layers"]:
        iq, sq = qw(lp["wq"]); ik, sk = qw(lp["wk"]); iv, sv = qw(lp["wv"])
        io, so = qw(lp["wo"]); i1, s1 = qw(lp["w1"]); i2, s2 = qw(lp["w2"])
        acc["wqkv"].append(jnp.concatenate([iq, ik, iv], axis=1))        # (H, 3H)
        acc["bqkv"].append(jnp.concatenate([lp["bq"], lp["bk"], lp["bv"]]).reshape(1, 3 * H))
        acc["wo"].append(io); acc["bo"].append(lp["bo"].reshape(1, H))
        acc["w1"].append(i1); acc["b1"].append(lp["b1"].reshape(1, I))
        acc["w2"].append(i2); acc["b2"].append(lp["b2"].reshape(1, H))
        acc["invsw"].append(jnp.stack([sq, sk, sv, so, s1, s2]))
        acc["ln1_g"].append(lp["ln1_g"].reshape(1, H))
        acc["ln1_b"].append(lp["ln1_b"].reshape(1, H))
        acc["ln2_g"].append(lp["ln2_g"].reshape(1, H))
        acc["ln2_b"].append(lp["ln2_b"].reshape(1, H))

    out = {k: jnp.stack(v, axis=0) for k, v in acc.items()}
    out["invsw"] = out["invsw"].astype(jnp.float32)                      # (L, 6)
    out["lnf_g"] = params["lnf_g"].reshape(1, H)
    out["lnf_b"] = params["lnf_b"].reshape(1, H)
    return out


# ----------------------------- encoder forward --------------------------------
def encoder_forward(hidden, mask, params, cfg):
    B, S, H = hidden.shape
    L = cfg["num_hidden_layers"]
    heads = cfg["num_attention_heads"]
    q_half = 0.5 * cfg["quantize"]["num_dist_vals"]
    assert cfg["quantize"]["percentile"] == 1.0  # TODO(synk): percentile<1 branch not implemented

    p = _prepare_params(params, cfg)
    x2d = hidden.reshape(B * S, H).astype(jnp.float32)
    maskf = mask.astype(jnp.float32)

    kernel = functools.partial(
        _encoder_kernel,
        num_layers=L, num_heads=heads, head_dim=H // heads,
        batch=B, seq=S, eps=cfg["layer_norm_eps"], q_half=q_half)

    vmem_specs = [pl.BlockSpec(memory_space=pltpu.MemorySpace.VMEM) for _ in range(16)]
    smem_spec = pl.BlockSpec(memory_space=pltpu.MemorySpace.SMEM)

    out = pl.pallas_call(
        kernel,
        out_shape=jax.ShapeDtypeStruct((B * S, H), jnp.float32),
        in_specs=vmem_specs + [smem_spec],
        out_specs=pl.BlockSpec(memory_space=pltpu.MemorySpace.VMEM),
        scratch_shapes=[pltpu.VMEM((B * S, H), jnp.float32)],
    )(x2d, maskf,
      p["ln1_g"], p["ln1_b"], p["ln2_g"], p["ln2_b"],
      p["wqkv"], p["bqkv"], p["wo"], p["bo"],
      p["w1"], p["b1"], p["w2"], p["b2"],
      p["lnf_g"], p["lnf_b"], p["invsw"])
    return out.reshape(B, S, H)


# ----------------------------- pure-JAX reference (sanity check) --------------
def _reference_forward(hidden, mask, params, cfg):
    H = cfg["hidden_size"]; heads = cfg["num_attention_heads"]; dh = H // heads
    eps = cfg["layer_norm_eps"]; q_half = 0.5 * cfg["quantize"]["num_dist_vals"]
    B, S, _ = hidden.shape
    x = hidden.astype(jnp.float32)
    add_mask = -1000.0 * (1.0 - mask.astype(jnp.float32))[:, None, None, :]

    def quant(v):
        s = q_half / jnp.maximum(jnp.max(jnp.abs(v)), 1e-20)
        return jnp.round(v * s) / s

    def qmm(a, b):
        return jnp.matmul(quant(a), quant(b))

    def ln(v, g, b):
        mu = v.mean(-1, keepdims=True); vc = v - mu
        var = (vc * vc).mean(-1, keepdims=True)
        return vc / jnp.sqrt(var + eps) * g + b

    def qlin(v, w, bias):
        return qmm(v, w.T) + bias

    for lp in params["layers"]:
        h = ln(x, lp["ln1_g"], lp["ln1_b"])
        q = qlin(h, lp["wq"], lp["bq"]).reshape(B, S, heads, dh).transpose(0, 2, 1, 3)
        k = qlin(h, lp["wk"], lp["bk"]).reshape(B, S, heads, dh).transpose(0, 2, 1, 3)
        v = qlin(h, lp["wv"], lp["bv"]).reshape(B, S, heads, dh).transpose(0, 2, 1, 3)
        sc = qmm(q, jnp.swapaxes(k, -1, -2)) / math.sqrt(dh) + add_mask
        pr = jax.nn.softmax(sc, axis=-1)
        ctx = qmm(pr, v).transpose(0, 2, 1, 3).reshape(B, S, H)
        x = x + qlin(ctx, lp["wo"], lp["bo"])
        h2 = ln(x, lp["ln2_g"], lp["ln2_b"])
        f = jax.nn.gelu(qlin(h2, lp["w1"], lp["b1"]), approximate=False)
        x = x + qlin(f, lp["w2"], lp["b2"])
    return ln(x, params["lnf_g"], params["lnf_b"])


# ----------------------------- parameter init ---------------------------------
def init_params(key, cfg):
    H = cfg["hidden_size"]
    I = cfg["intermediate_size"]
    L = cfg["num_hidden_layers"]

    def nxt():
        nonlocal key
        key, sub = jax.random.split(key)
        return sub

    def lin(out_f, in_f):
        w = jax.random.normal(nxt(), (out_f, in_f), jnp.float32) * 0.05
        b = jax.random.normal(nxt(), (out_f,), jnp.float32) * 0.01
        return w, b

    layers = []
    for _ in range(L):
        wq, bq = lin(H, H)
        wk, bk = lin(H, H)
        wv, bv = lin(H, H)
        wo, bo = lin(H, H)
        w1, b1 = lin(I, H)
        w2, b2 = lin(H, I)
        layers.append(dict(
            ln1_g=1.0 + 0.01 * jax.random.normal(nxt(), (H,), jnp.float32),
            ln1_b=0.01 * jax.random.normal(nxt(), (H,), jnp.float32),
            ln2_g=1.0 + 0.01 * jax.random.normal(nxt(), (H,), jnp.float32),
            ln2_b=0.01 * jax.random.normal(nxt(), (H,), jnp.float32),
            wq=wq, bq=bq, wk=wk, bk=bk, wv=wv, bv=bv, wo=wo, bo=bo,
            w1=w1, b1=b1, w2=w2, b2=b2,
        ))
    return dict(
        layers=layers,
        lnf_g=1.0 + 0.01 * jax.random.normal(nxt(), (H,), jnp.float32),
        lnf_b=0.01 * jax.random.normal(nxt(), (H,), jnp.float32),
    )


# ----------------------------- main --------------------------------------------
if __name__ == "__main__":
    B, S = 2, 8
    H = CFG["hidden_size"]

    key = jax.random.PRNGKey(0)
    key, kx, kp = jax.random.split(key, 3)
    x = jax.random.normal(kx, (B, S, H), jnp.float32)
    # attention mask: 1 = attend, 0 = padding (last two positions padded)
    mask = jnp.ones((B, S), jnp.float32).at[:, -2:].set(0.0)

    params = init_params(kp, CFG)

    fwd = jax.jit(functools.partial(encoder_forward, cfg=CFG))
    out = jax.block_until_ready(fwd(x, mask, params))

    assert out.shape == (B, S, H) and out.dtype == jnp.float32
    assert bool(jnp.all(jnp.isfinite(out)))

    # sanity-check against a pure-JAX reference (loose tolerance: quantization
    # rounding boundaries may flip by 1 ulp between the two code paths)
    ref = _reference_forward(x, mask, params, CFG)
    assert float(jnp.max(jnp.abs(out - ref))) < 5e-2

    print("KERNEL_OK")
</pallas_src>

<mosaic_0001>
module attributes {stable_mosaic.version = 11 : i64} {
  func.func @_encoder_kernel(%arg0: memref<16x32xf32, #tpu.memory_space<vmem>>, %arg1: memref<2x8xf32, #tpu.memory_space<vmem>>, %arg2: memref<2x1x32xf32, #tpu.memory_space<vmem>>, %arg3: memref<2x1x32xf32, #tpu.memory_space<vmem>>, %arg4: memref<2x1x32xf32, #tpu.memory_space<vmem>>, %arg5: memref<2x1x32xf32, #tpu.memory_space<vmem>>, %arg6: memref<2x32x96xbf16, #tpu.memory_space<vmem>>, %arg7: memref<2x1x96xf32, #tpu.memory_space<vmem>>, %arg8: memref<2x32x32xbf16, #tpu.memory_space<vmem>>, %arg9: memref<2x1x32xf32, #tpu.memory_space<vmem>>, %arg10: memref<2x32x128xbf16, #tpu.memory_space<vmem>>, %arg11: memref<2x1x128xf32, #tpu.memory_space<vmem>>, %arg12: memref<2x128x32xbf16, #tpu.memory_space<vmem>>, %arg13: memref<2x1x32xf32, #tpu.memory_space<vmem>>, %arg14: memref<1x32xf32, #tpu.memory_space<vmem>>, %arg15: memref<1x32xf32, #tpu.memory_space<vmem>>, %arg16: memref<2x6xf32, #tpu.memory_space<smem>>, %arg17: memref<16x32xf32, #tpu.memory_space<vmem>>, %arg18: memref<16x32xf32, #tpu.memory_space<vmem>>) attributes {dimension_semantics = [], scalar_prefetch = 0 : i64, scratch_operands = 1 : i64, tpu.core_type = #tpu.core_type<tc>} {
    %c0 = arith.constant 0 : index
    %c0_0 = arith.constant 0 : index
    %0 = vector.load %arg0[%c0, %c0_0] : memref<16x32xf32, #tpu.memory_space<vmem>>, vector<16x32xf32>
    %c0_1 = arith.constant 0 : index
    %c0_2 = arith.constant 0 : index
    %1 = vector.load %arg1[%c0_1, %c0_2] : memref<2x8xf32, #tpu.memory_space<vmem>>, vector<2x8xf32>
    %cst = arith.constant 1.000000e+00 : f32
    %2 = vector.broadcast %cst : f32 to vector<2x8xf32>
    %3 = arith.subf %2, %1 : vector<2x8xf32>
    %cst_3 = arith.constant -1.000000e+03 : f32
    %4 = vector.broadcast %cst_3 : f32 to vector<2x8xf32>
    %5 = arith.mulf %4, %3 : vector<2x8xf32>
    %c0_4 = arith.constant 0 : index
    %c0_5 = arith.constant 0 : index
    %c0_6 = arith.constant 0 : index
    %6 = vector.load %arg2[%c0_4, %c0_5, %c0_6] : memref<2x1x32xf32, #tpu.memory_space<vmem>>, vector<1x1x32xf32>
    %7 = vector.shape_cast %6 : vector<1x1x32xf32> to vector<1x32xf32>
    %c0_7 = arith.constant 0 : index
    %c0_8 = arith.constant 0 : index
    %c0_9 = arith.constant 0 : index
    %8 = vector.load %arg3[%c0_7, %c0_8, %c0_9] : memref<2x1x32xf32, #tpu.memory_space<vmem>>, vector<1x1x32xf32>
    %9 = vector.shape_cast %8 : vector<1x1x32xf32> to vector<1x32xf32>
    %cst_10 = arith.constant dense<0.000000e+00> : vector<16xf32>
    %10 = vector.multi_reduction <add>, %0, %cst_10 [1] : vector<16x32xf32> to vector<16xf32>
    %11 = vector.shape_cast %10 : vector<16xf32> to vector<16x1xf32>
    %cst_11 = arith.constant 3.200000e+01 : f32
    %12 = vector.broadcast %cst_11 : f32 to vector<16x1xf32>
    %13 = arith.divf %11, %12 : vector<16x1xf32>
    %14 = vector.broadcast %13 : vector<16x1xf32> to vector<16x32xf32>
    %15 = arith.subf %0, %14 : vector<16x32xf32>
    %16 = arith.mulf %15, %15 : vector<16x32xf32>
    %cst_12 = arith.constant dense<0.000000e+00> : vector<16xf32>
    %17 = vector.multi_reduction <add>, %16, %cst_12 [1] : vector<16x32xf32> to vector<16xf32>
    %18 = vector.shape_cast %17 : vector<16xf32> to vector<16x1xf32>
    %cst_13 = arith.constant 3.200000e+01 : f32
    %19 = vector.broadcast %cst_13 : f32 to vector<16x1xf32>
    %20 = arith.divf %18, %19 : vector<16x1xf32>
    %cst_14 = arith.constant 9.99999996E-13 : f32
    %21 = vector.broadcast %cst_14 : f32 to vector<16x1xf32>
    %22 = arith.addf %20, %21 : vector<16x1xf32>
    %23 = math.sqrt %22 : vector<16x1xf32>
    %24 = vector.broadcast %23 : vector<16x1xf32> to vector<16x32xf32>
    %25 = arith.divf %15, %24 : vector<16x32xf32>
    %26 = vector.broadcast %7 : vector<1x32xf32> to vector<16x32xf32>
    %27 = arith.mulf %25, %26 : vector<16x32xf32>
    %28 = vector.broadcast %9 : vector<1x32xf32> to vector<16x32xf32>
    %29 = arith.addf %27, %28 : vector<16x32xf32>
    %30 = math.absf %29 : vector<16x32xf32>
    %31 = vector.shape_cast %30 : vector<16x32xf32> to vector<1x16x32xf32>
    %cst_15 = arith.constant dense<0xFF800000> : vector<1xf32>
    %32 = vector.multi_reduction <maximumf>, %31, %cst_15 [1, 2] : vector<1x16x32xf32> to vector<1xf32>
    %33 = vector.shape_cast %32 : vector<1xf32> to vector<1x1x1xf32>
    %34 = vector.extract %33[0, 0, 0] : f32 from vector<1x1x1xf32>
    %cst_16 = arith.constant 9.99999968E-21 : f32
    %35 = arith.maximumf %34, %cst_16 : f32
    %cst_17 = arith.constant 1.275000e+02 : f32
    %36 = arith.divf %cst_17, %35 : f32
    %37 = vector.broadcast %36 : f32 to vector<16x32xf32>
    %38 = arith.mulf %29, %37 : vector<16x32xf32>
    %39 = math.roundeven %38 : vector<16x32xf32>
    %40 = arith.truncf %39 : vector<16x32xf32> to vector<16x32xbf16>
    %c0_18 = arith.constant 0 : index
    %c0_19 = arith.constant 0 : index
    %c0_20 = arith.constant 0 : index
    %41 = vector.load %arg6[%c0_18, %c0_19, %c0_20] : memref<2x32x96xbf16, #tpu.memory_space<vmem>>, vector<1x32x96xbf16>
    %42 = vector.shape_cast %41 : vector<1x32x96xbf16> to vector<32x96xbf16>
    %cst_21 = arith.constant dense<0.000000e+00> : vector<16x96xf32>
    %43 = tpu.matmul %40, %42, %cst_21 {dimension_numbers = #tpu.dot_dimension_numbers<[1], [0], [0], [1], [0, 0, 1, 1], [], []>} : vector<16x32xbf16>, vector<32x96xbf16>, vector<16x96xf32> -> vector<16x96xf32>
    %cst_22 = arith.constant 1.000000e+00 : f32
    %44 = arith.divf %cst_22, %36 : f32
    %c0_23 = arith.constant 0 : index
    %c0_24 = arith.constant 0 : index
    %c0_25 = arith.constant 0 : index
    %45 = vector.load %arg7[%c0_23, %c0_24, %c0_25] : memref<2x1x96xf32, #tpu.memory_space<vmem>>, vector<1x1x96xf32>
    %46 = vector.shape_cast %45 : vector<1x1x96xf32> to vector<1x96xf32>
    %47 = vector.extract_strided_slice %43 {offsets = [0, 0], sizes = [16, 32], strides = [1, 1]} : vector<16x96xf32> to vector<16x32xf32>
    %c0_26 = arith.constant 0 : index
    %c0_27 = arith.constant 0 : index
    %48 = memref.load %arg16[%c0_26, %c0_27] : memref<2x6xf32, #tpu.memory_space<smem>>
    %49 = arith.mulf %44, %48 : f32
    %50 = vector.broadcast %49 : f32 to vector<16x32xf32>
    %51 = arith.mulf %47, %50 : vector<16x32xf32>
    %52 = vector.extract_strided_slice %46 {offsets = [0, 0], sizes = [1, 32], strides = [1, 1]} : vector<1x96xf32> to vector<1x32xf32>
    %53 = vector.broadcast %52 : vector<1x32xf32> to vector<16x32xf32>
    %54 = arith.addf %51, %53 : vector<16x32xf32>
    %55 = vector.extract_strided_slice %43 {offsets = [0, 32], sizes = [16, 32], strides = [1, 1]} : vector<16x96xf32> to vector<16x32xf32>
    %c0_28 = arith.constant 0 : index
    %c1 = arith.constant 1 : index
    %56 = memref.load %arg16[%c0_28, %c1] : memref<2x6xf32, #tpu.memory_space<smem>>
    %57 = arith.mulf %44, %56 : f32
    %58 = vector.broadcast %57 : f32 to vector<16x32xf32>
    %59 = arith.mulf %55, %58 : vector<16x32xf32>
    %60 = vector.extract_strided_slice %46 {offsets = [0, 32], sizes = [1, 32], strides = [1, 1]} : vector<1x96xf32> to vector<1x32xf32>
    %61 = vector.broadcast %60 : vector<1x32xf32> to vector<16x32xf32>
    %62 = arith.addf %59, %61 : vector<16x32xf32>
    %63 = vector.extract_strided_slice %43 {offsets = [0, 64], sizes = [16, 32], strides = [1, 1]} : vector<16x96xf32> to vector<16x32xf32>
    %c0_29 = arith.constant 0 : index
    %c2 = arith.constant 2 : index
    %64 = memref.load %arg16[%c0_29, %c2] : memref<2x6xf32, #tpu.memory_space<smem>>
    %65 = arith.mulf %44, %64 : f32
    %66 = vector.broadcast %65 : f32 to vector<16x32xf32>
    %67 = arith.mulf %63, %66 : vector<16x32xf32>
    %68 = vector.extract_strided_slice %46 {offsets = [0, 64], sizes = [1, 32], strides = [1, 1]} : vector<1x96xf32> to vector<1x32xf32>
    %69 = vector.broadcast %68 : vector<1x32xf32> to vector<16x32xf32>
    %70 = arith.addf %67, %69 : vector<16x32xf32>
    %71 = math.absf %54 : vector<16x32xf32>
    %72 = vector.shape_cast %71 : vector<16x32xf32> to vector<1x16x32xf32>
    %cst_30 = arith.constant dense<0xFF800000> : vector<1xf32>
    %73 = vector.multi_reduction <maximumf>, %72, %cst_30 [1, 2] : vector<1x16x32xf32> to vector<1xf32>
    %74 = vector.shape_cast %73 : vector<1xf32> to vector<1x1x1xf32>
    %75 = vector.extract %74[0, 0, 0] : f32 from vector<1x1x1xf32>
    %cst_31 = arith.constant 9.99999968E-21 : f32
    %76 = arith.maximumf %75, %cst_31 : f32
    %cst_32 = arith.constant 1.275000e+02 : f32
    %77 = arith.divf %cst_32, %76 : f32
    %78 = math.absf %62 : vector<16x32xf32>
    %79 = vector.shape_cast %78 : vector<16x32xf32> to vector<1x16x32xf32>
    %cst_33 = arith.constant dense<0xFF800000> : vector<1xf32>
    %80 = vector.multi_reduction <maximumf>, %79, %cst_33 [1, 2] : vector<1x16x32xf32> to vector<1xf32>
    %81 = vector.shape_cast %80 : vector<1xf32> to vector<1x1x1xf32>
    %82 = vector.extract %81[0, 0, 0] : f32 from vector<1x1x1xf32>
    %cst_34 = arith.constant 9.99999968E-21 : f32
    %83 = arith.maximumf %82, %cst_34 : f32
    %cst_35 = arith.constant 1.275000e+02 : f32
    %84 = arith.divf %cst_35, %83 : f32
    %85 = math.absf %70 : vector<16x32xf32>
    %86 = vector.shape_cast %85 : vector<16x32xf32> to vector<1x16x32xf32>
    %cst_36 = arith.constant dense<0xFF800000> : vector<1xf32>
    %87 = vector.multi_reduction <maximumf>, %86, %cst_36 [1, 2] : vector<1x16x32xf32> to vector<1xf32>
    %88 = vector.shape_cast %87 : vector<1xf32> to vector<1x1x1xf32>
    %89 = vector.extract %88[0, 0, 0] : f32 from vector<1x1x1xf32>
    %cst_37 = arith.constant 9.99999968E-21 : f32
    %90 = arith.maximumf %89, %cst_37 : f32
    %cst_38 = arith.constant 1.275000e+02 : f32
    %91 = arith.divf %cst_38, %90 : f32
    %cst_39 = arith.constant 1.000000e+00 : f32
    %92 = arith.divf %cst_39, %77 : f32
    %cst_40 = arith.constant 1.000000e+00 : f32
    %93 = arith.divf %cst_40, %84 : f32
    %94 = arith.mulf %92, %93 : f32
    %95 = vector.extract_strided_slice %5 {offsets = [0, 0], sizes = [1, 8], strides = [1, 1]} : vector<2x8xf32> to vector<1x8xf32>
    %96 = vector.extract_strided_slice %54 {offsets = [0, 0], sizes = [8, 8], strides = [1, 1]} : vector<16x32xf32> to vector<8x8xf32>
    %97 = vector.broadcast %77 : f32 to vector<8x8xf32>
    %98 = arith.mulf %96, %97 : vector<8x8xf32>
    %99 = math.roundeven %98 : vector<8x8xf32>
    %100 = arith.truncf %99 : vector<8x8xf32> to vector<8x8xbf16>
    %101 = vector.extract_strided_slice %62 {offsets = [0, 0], sizes = [8, 8], strides = [1, 1]} : vector<16x32xf32> to vector<8x8xf32>
    %102 = vector.broadcast %84 : f32 to vector<8x8xf32>
    %103 = arith.mulf %101, %102 : vector<8x8xf32>
    %104 = math.roundeven %103 : vector<8x8xf32>
    %105 = arith.truncf %104 : vector<8x8xf32> to vector<8x8xbf16>
    %cst_41 = arith.constant dense<0.000000e+00> : vector<8x8xf32>
    %106 = tpu.matmul %100, %105, %cst_41 {dimension_numbers = #tpu.dot_dimension_numbers<[1], [1], [0], [0], [0, 0, 1, 0], [], []>} : vector<8x8xbf16>, vector<8x8xbf16>, vector<8x8xf32> -> vector<8x8xf32>
    %cst_42 = arith.constant 0.353553385 : f32
    %107 = arith.mulf %94, %cst_42 : f32
    %108 = vector.broadcast %107 : f32 to vector<8x8xf32>
    %109 = arith.mulf %106, %108 : vector<8x8xf32>
    %110 = vector.broadcast %95 : vector<1x8xf32> to vector<8x8xf32>
    %111 = arith.addf %109, %110 : vector<8x8xf32>
    %cst_43 = arith.constant dense<0xFF800000> : vector<8xf32>
    %112 = vector.multi_reduction <maximumf>, %111, %cst_43 [1] : vector<8x8xf32> to vector<8xf32>
    %113 = vector.shape_cast %112 : vector<8xf32> to vector<8x1xf32>
    %114 = vector.broadcast %113 : vector<8x1xf32> to vector<8x8xf32>
    %115 = arith.subf %111, %114 : vector<8x8xf32>
    %116 = math.exp %115 : vector<8x8xf32>
    %cst_44 = arith.constant dense<0.000000e+00> : vector<8xf32>
    %117 = vector.multi_reduction <add>, %116, %cst_44 [1] : vector<8x8xf32> to vector<8xf32>
    %118 = vector.shape_cast %117 : vector<8xf32> to vector<8x1xf32>
    %119 = vector.broadcast %118 : vector<8x1xf32> to vector<8x8xf32>
    %120 = arith.divf %116, %119 : vector<8x8xf32>
    %121 = vector.extract_strided_slice %54 {offsets = [0, 8], sizes = [8, 8], strides = [1, 1]} : vector<16x32xf32> to vector<8x8xf32>
    %122 = vector.broadcast %77 : f32 to vector<8x8xf32>
    %123 = arith.mulf %121, %122 : vector<8x8xf32>
    %124 = math.roundeven %123 : vector<8x8xf32>
    %125 = arith.truncf %124 : vector<8x8xf32> to vector<8x8xbf16>
    %126 = vector.extract_strided_slice %62 {offsets = [0, 8], sizes = [8, 8], strides = [1, 1]} : vector<16x32xf32> to vector<8x8xf32>
    %127 = vector.broadcast %84 : f32 to vector<8x8xf32>
    %128 = arith.mulf %126, %127 : vector<8x8xf32>
    %129 = math.roundeven %128 : vector<8x8xf32>
    %130 = arith.truncf %129 : vector<8x8xf32> to vector<8x8xbf16>
    %cst_45 = arith.constant dense<0.000000e+00> : vector<8x8xf32>
    %131 = tpu.matmul %125, %130, %cst_45 {dimension_numbers = #tpu.dot_dimension_numbers<[1], [1], [0], [0], [0, 0, 1, 0], [], []>} : vector<8x8xbf16>, vector<8x8xbf16>, vector<8x8xf32> -> vector<8x8xf32>
    %cst_46 = arith.constant 0.353553385 : f32
    %132 = arith.mulf %94, %cst_46 : f32
    %133 = vector.broadcast %132 : f32 to vector<8x8xf32>
    %134 = arith.mulf %131, %133 : vector<8x8xf32>
    %135 = vector.broadcast %95 : vector<1x8xf32> to vector<8x8xf32>
    %136 = arith.addf %134, %135 : vector<8x8xf32>
    %cst_47 = arith.constant dense<0xFF800000> : vector<8xf32>
    %137 = vector.multi_reduction <maximumf>, %136, %cst_47 [1] : vector<8x8xf32> to vector<8xf32>
    %138 = vector.shape_cast %137 : vector<8xf32> to vector<8x1xf32>
    %139 = vector.broadcast %138 : vector<8x1xf32> to vector<8x8xf32>
    %140 = arith.subf %136, %139 : vector<8x8xf32>
    %141 = math.exp %140 : vector<8x8xf32>
    %cst_48 = arith.constant dense<0.000000e+00> : vector<8xf32>
    %142 = vector.multi_reduction <add>, %141, %cst_48 [1] : vector<8x8xf32> to vector<8xf32>
    %143 = vector.shape_cast %142 : vector<8xf32> to vector<8x1xf32>
    %144 = vector.broadcast %143 : vector<8x1xf32> to vector<8x8xf32>
    %145 = arith.divf %141, %144 : vector<8x8xf32>
    %146 = vector.extract_strided_slice %54 {offsets = [0, 16], sizes = [8, 8], strides = [1, 1]} : vector<16x32xf32> to vector<8x8xf32>
    %147 = vector.broadcast %77 : f32 to vector<8x8xf32>
    %148 = arith.mulf %146, %147 : vector<8x8xf32>
    %149 = math.roundeven %148 : vector<8x8xf32>
    %150 = arith.truncf %149 : vector<8x8xf32> to vector<8x8xbf16>
    %151 = vector.extract_strided_slice %62 {offsets = [0, 16], sizes = [8, 8], strides = [1, 1]} : vector<16x32xf32> to vector<8x8xf32>
    %152 = vector.broadcast %84 : f32 to vector<8x8xf32>
    %153 = arith.mulf %151, %152 : vector<8x8xf32>
    %154 = math.roundeven %153 : vector<8x8xf32>
    %155 = arith.truncf %154 : vector<8x8xf32> to vector<8x8xbf16>
    %cst_49 = arith.constant dense<0.000000e+00> : vector<8x8xf32>
    %156 = tpu.matmul %150, %155, %cst_49 {dimension_numbers = #tpu.dot_dimension_numbers<[1], [1], [0], [0], [0, 0, 1, 0], [], []>} : vector<8x8xbf16>, vector<8x8xbf16>, vector<8x8xf32> -> vector<8x8xf32>
    %cst_50 = arith.constant 0.353553385 : f32
    %157 = arith.mulf %94, %cst_50 : f32
    %158 = vector.broadcast %157 : f32 to vector<8x8xf32>
    %159 = arith.mulf %156, %158 : vector<8x8xf32>
    %160 = vector.broadcast %95 : vector<1x8xf32> to vector<8x8xf32>
    %161 = arith.addf %159, %160 : vector<8x8xf32>
    %cst_51 = arith.constant dense<0xFF800000> : vector<8xf32>
    %162 = vector.multi_reduction <maximumf>, %161, %cst_51 [1] : vector<8x8xf32> to vector<8xf32>
    %163 = vector.shape_cast %162 : vector<8xf32> to vector<8x1xf32>
    %164 = vector.broadcast %163 : vector<8x1xf32> to vector<8x8xf32>
    %165 = arith.subf %161, %164 : vector<8x8xf32>
    %166 = math.exp %165 : vector<8x8xf32>
    %cst_52 = arith.constant dense<0.000000e+00> : vector<8xf32>
    %167 = vector.multi_reduction <add>, %166, %cst_52 [1] : vector<8x8xf32> to vector<8xf32>
    %168 = vector.shape_cast %167 : vector<8xf32> to vector<8x1xf32>
    %169 = vector.broadcast %168 : vector<8x1xf32> to vector<8x8xf32>
    %170 = arith.divf %166, %169 : vector<8x8xf32>
    %171 = vector.extract_strided_slice %54 {offsets = [0, 24], sizes = [8, 8], strides = [1, 1]} : vector<16x32xf32> to vector<8x8xf32>
    %172 = vector.broadcast %77 : f32 to vector<8x8xf32>
    %173 = arith.mulf %171, %172 : vector<8x8xf32>
    %174 = math.roundeven %173 : vector<8x8xf32>
    %175 = arith.truncf %174 : vector<8x8xf32> to vector<8x8xbf16>
    %176 = vector.extract_strided_slice %62 {offsets = [0, 24], sizes = [8, 8], strides = [1, 1]} : vector<16x32xf32> to vector<8x8xf32>
    %177 = vector.broadcast %84 : f32 to vector<8x8xf32>
    %178 = arith.mulf %176, %177 : vector<8x8xf32>
    %179 = math.roundeven %178 : vector<8x8xf32>
    %180 = arith.truncf %179 : vector<8x8xf32> to vector<8x8xbf16>
    %cst_53 = arith.constant dense<0.000000e+00> : vector<8x8xf32>
    %181 = tpu.matmul %175, %180, %cst_53 {dimension_numbers = #tpu.dot_dimension_numbers<[1], [1], [0], [0], [0, 0, 1, 0], [], []>} : vector<8x8xbf16>, vector<8x8xbf16>, vector<8x8xf32> -> vector<8x8xf32>
    %cst_54 = arith.constant 0.353553385 : f32
    %182 = arith.mulf %94, %cst_54 : f32
    %183 = vector.broadcast %182 : f32 to vector<8x8xf32>
    %184 = arith.mulf %181, %183 : vector<8x8xf32>
    %185 = vector.broadcast %95 : vector<1x8xf32> to vector<8x8xf32>
    %186 = arith.addf %184, %185 : vector<8x8xf32>
    %cst_55 = arith.constant dense<0xFF800000> : vector<8xf32>
    %187 = vector.multi_reduction <maximumf>, %186, %cst_55 [1] : vector<8x8xf32> to vector<8xf32>
    %188 = vector.shape_cast %187 : vector<8xf32> to vector<8x1xf32>
    %189 = vector.broadcast %188 : vector<8x1xf32> to vector<8x8xf32>
    %190 = arith.subf %186, %189 : vector<8x8xf32>
    %191 = math.exp %190 : vector<8x8xf32>
    %cst_56 = arith.constant dense<0.000000e+00> : vector<8xf32>
    %192 = vector.multi_reduction <add>, %191, %cst_56 [1] : vector<8x8xf32> to vector<8xf32>
    %193 = vector.shape_cast %192 : vector<8xf32> to vector<8x1xf32>
    %194 = vector.broadcast %193 : vector<8x1xf32> to vector<8x8xf32>
    %195 = arith.divf %191, %194 : vector<8x8xf32>
    %196 = vector.extract_strided_slice %5 {offsets = [1, 0], sizes = [1, 8], strides = [1, 1]} : vector<2x8xf32> to vector<1x8xf32>
    %197 = vector.extract_strided_slice %54 {offsets = [8, 0], sizes = [8, 8], strides = [1, 1]} : vector<16x32xf32> to vector<8x8xf32>
    %198 = vector.broadcast %77 : f32 to vector<8x8xf32>
    %199 = arith.mulf %197, %198 : vector<8x8xf32>
    %200 = math.roundeven %199 : vector<8x8xf32>
    %201 = arith.truncf %200 : vector<8x8xf32> to vector<8x8xbf16>
    %202 = vector.extract_strided_slice %62 {offsets = [8, 0], sizes = [8, 8], strides = [1, 1]} : vector<16x32xf32> to vector<8x8xf32>
    %203 = vector.broadcast %84 : f32 to vector<8x8xf32>
    %204 = arith.mulf %202, %203 : vector<8x8xf32>
    %205 = math.roundeven %204 : vector<8x8xf32>
    %206 = arith.truncf %205 : vector<8x8xf32> to vector<8x8xbf16>
    %cst_57 = arith.constant dense<0.000000e+00> : vector<8x8xf32>
    %207 = tpu.matmul %201, %206, %cst_57 {dimension_numbers = #tpu.dot_dimension_numbers<[1], [1], [0], [0], [0, 0, 1, 0], [], []>} : vector<8x8xbf16>, vector<8x8xbf16>, vector<8x8xf32> -> vector<8x8xf32>
    %cst_58 = arith.constant 0.353553385 : f32
    %208 = arith.mulf %94, %cst_58 : f32
    %209 = vector.broadcast %208 : f32 to vector<8x8xf32>
    %210 = arith.mulf %207, %209 : vector<8x8xf32>
    %211 = vector.broadcast %196 : vector<1x8xf32> to vector<8x8xf32>
    %212 = arith.addf %210, %211 : vector<8x8xf32>
    %cst_59 = arith.constant dense<0xFF800000> : vector<8xf32>
    %213 = vector.multi_reduction <maximumf>, %212, %cst_59 [1] : vector<8x8xf32> to vector<8xf32>
    %214 = vector.shape_cast %213 : vector<8xf32> to vector<8x1xf32>
    %215 = vector.broadcast %214 : vector<8x1xf32> to vector<8x8xf32>
    %216 = arith.subf %212, %215 : vector<8x8xf32>
    %217 = math.exp %216 : vector<8x8xf32>
    %cst_60 = arith.constant dense<0.000000e+00> : vector<8xf32>
    %218 = vector.multi_reduction <add>, %217, %cst_60 [1] : vector<8x8xf32> to vector<8xf32>
    %219 = vector.shape_cast %218 : vector<8xf32> to vector<8x1xf32>
    %220 = vector.broadcast %219 : vector<8x1xf32> to vector<8x8xf32>
    %221 = arith.divf %217, %220 : vector<8x8xf32>
    %222 = vector.extract_strided_slice %54 {offsets = [8, 8], sizes = [8, 8], strides = [1, 1]} : vector<16x32xf32> to vector<8x8xf32>
    %223 = vector.broadcast %77 : f32 to vector<8x8xf32>
    %224 = arith.mulf %222, %223 : vector<8x8xf32>
    %225 = math.roundeven %224 : vector<8x8xf32>
    %226 = arith.truncf %225 : vector<8x8xf32> to vector<8x8xbf16>
    %227 = vector.extract_strided_slice %62 {offsets = [8, 8], sizes = [8, 8], strides = [1, 1]} : vector<16x32xf32> to vector<8x8xf32>
    %228 = vector.broadcast %84 : f32 to vector<8x8xf32>
    %229 = arith.mulf %227, %228 : vector<8x8xf32>
    %230 = math.roundeven %229 : vector<8x8xf32>
    %231 = arith.truncf %230 : vector<8x8xf32> to vector<8x8xbf16>
    %cst_61 = arith.constant dense<0.000000e+00> : vector<8x8xf32>
    %232 = tpu.matmul %226, %231, %cst_61 {dimension_numbers = #tpu.dot_dimension_numbers<[1], [1], [0], [0], [0, 0, 1, 0], [], []>} : vector<8x8xbf16>, vector<8x8xbf16>, vector<8x8xf32> -> vector<8x8xf32>
    %cst_62 = arith.constant 0.353553385 : f32
    %233 = arith.mulf %94, %cst_62 : f32
    %234 = vector.broadcast %233 : f32 to vector<8x8xf32>
    %235 = arith.mulf %232, %234 : vector<8x8xf32>
    %236 = vector.broadcast %196 : vector<1x8xf32> to vector<8x8xf32>
    %237 = arith.addf %235, %236 : vector<8x8xf32>
    %cst_63 = arith.constant dense<0xFF800000> : vector<8xf32>
    %238 = vector.multi_reduction <maximumf>, %237, %cst_63 [1] : vector<8x8xf32> to vector<8xf32>
    %239 = vector.shape_cast %238 : vector<8xf32> to vector<8x1xf32>
    %240 = vector.broadcast %239 : vector<8x1xf32> to vector<8x8xf32>
    %241 = arith.subf %237, %240 : vector<8x8xf32>
    %242 = math.exp %241 : vector<8x8xf32>
    %cst_64 = arith.constant dense<0.000000e+00> : vector<8xf32>
    %243 = vector.multi_reduction <add>, %242, %cst_64 [1] : vector<8x8xf32> to vector<8xf32>
    %244 = vector.shape_cast %243 : vector<8xf32> to vector<8x1xf32>
    %245 = vector.broadcast %244 : vector<8x1xf32> to vector<8x8xf32>
    %246 = arith.divf %242, %245 : vector<8x8xf32>
    %247 = vector.extract_strided_slice %54 {offsets = [8, 16], sizes = [8, 8], strides = [1, 1]} : vector<16x32xf32> to vector<8x8xf32>
    %248 = vector.broadcast %77 : f32 to vector<8x8xf32>
    %249 = arith.mulf %247, %248 : vector<8x8xf32>
    %250 = math.roundeven %249 : vector<8x8xf32>
    %251 = arith.truncf %250 : vector<8x8xf32> to vector<8x8xbf16>
    %252 = vector.extract_strided_slice %62 {offsets = [8, 16], sizes = [8, 8], strides = [1, 1]} : vector<16x32xf32> to vector<8x8xf32>
    %253 = vector.broadcast %84 : f32 to vector<8x8xf32>
    %254 = arith.mulf %252, %253 : vector<8x8xf32>
    %255 = math.roundeven %254 : vector<8x8xf32>
    %256 = arith.truncf %255 : vector<8x8xf32> to vector<8x8xbf16>
    %cst_65 = arith.constant dense<0.000000e+00> : vector<8x8xf32>
    %257 = tpu.matmul %251, %256, %cst_65 {dimension_numbers = #tpu.dot_dimension_numbers<[1], [1], [0], [0], [0, 0, 1, 0], [], []>} : vector<8x8xbf16>, vector<8x8xbf16>, vector<8x8xf32> -> vector<8x8xf32>
    %cst_66 = arith.constant 0.353553385 : f32
    %258 = arith.mulf %94, %cst_66 : f32
    %259 = vector.broadcast %258 : f32 to vector<8x8xf32>
    %260 = arith.mulf %257, %259 : vector<8x8xf32>
    %261 = vector.broadcast %196 : vector<1x8xf32> to vector<8x8xf32>
    %262 = arith.addf %260, %261 : vector<8x8xf32>
    %cst_67 = arith.constant dense<0xFF800000> : vector<8xf32>
    %263 = vector.multi_reduction <maximumf>, %262, %cst_67 [1] : vector<8x8xf32> to vector<8xf32>
    %264 = vector.shape_cast %263 : vector<8xf32> to vector<8x1xf32>
    %265 = vector.broadcast %264 : vector<8x1xf32> to vector<8x8xf32>
    %266 = arith.subf %262, %265 : vector<8x8xf32>
    %267 = math.exp %266 : vector<8x8xf32>
    %cst_68 = arith.constant dense<0.000000e+00> : vector<8xf32>
    %268 = vector.multi_reduction <add>, %267, %cst_68 [1] : vector<8x8xf32> to vector<8xf32>
    %269 = vector.shape_cast %268 : vector<8xf32> to vector<8x1xf32>
    %270 = vector.broadcast %269 : vector<8x1xf32> to vector<8x8xf32>
    %271 = arith.divf %267, %270 : vector<8x8xf32>
    %272 = vector.extract_strided_slice %54 {offsets = [8, 24], sizes = [8, 8], strides = [1, 1]} : vector<16x32xf32> to vector<8x8xf32>
    %273 = vector.broadcast %77 : f32 to vector<8x8xf32>
    %274 = arith.mulf %272, %273 : vector<8x8xf32>
    %275 = math.roundeven %274 : vector<8x8xf32>
    %276 = arith.truncf %275 : vector<8x8xf32> to vector<8x8xbf16>
    %277 = vector.extract_strided_slice %62 {offsets = [8, 24], sizes = [8, 8], strides = [1, 1]} : vector<16x32xf32> to vector<8x8xf32>
    %278 = vector.broadcast %84 : f32 to vector<8x8xf32>
    %279 = arith.mulf %277, %278 : vector<8x8xf32>
    %280 = math.roundeven %279 : vector<8x8xf32>
    %281 = arith.truncf %280 : vector<8x8xf32> to vector<8x8xbf16>
    %cst_69 = arith.constant dense<0.000000e+00> : vector<8x8xf32>
    %282 = tpu.matmul %276, %281, %cst_69 {dimension_numbers = #tpu.dot_dimension_numbers<[1], [1], [0], [0], [0, 0, 1, 0], [], []>} : vector<8x8xbf16>, vector<8x8xbf16>, vector<8x8xf32> -> vector<8x8xf32>
    %cst_70 = arith.constant 0.353553385 : f32
    %283 = arith.mulf %94, %cst_70 : f32
    %284 = vector.broadcast %283 : f32 to vector<8x8xf32>
    %285 = arith.mulf %282, %284 : vector<8x8xf32>
    %286 = vector.broadcast %196 : vector<1x8xf32> to vector<8x8xf32>
    %287 = arith.addf %285, %286 : vector<8x8xf32>
    %cst_71 = arith.constant dense<0xFF800000> : vector<8xf32>
    %288 = vector.multi_reduction <maximumf>, %287, %cst_71 [1] : vector<8x8xf32> to vector<8xf32>
    %289 = vector.shape_cast %288 : vector<8xf32> to vector<8x1xf32>
    %290 = vector.broadcast %289 : vector<8x1xf32> to vector<8x8xf32>
    %291 = arith.subf %287, %290 : vector<8x8xf32>
    %292 = math.exp %291 : vector<8x8xf32>
    %cst_72 = arith.constant dense<0.000000e+00> : vector<8xf32>
    %293 = vector.multi_reduction <add>, %292, %cst_72 [1] : vector<8x8xf32> to vector<8xf32>
    %294 = vector.shape_cast %293 : vector<8xf32> to vector<8x1xf32>
    %295 = vector.broadcast %294 : vector<8x1xf32> to vector<8x8xf32>
    %296 = arith.divf %292, %295 : vector<8x8xf32>
    %297 = vector.shape_cast %120 : vector<8x8xf32> to vector<1x8x8xf32>
    %cst_73 = arith.constant dense<0xFF800000> : vector<1xf32>
    %298 = vector.multi_reduction <maximumf>, %297, %cst_73 [1, 2] : vector<1x8x8xf32> to vector<1xf32>
    %299 = vector.shape_cast %298 : vector<1xf32> to vector<1x1x1xf32>
    %300 = vector.extract %299[0, 0, 0] : f32 from vector<1x1x1xf32>
    %301 = vector.shape_cast %145 : vector<8x8xf32> to vector<1x8x8xf32>
    %cst_74 = arith.constant dense<0xFF800000> : vector<1xf32>
    %302 = vector.multi_reduction <maximumf>, %301, %cst_74 [1, 2] : vector<1x8x8xf32> to vector<1xf32>
    %303 = vector.shape_cast %302 : vector<1xf32> to vector<1x1x1xf32>
    %304 = vector.extract %303[0, 0, 0] : f32 from vector<1x1x1xf32>
    %305 = arith.maximumf %300, %304 : f32
    %306 = vector.shape_cast %170 : vector<8x8xf32> to vector<1x8x8xf32>
    %cst_75 = arith.constant dense<0xFF800000> : vector<1xf32>
    %307 = vector.multi_reduction <maximumf>, %306, %cst_75 [1, 2] : vector<1x8x8xf32> to vector<1xf32>
    %308 = vector.shape_cast %307 : vector<1xf32> to vector<1x1x1xf32>
    %309 = vector.extract %308[0, 0, 0] : f32 from vector<1x1x1xf32>
    %310 = arith.maximumf %305, %309 : f32
    %311 = vector.shape_cast %195 : vector<8x8xf32> to vector<1x8x8xf32>
    %cst_76 = arith.constant dense<0xFF800000> : vector<1xf32>
    %312 = vector.multi_reduction <maximumf>, %311, %cst_76 [1, 2] : vector<1x8x8xf32> to vector<1xf32>
    %313 = vector.shape_cast %312 : vector<1xf32> to vector<1x1x1xf32>
    %314 = vector.extract %313[0, 0, 0] : f32 from vector<1x1x1xf32>
    %315 = arith.maximumf %310, %314 : f32
    %316 = vector.shape_cast %221 : vector<8x8xf32> to vector<1x8x8xf32>
    %cst_77 = arith.constant dense<0xFF800000> : vector<1xf32>
    %317 = vector.multi_reduction <maximumf>, %316, %cst_77 [1, 2] : vector<1x8x8xf32> to vector<1xf32>
    %318 = vector.shape_cast %317 : vector<1xf32> to vector<1x1x1xf32>
    %319 = vector.extract %318[0, 0, 0] : f32 from vector<1x1x1xf32>
    %320 = arith.maximumf %315, %319 : f32
    %321 = vector.shape_cast %246 : vector<8x8xf32> to vector<1x8x8xf32>
    %cst_78 = arith.constant dense<0xFF800000> : vector<1xf32>
    %322 = vector.multi_reduction <maximumf>, %321, %cst_78 [1, 2] : vector<1x8x8xf32> to vector<1xf32>
    %323 = vector.shape_cast %322 : vector<1xf32> to vector<1x1x1xf32>
    %324 = vector.extract %323[0, 0, 0] : f32 from vector<1x1x1xf32>
    %325 = arith.maximumf %320, %324 : f32
    %326 = vector.shape_cast %271 : vector<8x8xf32> to vector<1x8x8xf32>
    %cst_79 = arith.constant dense<0xFF800000> : vector<1xf32>
    %327 = vector.multi_reduction <maximumf>, %326, %cst_79 [1, 2] : vector<1x8x8xf32> to vector<1xf32>
    %328 = vector.shape_cast %327 : vector<1xf32> to vector<1x1x1xf32>
    %329 = vector.extract %328[0, 0, 0] : f32 from vector<1x1x1xf32>
    %330 = arith.maximumf %325, %329 : f32
    %331 = vector.shape_cast %296 : vector<8x8xf32> to vector<1x8x8xf32>
    %cst_80 = arith.constant dense<0xFF800000> : vector<1xf32>
    %332 = vector.multi_reduction <maximumf>, %331, %cst_80 [1, 2] : vector<1x8x8xf32> to vector<1xf32>
    %333 = vector.shape_cast %332 : vector<1xf32> to vector<1x1x1xf32>
    %334 = vector.extract %333[0, 0, 0] : f32 from vector<1x1x1xf32>
    %335 = arith.maximumf %330, %334 : f32
    %cst_81 = arith.constant 9.99999968E-21 : f32
    %336 = arith.maximumf %335, %cst_81 : f32
    %cst_82 = arith.constant 1.275000e+02 : f32
    %337 = arith.divf %cst_82, %336 : f32
    %cst_83 = arith.constant 1.000000e+00 : f32
    %338 = arith.divf %cst_83, %337 : f32
    %cst_84 = arith.constant 1.000000e+00 : f32
    %339 = arith.divf %cst_84, %91 : f32
    %340 = arith.mulf %338, %339 : f32
    %341 = vector.broadcast %337 : f32 to vector<8x8xf32>
    %342 = arith.mulf %120, %341 : vector<8x8xf32>
    %343 = math.roundeven %342 : vector<8x8xf32>
    %344 = arith.truncf %343 : vector<8x8xf32> to vector<8x8xbf16>
    %345 = vector.extract_strided_slice %70 {offsets = [0, 0], sizes = [8, 8], strides = [1, 1]} : vector<16x32xf32> to vector<8x8xf32>
    %346 = vector.broadcast %91 : f32 to vector<8x8xf32>
    %347 = arith.mulf %345, %346 : vector<8x8xf32>
    %348 = math.roundeven %347 : vector<8x8xf32>
    %349 = arith.truncf %348 : vector<8x8xf32> to vector<8x8xbf16>
    %cst_85 = arith.constant dense<0.000000e+00> : vector<8x8xf32>
    %350 = tpu.matmul %344, %349, %cst_85 {dimension_numbers = #tpu.dot_dimension_numbers<[1], [0], [0], [1], [0, 0, 1, 1], [], []>} : vector<8x8xbf16>, vector<8x8xbf16>, vector<8x8xf32> -> vector<8x8xf32>
    %351 = vector.broadcast %340 : f32 to vector<8x8xf32>
    %352 = arith.mulf %350, %351 : vector<8x8xf32>
    %c0_86 = arith.constant 0 : index
    %c0_87 = arith.constant 0 : index
    %353 = vector.load %arg18[%c0_86, %c0_87] : memref<16x32xf32, #tpu.memory_space<vmem>>, vector<8x8xf32>
    tpu.vector_store %arg18[%c0_86, %c0_87], %352 {strides = array<i32>} : memref<16x32xf32, #tpu.memory_space<vmem>>, vector<8x8xf32>,
    %354 = vector.broadcast %337 : f32 to vector<8x8xf32>
    %355 = arith.mulf %145, %354 : vector<8x8xf32>
    %356 = math.roundeven %355 : vector<8x8xf32>
    %357 = arith.truncf %356 : vector<8x8xf32> to vector<8x8xbf16>
    %358 = vector.extract_strided_slice %70 {offsets = [0, 8], sizes = [8, 8], strides = [1, 1]} : vector<16x32xf32> to vector<8x8xf32>
    %359 = vector.broadcast %91 : f32 to vector<8x8xf32>
    %360 = arith.mulf %358, %359 : vector<8x8xf32>
    %361 = math.roundeven %360 : vector<8x8xf32>
    %362 = arith.truncf %361 : vector<8x8xf32> to vector<8x8xbf16>
    %cst_88 = arith.constant dense<0.000000e+00> : vector<8x8xf32>
    %363 = tpu.matmul %357, %362, %cst_88 {dimension_numbers = #tpu.dot_dimension_numbers<[1], [0], [0], [1], [0, 0, 1, 1], [], []>} : vector<8x8xbf16>, vector<8x8xbf16>, vector<8x8xf32> -> vector<8x8xf32>
    %364 = vector.broadcast %340 : f32 to vector<8x8xf32>
    %365 = arith.mulf %363, %364 : vector<8x8xf32>
    %c0_89 = arith.constant 0 : index
    %c8 = arith.constant 8 : index
    %366 = vector.load %arg18[%c0_89, %c8] : memref<16x32xf32, #tpu.memory_space<vmem>>, vector<8x8xf32>
    tpu.vector_store %arg18[%c0_89, %c8], %365 {strides = array<i32>} : memref<16x32xf32, #tpu.memory_space<vmem>>, vector<8x8xf32>,
    %367 = vector.broadcast %337 : f32 to vector<8x8xf32>
    %368 = arith.mulf %170, %367 : vector<8x8xf32>
    %369 = math.roundeven %368 : vector<8x8xf32>
    %370 = arith.truncf %369 : vector<8x8xf32> to vector<8x8xbf16>
    %371 = vector.extract_strided_slice %70 {offsets = [0, 16], sizes = [8, 8], strides = [1, 1]} : vector<16x32xf32> to vector<8x8xf32>
    %372 = vector.broadcast %91 : f32 to vector<8x8xf32>
    %373 = arith.mulf %371, %372 : vector<8x8xf32>
    %374 = math.roundeven %373 : vector<8x8xf32>
    %375 = arith.truncf %374 : vector<8x8xf32> to vector<8x8xbf16>
    %cst_90 = arith.constant dense<0.000000e+00> : vector<8x8xf32>
    %376 = tpu.matmul %370, %375, %cst_90 {dimension_numbers = #tpu.dot_dimension_numbers<[1], [0], [0], [1], [0, 0, 1, 1], [], []>} : vector<8x8xbf16>, vector<8x8xbf16>, vector<8x8xf32> -> vector<8x8xf32>
    %377 = vector.broadcast %340 : f32 to vector<8x8xf32>
    %378 = arith.mulf %376, %377 : vector<8x8xf32>
    %c0_91 = arith.constant 0 : index
    %c16 = arith.constant 16 : index
    %379 = vector.load %arg18[%c0_91, %c16] : memref<16x32xf32, #tpu.memory_space<vmem>>, vector<8x8xf32>
    tpu.vector_store %arg18[%c0_91, %c16], %378 {strides = array<i32>} : memref<16x32xf32, #tpu.memory_space<vmem>>, vector<8x8xf32>,
    %380 = vector.broadcast %337 : f32 to vector<8x8xf32>
    %381 = arith.mulf %195, %380 : vector<8x8xf32>
    %382 = math.roundeven %381 : vector<8x8xf32>
    %383 = arith.truncf %382 : vector<8x8xf32> to vector<8x8xbf16>
    %384 = vector.extract_strided_slice %70 {offsets = [0, 24], sizes = [8, 8], strides = [1, 1]} : vector<16x32xf32> to vector<8x8xf32>
    %385 = vector.broadcast %91 : f32 to vector<8x8xf32>
    %386 = arith.mulf %384, %385 : vector<8x8xf32>
    %387 = math.roundeven %386 : vector<8x8xf32>
    %388 = arith.truncf %387 : vector<8x8xf32> to vector<8x8xbf16>
    %cst_92 = arith.constant dense<0.000000e+00> : vector<8x8xf32>
    %389 = tpu.matmul %383, %388, %cst_92 {dimension_numbers = #tpu.dot_dimension_numbers<[1], [0], [0], [1], [0, 0, 1, 1], [], []>} : vector<8x8xbf16>, vector<8x8xbf16>, vector<8x8xf32> -> vector<8x8xf32>
    %390 = vector.broadcast %340 : f32 to vector<8x8xf32>
    %391 = arith.mulf %389, %390 : vector<8x8xf32>
    %c0_93 = arith.constant 0 : index
    %c24 = arith.constant 24 : index
    %392 = vector.load %arg18[%c0_93, %c24] : memref<16x32xf32, #tpu.memory_space<vmem>>, vector<8x8xf32>
    tpu.vector_store %arg18[%c0_93, %c24], %391 {strides = array<i32>} : memref<16x32xf32, #tpu.memory_space<vmem>>, vector<8x8xf32>,
    %393 = vector.broadcast %337 : f32 to vector<8x8xf32>
    %394 = arith.mulf %221, %393 : vector<8x8xf32>
    %395 = math.roundeven %394 : vector<8x8xf32>
    %396 = arith.truncf %395 : vector<8x8xf32> to vector<8x8xbf16>
    %397 = vector.extract_strided_slice %70 {offsets = [8, 0], sizes = [8, 8], strides = [1, 1]} : vector<16x32xf32> to vector<8x8xf32>
    %398 = vector.broadcast %91 : f32 to vector<8x8xf32>
    %399 = arith.mulf %397, %398 : vector<8x8xf32>
    %400 = math.roundeven %399 : vector<8x8xf32>
    %401 = arith.truncf %400 : vector<8x8xf32> to vector<8x8xbf16>
    %cst_94 = arith.constant dense<0.000000e+00> : vector<8x8xf32>
    %402 = tpu.matmul %396, %401, %cst_94 {dimension_numbers = #tpu.dot_dimension_numbers<[1], [0], [0], [1], [0, 0, 1, 1], [], []>} : vector<8x8xbf16>, vector<8x8xbf16>, vector<8x8xf32> -> vector<8x8xf32>
    %403 = vector.broadcast %340 : f32 to vector<8x8xf32>
    %404 = arith.mulf %402, %403 : vector<8x8xf32>
    %c8_95 = arith.constant 8 : index
    %c0_96 = arith.constant 0 : index
    %405 = vector.load %arg18[%c8_95, %c0_96] : memref<16x32xf32, #tpu.memory_space<vmem>>, vector<8x8xf32>
    tpu.vector_store %arg18[%c8_95, %c0_96], %404 {strides = array<i32>} : memref<16x32xf32, #tpu.memory_space<vmem>>, vector<8x8xf32>,
    %406 = vector.broadcast %337 : f32 to vector<8x8xf32>
    %407 = arith.mulf %246, %406 : vector<8x8xf32>
    %408 = math.roundeven %407 : vector<8x8xf32>
    %409 = arith.truncf %408 : vector<8x8xf32> to vector<8x8xbf16>
    %410 = vector.extract_strided_slice %70 {offsets = [8, 8], sizes = [8, 8], strides = [1, 1]} : vector<16x32xf32> to vector<8x8xf32>
    %411 = vector.broadcast %91 : f32 to vector<8x8xf32>
    %412 = arith.mulf %410, %411 : vector<8x8xf32>
    %413 = math.roundeven %412 : vector<8x8xf32>
    %414 = arith.truncf %413 : vector<8x8xf32> to vector<8x8xbf16>
    %cst_97 = arith.constant dense<0.000000e+00> : vector<8x8xf32>
    %415 = tpu.matmul %409, %414, %cst_97 {dimension_numbers = #tpu.dot_dimension_numbers<[1], [0], [0], [1], [0, 0, 1, 1], [], []>} : vector<8x8xbf16>, vector<8x8xbf16>, vector<8x8xf32> -> vector<8x8xf32>
    %416 = vector.broadcast %340 : f32 to vector<8x8xf32>
    %417 = arith.mulf %415, %416 : vector<8x8xf32>
    %c8_98 = arith.constant 8 : index
    %c8_99 = arith.constant 8 : index
    %418 = vector.load %arg18[%c8_98, %c8_99] : memref<16x32xf32, #tpu.memory_space<vmem>>, vector<8x8xf32>
    tpu.vector_store %arg18[%c8_98, %c8_99], %417 {strides = array<i32>} : memref<16x32xf32, #tpu.memory_space<vmem>>, vector<8x8xf32>,
    %419 = vector.broadcast %337 : f32 to vector<8x8xf32>
    %420 = arith.mulf %271, %419 : vector<8x8xf32>
    %421 = math.roundeven %420 : vector<8x8xf32>
    %422 = arith.truncf %421 : vector<8x8xf32> to vector<8x8xbf16>
    %423 = vector.extract_strided_slice %70 {offsets = [8, 16], sizes = [8, 8], strides = [1, 1]} : vector<16x32xf32> to vector<8x8xf32>
    %424 = vector.broadcast %91 : f32 to vector<8x8xf32>
    %425 = arith.mulf %423, %424 : vector<8x8xf32>
    %426 = math.roundeven %425 : vector<8x8xf32>
    %427 = arith.truncf %426 : vector<8x8xf32> to vector<8x8xbf16>
    %cst_100 = arith.constant dense<0.000000e+00> : vector<8x8xf32>
    %428 = tpu.matmul %422, %427, %cst_100 {dimension_numbers = #tpu.dot_dimension_numbers<[1], [0], [0], [1], [0, 0, 1, 1], [], []>} : vector<8x8xbf16>, vector<8x8xbf16>, vector<8x8xf32> -> vector<8x8xf32>
    %429 = vector.broadcast %340 : f32 to vector<8x8xf32>
    %430 = arith.mulf %428, %429 : vector<8x8xf32>
    %c8_101 = arith.constant 8 : index
    %c16_102 = arith.constant 16 : index
    %431 = vector.load %arg18[%c8_101, %c16_102] : memref<16x32xf32, #tpu.memory_space<vmem>>, vector<8x8xf32>
    tpu.vector_store %arg18[%c8_101, %c16_102], %430 {strides = array<i32>} : memref<16x32xf32, #tpu.memory_space<vmem>>, vector<8x8xf32>,
    %432 = vector.broadcast %337 : f32 to vector<8x8xf32>
    %433 = arith.mulf %296, %432 : vector<8x8xf32>
    %434 = math.roundeven %433 : vector<8x8xf32>
    %435 = arith.truncf %434 : vector<8x8xf32> to vector<8x8xbf16>
    %436 = vector.extract_strided_slice %70 {offsets = [8, 24], sizes = [8, 8], strides = [1, 1]} : vector<16x32xf32> to vector<8x8xf32>
    %437 = vector.broadcast %91 : f32 to vector<8x8xf32>
    %438 = arith.mulf %436, %437 : vector<8x8xf32>
    %439 = math.roundeven %438 : vector<8x8xf32>
    %440 = arith.truncf %439 : vector<8x8xf32> to vector<8x8xbf16>
    %cst_103 = arith.constant dense<0.000000e+00> : vector<8x8xf32>
    %441 = tpu.matmul %435, %440, %cst_103 {dimension_numbers = #tpu.dot_dimension_numbers<[1], [0], [0], [1], [0, 0, 1, 1], [], []>} : vector<8x8xbf16>, vector<8x8xbf16>, vector<8x8xf32> -> vector<8x8xf32>
    %442 = vector.broadcast %340 : f32 to vector<8x8xf32>
    %443 = arith.mulf %441, %442 : vector<8x8xf32>
    %c8_104 = arith.constant 8 : index
    %c24_105 = arith.constant 24 : index
    %444 = vector.load %arg18[%c8_104, %c24_105] : memref<16x32xf32, #tpu.memory_space<vmem>>, vector<8x8xf32>
    tpu.vector_store %arg18[%c8_104, %c24_105], %443 {strides = array<i32>} : memref<16x32xf32, #tpu.memory_space<vmem>>, vector<8x8xf32>,
    %c0_106 = arith.constant 0 : index
    %c0_107 = arith.constant 0 : index
    %445 = vector.load %arg18[%c0_106, %c0_107] : memref<16x32xf32, #tpu.memory_space<vmem>>, vector<16x32xf32>
    %446 = math.absf %445 : vector<16x32xf32>
    %447 = vector.shape_cast %446 : vector<16x32xf32> to vector<1x16x32xf32>
    %cst_108 = arith.constant dense<0xFF800000> : vector<1xf32>
    %448 = vector.multi_reduction <maximumf>, %447, %cst_108 [1, 2] : vector<1x16x32xf32> to vector<1xf32>
    %449 = vector.shape_cast %448 : vector<1xf32> to vector<1x1x1xf32>
    %450 = vector.extract %449[0, 0, 0] : f32 from vector<1x1x1xf32>
    %cst_109 = arith.constant 9.99999968E-21 : f32
    %451 = arith.maximumf %450, %cst_109 : f32
    %cst_110 = arith.constant 1.275000e+02 : f32
    %452 = arith.divf %cst_110, %451 : f32
    %c0_111 = arith.constant 0 : index
    %c0_112 = arith.constant 0 : index
    %c0_113 = arith.constant 0 : index
    %453 = vector.load %arg8[%c0_111, %c0_112, %c0_113] : memref<2x32x32xbf16, #tpu.memory_space<vmem>>, vector<1x32x32xbf16>
    %454 = vector.shape_cast %453 : vector<1x32x32xbf16> to vector<32x32xbf16>
    %c0_114 = arith.constant 0 : index
    %c3 = arith.constant 3 : index
    %455 = memref.load %arg16[%c0_114, %c3] : memref<2x6xf32, #tpu.memory_space<smem>>
    %456 = vector.broadcast %452 : f32 to vector<16x32xf32>
    %457 = arith.mulf %445, %456 : vector<16x32xf32>
    %458 = math.roundeven %457 : vector<16x32xf32>
    %459 = arith.truncf %458 : vector<16x32xf32> to vector<16x32xbf16>
    %cst_115 = arith.constant dense<0.000000e+00> : vector<16x32xf32>
    %460 = tpu.matmul %459, %454, %cst_115 {dimension_numbers = #tpu.dot_dimension_numbers<[1], [0], [0], [1], [0, 0, 1, 1], [], []>} : vector<16x32xbf16>, vector<32x32xbf16>, vector<16x32xf32> -> vector<16x32xf32>
    %cst_116 = arith.constant 1.000000e+00 : f32
    %461 = arith.divf %cst_116, %452 : f32
    %462 = arith.mulf %461, %455 : f32
    %463 = vector.broadcast %462 : f32 to vector<16x32xf32>
    %464 = arith.mulf %460, %463 : vector<16x32xf32>
    %c0_117 = arith.constant 0 : index
    %c0_118 = arith.constant 0 : index
    %c0_119 = arith.constant 0 : index
    %465 = vector.load %arg9[%c0_117, %c0_118, %c0_119] : memref<2x1x32xf32, #tpu.memory_space<vmem>>, vector<1x1x32xf32>
    %466 = vector.shape_cast %465 : vector<1x1x32xf32> to vector<1x32xf32>
    %467 = vector.broadcast %466 : vector<1x32xf32> to vector<16x32xf32>
    %468 = arith.addf %464, %467 : vector<16x32xf32>
    %469 = arith.addf %0, %468 : vector<16x32xf32>
    %c0_120 = arith.constant 0 : index
    %c0_121 = arith.constant 0 : index
    %c0_122 = arith.constant 0 : index
    %470 = vector.load %arg4[%c0_120, %c0_121, %c0_122] : memref<2x1x32xf32, #tpu.memory_space<vmem>>, vector<1x1x32xf32>
    %471 = vector.shape_cast %470 : vector<1x1x32xf32> to vector<1x32xf32>
    %c0_123 = arith.constant 0 : index
    %c0_124 = arith.constant 0 : index
    %c0_125 = arith.constant 0 : index
    %472 = vector.load %arg5[%c0_123, %c0_124, %c0_125] : memref<2x1x32xf32, #tpu.memory_space<vmem>>, vector<1x1x32xf32>
    %473 = vector.shape_cast %472 : vector<1x1x32xf32> to vector<1x32xf32>
    %cst_126 = arith.constant dense<0.000000e+00> : vector<16xf32>
    %474 = vector.multi_reduction <add>, %469, %cst_126 [1] : vector<16x32xf32> to vector<16xf32>
    %475 = vector.shape_cast %474 : vector<16xf32> to vector<16x1xf32>
    %cst_127 = arith.constant 3.200000e+01 : f32
    %476 = vector.broadcast %cst_127 : f32 to vector<16x1xf32>
    %477 = arith.divf %475, %476 : vector<16x1xf32>
    %478 = vector.broadcast %477 : vector<16x1xf32> to vector<16x32xf32>
    %479 = arith.subf %469, %478 : vector<16x32xf32>
    %480 = arith.mulf %479, %479 : vector<16x32xf32>
    %cst_128 = arith.constant dense<0.000000e+00> : vector<16xf32>
    %481 = vector.multi_reduction <add>, %480, %cst_128 [1] : vector<16x32xf32> to vector<16xf32>
    %482 = vector.shape_cast %481 : vector<16xf32> to vector<16x1xf32>
    %cst_129 = arith.constant 3.200000e+01 : f32
    %483 = vector.broadcast %cst_129 : f32 to vector<16x1xf32>
    %484 = arith.divf %482, %483 : vector<16x1xf32>
    %cst_130 = arith.constant 9.99999996E-13 : f32
    %485 = vector.broadcast %cst_130 : f32 to vector<16x1xf32>
    %486 = arith.addf %484, %485 : vector<16x1xf32>
    %487 = math.sqrt %486 : vector<16x1xf32>
    %488 = vector.broadcast %487 : vector<16x1xf32> to vector<16x32xf32>
    %489 = arith.divf %479, %488 : vector<16x32xf32>
    %490 = vector.broadcast %471 : vector<1x32xf32> to vector<16x32xf32>
    %491 = arith.mulf %489, %490 : vector<16x32xf32>
    %492 = vector.broadcast %473 : vector<1x32xf32> to vector<16x32xf32>
    %493 = arith.addf %491, %492 : vector<16x32xf32>
    %494 = math.absf %493 : vector<16x32xf32>
    %495 = vector.shape_cast %494 : vector<16x32xf32> to vector<1x16x32xf32>
    %cst_131 = arith.constant dense<0xFF800000> : vector<1xf32>
    %496 = vector.multi_reduction <maximumf>, %495, %cst_131 [1, 2] : vector<1x16x32xf32> to vector<1xf32>
    %497 = vector.shape_cast %496 : vector<1xf32> to vector<1x1x1xf32>
    %498 = vector.extract %497[0, 0, 0] : f32 from vector<1x1x1xf32>
    %cst_132 = arith.constant 9.99999968E-21 : f32
    %499 = arith.maximumf %498, %cst_132 : f32
    %cst_133 = arith.constant 1.275000e+02 : f32
    %500 = arith.divf %cst_133, %499 : f32
    %c0_134 = arith.constant 0 : index
    %c0_135 = arith.constant 0 : index
    %c0_136 = arith.constant 0 : index
    %501 = vector.load %arg10[%c0_134, %c0_135, %c0_136] : memref<2x32x128xbf16, #tpu.memory_space<vmem>>, vector<1x32x128xbf16>
    %502 = vector.shape_cast %501 : vector<1x32x128xbf16> to vector<32x128xbf16>
    %c0_137 = arith.constant 0 : index
    %c4 = arith.constant 4 : index
    %503 = memref.load %arg16[%c0_137, %c4] : memref<2x6xf32, #tpu.memory_space<smem>>
    %504 = vector.broadcast %500 : f32 to vector<16x32xf32>
    %505 = arith.mulf %493, %504 : vector<16x32xf32>
    %506 = math.roundeven %505 : vector<16x32xf32>
    %507 = arith.truncf %506 : vector<16x32xf32> to vector<16x32xbf16>
    %cst_138 = arith.constant dense<0.000000e+00> : vector<16x128xf32>
    %508 = tpu.matmul %507, %502, %cst_138 {dimension_numbers = #tpu.dot_dimension_numbers<[1], [0], [0], [1], [0, 0, 1, 1], [], []>} : vector<16x32xbf16>, vector<32x128xbf16>, vector<16x128xf32> -> vector<16x128xf32>
    %cst_139 = arith.constant 1.000000e+00 : f32
    %509 = arith.divf %cst_139, %500 : f32
    %510 = arith.mulf %509, %503 : f32
    %511 = vector.broadcast %510 : f32 to vector<16x128xf32>
    %512 = arith.mulf %508, %511 : vector<16x128xf32>
    %c0_140 = arith.constant 0 : index
    %c0_141 = arith.constant 0 : index
    %c0_142 = arith.constant 0 : index
    %513 = vector.load %arg11[%c0_140, %c0_141, %c0_142] : memref<2x1x128xf32, #tpu.memory_space<vmem>>, vector<1x1x128xf32>
    %514 = vector.shape_cast %513 : vector<1x1x128xf32> to vector<1x128xf32>
    %515 = vector.broadcast %514 : vector<1x128xf32> to vector<16x128xf32>
    %516 = arith.addf %512, %515 : vector<16x128xf32>
    %cst_143 = arith.constant 5.000000e-01 : f32
    %517 = vector.broadcast %cst_143 : f32 to vector<16x128xf32>
    %518 = arith.mulf %517, %516 : vector<16x128xf32>
    %cst_144 = arith.constant 0.707106769 : f32
    %519 = vector.broadcast %cst_144 : f32 to vector<16x128xf32>
    %520 = arith.mulf %516, %519 : vector<16x128xf32>
    %521 = math.erf %520 : vector<16x128xf32>
    %cst_145 = arith.constant 1.000000e+00 : f32
    %522 = vector.broadcast %cst_145 : f32 to vector<16x128xf32>
    %523 = arith.addf %522, %521 : vector<16x128xf32>
    %524 = arith.mulf %518, %523 : vector<16x128xf32>
    %525 = math.absf %524 : vector<16x128xf32>
    %526 = vector.shape_cast %525 : vector<16x128xf32> to vector<1x16x128xf32>
    %cst_146 = arith.constant dense<0xFF800000> : vector<1xf32>
    %527 = vector.multi_reduction <maximumf>, %526, %cst_146 [1, 2] : vector<1x16x128xf32> to vector<1xf32>
    %528 = vector.shape_cast %527 : vector<1xf32> to vector<1x1x1xf32>
    %529 = vector.extract %528[0, 0, 0] : f32 from vector<1x1x1xf32>
    %cst_147 = arith.constant 9.99999968E-21 : f32
    %530 = arith.maximumf %529, %cst_147 : f32
    %cst_148 = arith.constant 1.275000e+02 : f32
    %531 = arith.divf %cst_148, %530 : f32
    %c0_149 = arith.constant 0 : index
    %c0_150 = arith.constant 0 : index
    %c0_151 = arith.constant 0 : index
    %532 = vector.load %arg12[%c0_149, %c0_150, %c0_151] : memref<2x128x32xbf16, #tpu.memory_space<vmem>>, vector<1x128x32xbf16>
    %533 = vector.shape_cast %532 : vector<1x128x32xbf16> to vector<128x32xbf16>
    %c0_152 = arith.constant 0 : index
    %c5 = arith.constant 5 : index
    %534 = memref.load %arg16[%c0_152, %c5] : memref<2x6xf32, #tpu.memory_space<smem>>
    %535 = vector.broadcast %531 : f32 to vector<16x128xf32>
    %536 = arith.mulf %524, %535 : vector<16x128xf32>
    %537 = math.roundeven %536 : vector<16x128xf32>
    %538 = arith.truncf %537 : vector<16x128xf32> to vector<16x128xbf16>
    %cst_153 = arith.constant dense<0.000000e+00> : vector<16x32xf32>
    %539 = tpu.matmul %538, %533, %cst_153 {dimension_numbers = #tpu.dot_dimension_numbers<[1], [0], [0], [1], [0, 0, 1, 1], [], []>} : vector<16x128xbf16>, vector<128x32xbf16>, vector<16x32xf32> -> vector<16x32xf32>
    %cst_154 = arith.constant 1.000000e+00 : f32
    %540 = arith.divf %cst_154, %531 : f32
    %541 = arith.mulf %540, %534 : f32
    %542 = vector.broadcast %541 : f32 to vector<16x32xf32>
    %543 = arith.mulf %539, %542 : vector<16x32xf32>
    %c0_155 = arith.constant 0 : index
    %c0_156 = arith.constant 0 : index
    %c0_157 = arith.constant 0 : index
    %544 = vector.load %arg13[%c0_155, %c0_156, %c0_157] : memref<2x1x32xf32, #tpu.memory_space<vmem>>, vector<1x1x32xf32>
    %545 = vector.shape_cast %544 : vector<1x1x32xf32> to vector<1x32xf32>
    %546 = vector.broadcast %545 : vector<1x32xf32> to vector<16x32xf32>
    %547 = arith.addf %543, %546 : vector<16x32xf32>
    %548 = arith.addf %469, %547 : vector<16x32xf32>
    %c1_158 = arith.constant 1 : index
    %c0_159 = arith.constant 0 : index
    %c0_160 = arith.constant 0 : index
    %549 = vector.load %arg2[%c1_158, %c0_159, %c0_160] : memref<2x1x32xf32, #tpu.memory_space<vmem>>, vector<1x1x32xf32>
    %550 = vector.shape_cast %549 : vector<1x1x32xf32> to vector<1x32xf32>
    %c1_161 = arith.constant 1 : index
    %c0_162 = arith.constant 0 : index
    %c0_163 = arith.constant 0 : index
    %551 = vector.load %arg3[%c1_161, %c0_162, %c0_163] : memref<2x1x32xf32, #tpu.memory_space<vmem>>, vector<1x1x32xf32>
    %552 = vector.shape_cast %551 : vector<1x1x32xf32> to vector<1x32xf32>
    %cst_164 = arith.constant dense<0.000000e+00> : vector<16xf32>
    %553 = vector.multi_reduction <add>, %548, %cst_164 [1] : vector<16x32xf32> to vector<16xf32>
    %554 = vector.shape_cast %553 : vector<16xf32> to vector<16x1xf32>
    %cst_165 = arith.constant 3.200000e+01 : f32
    %555 = vector.broadcast %cst_165 : f32 to vector<16x1xf32>
    %556 = arith.divf %554, %555 : vector<16x1xf32>
    %557 = vector.broadcast %556 : vector<16x1xf32> to vector<16x32xf32>
    %558 = arith.subf %548, %557 : vector<16x32xf32>
    %559 = arith.mulf %558, %558 : vector<16x32xf32>
    %cst_166 = arith.constant dense<0.000000e+00> : vector<16xf32>
    %560 = vector.multi_reduction <add>, %559, %cst_166 [1] : vector<16x32xf32> to vector<16xf32>
    %561 = vector.shape_cast %560 : vector<16xf32> to vector<16x1xf32>
    %cst_167 = arith.constant 3.200000e+01 : f32
    %562 = vector.broadcast %cst_167 : f32 to vector<16x1xf32>
    %563 = arith.divf %561, %562 : vector<16x1xf32>
    %cst_168 = arith.constant 9.99999996E-13 : f32
    %564 = vector.broadcast %cst_168 : f32 to vector<16x1xf32>
    %565 = arith.addf %563, %564 : vector<16x1xf32>
    %566 = math.sqrt %565 : vector<16x1xf32>
    %567 = vector.broadcast %566 : vector<16x1xf32> to vector<16x32xf32>
    %568 = arith.divf %558, %567 : vector<16x32xf32>
    %569 = vector.broadcast %550 : vector<1x32xf32> to vector<16x32xf32>
    %570 = arith.mulf %568, %569 : vector<16x32xf32>
    %571 = vector.broadcast %552 : vector<1x32xf32> to vector<16x32xf32>
    %572 = arith.addf %570, %571 : vector<16x32xf32>
    %573 = math.absf %572 : vector<16x32xf32>
    %574 = vector.shape_cast %573 : vector<16x32xf32> to vector<1x16x32xf32>
    %cst_169 = arith.constant dense<0xFF800000> : vector<1xf32>
    %575 = vector.multi_reduction <maximumf>, %574, %cst_169 [1, 2] : vector<1x16x32xf32> to vector<1xf32>
    %576 = vector.shape_cast %575 : vector<1xf32> to vector<1x1x1xf32>
    %577 = vector.extract %576[0, 0, 0] : f32 from vector<1x1x1xf32>
    %cst_170 = arith.constant 9.99999968E-21 : f32
    %578 = arith.maximumf %577, %cst_170 : f32
    %cst_171 = arith.constant 1.275000e+02 : f32
    %579 = arith.divf %cst_171, %578 : f32
    %580 = vector.broadcast %579 : f32 to vector<16x32xf32>
    %581 = arith.mulf %572, %580 : vector<16x32xf32>
    %582 = math.roundeven %581 : vector<16x32xf32>
    %583 = arith.truncf %582 : vector<16x32xf32> to vector<16x32xbf16>
    %c1_172 = arith.constant 1 : index
    %c0_173 = arith.constant 0 : index
    %c0_174 = arith.constant 0 : index
    %584 = vector.load %arg6[%c1_172, %c0_173, %c0_174] : memref<2x32x96xbf16, #tpu.memory_space<vmem>>, vector<1x32x96xbf16>
    %585 = vector.shape_cast %584 : vector<1x32x96xbf16> to vector<32x96xbf16>
    %cst_175 = arith.constant dense<0.000000e+00> : vector<16x96xf32>
    %586 = tpu.matmul %583, %585, %cst_175 {dimension_numbers = #tpu.dot_dimension_numbers<[1], [0], [0], [1], [0, 0, 1, 1], [], []>} : vector<16x32xbf16>, vector<32x96xbf16>, vector<16x96xf32> -> vector<16x96xf32>
    %cst_176 = arith.constant 1.000000e+00 : f32
    %587 = arith.divf %cst_176, %579 : f32
    %c1_177 = arith.constant 1 : index
    %c0_178 = arith.constant 0 : index
    %c0_179 = arith.constant 0 : index
    %588 = vector.load %arg7[%c1_177, %c0_178, %c0_179] : memref<2x1x96xf32, #tpu.memory_space<vmem>>, vector<1x1x96xf32>
    %589 = vector.shape_cast %588 : vector<1x1x96xf32> to vector<1x96xf32>
    %590 = vector.extract_strided_slice %586 {offsets = [0, 0], sizes = [16, 32], strides = [1, 1]} : vector<16x96xf32> to vector<16x32xf32>
    %c1_180 = arith.constant 1 : index
    %c0_181 = arith.constant 0 : index
    %591 = memref.load %arg16[%c1_180, %c0_181] : memref<2x6xf32, #tpu.memory_space<smem>>
    %592 = arith.mulf %587, %591 : f32
    %593 = vector.broadcast %592 : f32 to vector<16x32xf32>
    %594 = arith.mulf %590, %593 : vector<16x32xf32>
    %595 = vector.extract_strided_slice %589 {offsets = [0, 0], sizes = [1, 32], strides = [1, 1]} : vector<1x96xf32> to vector<1x32xf32>
    %596 = vector.broadcast %595 : vector<1x32xf32> to vector<16x32xf32>
    %597 = arith.addf %594, %596 : vector<16x32xf32>
    %598 = vector.extract_strided_slice %586 {offsets = [0, 32], sizes = [16, 32], strides = [1, 1]} : vector<16x96xf32> to vector<16x32xf32>
    %c1_182 = arith.constant 1 : index
    %c1_183 = arith.constant 1 : index
    %599 = memref.load %arg16[%c1_182, %c1_183] : memref<2x6xf32, #tpu.memory_space<smem>>
    %600 = arith.mulf %587, %599 : f32
    %601 = vector.broadcast %600 : f32 to vector<16x32xf32>
    %602 = arith.mulf %598, %601 : vector<16x32xf32>
    %603 = vector.extract_strided_slice %589 {offsets = [0, 32], sizes = [1, 32], strides = [1, 1]} : vector<1x96xf32> to vector<1x32xf32>
    %604 = vector.broadcast %603 : vector<1x32xf32> to vector<16x32xf32>
    %605 = arith.addf %602, %604 : vector<16x32xf32>
    %606 = vector.extract_strided_slice %586 {offsets = [0, 64], sizes = [16, 32], strides = [1, 1]} : vector<16x96xf32> to vector<16x32xf32>
    %c1_184 = arith.constant 1 : index
    %c2_185 = arith.constant 2 : index
    %607 = memref.load %arg16[%c1_184, %c2_185] : memref<2x6xf32, #tpu.memory_space<smem>>
    %608 = arith.mulf %587, %607 : f32
    %609 = vector.broadcast %608 : f32 to vector<16x32xf32>
    %610 = arith.mulf %606, %609 : vector<16x32xf32>
    %611 = vector.extract_strided_slice %589 {offsets = [0, 64], sizes = [1, 32], strides = [1, 1]} : vector<1x96xf32> to vector<1x32xf32>
    %612 = vector.broadcast %611 : vector<1x32xf32> to vector<16x32xf32>
    %613 = arith.addf %610, %612 : vector<16x32xf32>
    %614 = math.absf %597 : vector<16x32xf32>
    %615 = vector.shape_cast %614 : vector<16x32xf32> to vector<1x16x32xf32>
    %cst_186 = arith.constant dense<0xFF800000> : vector<1xf32>
    %616 = vector.multi_reduction <maximumf>, %615, %cst_186 [1, 2] : vector<1x16x32xf32> to vector<1xf32>
    %617 = vector.shape_cast %616 : vector<1xf32> to vector<1x1x1xf32>
    %618 = vector.extract %617[0, 0, 0] : f32 from vector<1x1x1xf32>
    %cst_187 = arith.constant 9.99999968E-21 : f32
    %619 = arith.maximumf %618, %cst_187 : f32
    %cst_188 = arith.constant 1.275000e+02 : f32
    %620 = arith.divf %cst_188, %619 : f32
    %621 = math.absf %605 : vector<16x32xf32>
    %622 = vector.shape_cast %621 : vector<16x32xf32> to vector<1x16x32xf32>
    %cst_189 = arith.constant dense<0xFF800000> : vector<1xf32>
    %623 = vector.multi_reduction <maximumf>, %622, %cst_189 [1, 2] : vector<1x16x32xf32> to vector<1xf32>
    %624 = vector.shape_cast %623 : vector<1xf32> to vector<1x1x1xf32>
    %625 = vector.extract %624[0, 0, 0] : f32 from vector<1x1x1xf32>
    %cst_190 = arith.constant 9.99999968E-21 : f32
    %626 = arith.maximumf %625, %cst_190 : f32
    %cst_191 = arith.constant 1.275000e+02 : f32
    %627 = arith.divf %cst_191, %626 : f32
    %628 = math.absf %613 : vector<16x32xf32>
    %629 = vector.shape_cast %628 : vector<16x32xf32> to vector<1x16x32xf32>
    %cst_192 = arith.constant dense<0xFF800000> : vector<1xf32>
    %630 = vector.multi_reduction <maximumf>, %629, %cst_192 [1, 2] : vector<1x16x32xf32> to vector<1xf32>
    %631 = vector.shape_cast %630 : vector<1xf32> to vector<1x1x1xf32>
    %632 = vector.extract %631[0, 0, 0] : f32 from vector<1x1x1xf32>
    %cst_193 = arith.constant 9.99999968E-21 : f32
    %633 = arith.maximumf %632, %cst_193 : f32
    %cst_194 = arith.constant 1.275000e+02 : f32
    %634 = arith.divf %cst_194, %633 : f32
    %cst_195 = arith.constant 1.000000e+00 : f32
    %635 = arith.divf %cst_195, %620 : f32
    %cst_196 = arith.constant 1.000000e+00 : f32
    %636 = arith.divf %cst_196, %627 : f32
    %637 = arith.mulf %635, %636 : f32
    %638 = vector.extract_strided_slice %5 {offsets = [0, 0], sizes = [1, 8], strides = [1, 1]} : vector<2x8xf32> to vector<1x8xf32>
    %639 = vector.extract_strided_slice %597 {offsets = [0, 0], sizes = [8, 8], strides = [1, 1]} : vector<16x32xf32> to vector<8x8xf32>
    %640 = vector.broadcast %620 : f32 to vector<8x8xf32>
    %641 = arith.mulf %639, %640 : vector<8x8xf32>
    %642 = math.roundeven %641 : vector<8x8xf32>
    %643 = arith.truncf %642 : vector<8x8xf32> to vector<8x8xbf16>
    %644 = vector.extract_strided_slice %605 {offsets = [0, 0], sizes = [8, 8], strides = [1, 1]} : vector<16x32xf32> to vector<8x8xf32>
    %645 = vector.broadcast %627 : f32 to vector<8x8xf32>
    %646 = arith.mulf %644, %645 : vector<8x8xf32>
    %647 = math.roundeven %646 : vector<8x8xf32>
    %648 = arith.truncf %647 : vector<8x8xf32> to vector<8x8xbf16>
    %cst_197 = arith.constant dense<0.000000e+00> : vector<8x8xf32>
    %649 = tpu.matmul %643, %648, %cst_197 {dimension_numbers = #tpu.dot_dimension_numbers<[1], [1], [0], [0], [0, 0, 1, 0], [], []>} : vector<8x8xbf16>, vector<8x8xbf16>, vector<8x8xf32> -> vector<8x8xf32>
    %cst_198 = arith.constant 0.353553385 : f32
    %650 = arith.mulf %637, %cst_198 : f32
    %651 = vector.broadcast %650 : f32 to vector<8x8xf32>
    %652 = arith.mulf %649, %651 : vector<8x8xf32>
    %653 = vector.broadcast %638 : vector<1x8xf32> to vector<8x8xf32>
    %654 = arith.addf %652, %653 : vector<8x8xf32>
    %cst_199 = arith.constant dense<0xFF800000> : vector<8xf32>
    %655 = vector.multi_reduction <maximumf>, %654, %cst_199 [1] : vector<8x8xf32> to vector<8xf32>
    %656 = vector.shape_cast %655 : vector<8xf32> to vector<8x1xf32>
    %657 = vector.broadcast %656 : vector<8x1xf32> to vector<8x8xf32>
    %658 = arith.subf %654, %657 : vector<8x8xf32>
    %659 = math.exp %658 : vector<8x8xf32>
    %cst_200 = arith.constant dense<0.000000e+00> : vector<8xf32>
    %660 = vector.multi_reduction <add>, %659, %cst_200 [1] : vector<8x8xf32> to vector<8xf32>
    %661 = vector.shape_cast %660 : vector<8xf32> to vector<8x1xf32>
    %662 = vector.broadcast %661 : vector<8x1xf32> to vector<8x8xf32>
    %663 = arith.divf %659, %662 : vector<8x8xf32>
    %664 = vector.extract_strided_slice %597 {offsets = [0, 8], sizes = [8, 8], strides = [1, 1]} : vector<16x32xf32> to vector<8x8xf32>
    %665 = vector.broadcast %620 : f32 to vector<8x8xf32>
    %666 = arith.mulf %664, %665 : vector<8x8xf32>
    %667 = math.roundeven %666 : vector<8x8xf32>
    %668 = arith.truncf %667 : vector<8x8xf32> to vector<8x8xbf16>
    %669 = vector.extract_strided_slice %605 {offsets = [0, 8], sizes = [8, 8], strides = [1, 1]} : vector<16x32xf32> to vector<8x8xf32>
    %670 = vector.broadcast %627 : f32 to vector<8x8xf32>
    %671 = arith.mulf %669, %670 : vector<8x8xf32>
    %672 = math.roundeven %671 : vector<8x8xf32>
    %673 = arith.truncf %672 : vector<8x8xf32> to vector<8x8xbf16>
    %cst_201 = arith.constant dense<0.000000e+00> : vector<8x8xf32>
    %674 = tpu.matmul %668, %673, %cst_201 {dimension_numbers = #tpu.dot_dimension_numbers<[1], [1], [0], [0], [0, 0, 1, 0], [], []>} : vector<8x8xbf16>, vector<8x8xbf16>, vector<8x8xf32> -> vector<8x8xf32>
    %cst_202 = arith.constant 0.353553385 : f32
    %675 = arith.mulf %637, %cst_202 : f32
    %676 = vector.broadcast %675 : f32 to vector<8x8xf32>
    %677 = arith.mulf %674, %676 : vector<8x8xf32>
    %678 = vector.broadcast %638 : vector<1x8xf32> to vector<8x8xf32>
    %679 = arith.addf %677, %678 : vector<8x8xf32>
    %cst_203 = arith.constant dense<0xFF800000> : vector<8xf32>
    %680 = vector.multi_reduction <maximumf>, %679, %cst_203 [1] : vector<8x8xf32> to vector<8xf32>
    %681 = vector.shape_cast %680 : vector<8xf32> to vector<8x1xf32>
    %682 = vector.broadcast %681 : vector<8x1xf32> to vector<8x8xf32>
    %683 = arith.subf %679, %682 : vector<8x8xf32>
    %684 = math.exp %683 : vector<8x8xf32>
    %cst_204 = arith.constant dense<0.000000e+00> : vector<8xf32>
    %685 = vector.multi_reduction <add>, %684, %cst_204 [1] : vector<8x8xf32> to vector<8xf32>
    %686 = vector.shape_cast %685 : vector<8xf32> to vector<8x1xf32>
    %687 = vector.broadcast %686 : vector<8x1xf32> to vector<8x8xf32>
    %688 = arith.divf %684, %687 : vector<8x8xf32>
    %689 = vector.extract_strided_slice %597 {offsets = [0, 16], sizes = [8, 8], strides = [1, 1]} : vector<16x32xf32> to vector<8x8xf32>
    %690 = vector.broadcast %620 : f32 to vector<8x8xf32>
    %691 = arith.mulf %689, %690 : vector<8x8xf32>
    %692 = math.roundeven %691 : vector<8x8xf32>
    %693 = arith.truncf %692 : vector<8x8xf32> to vector<8x8xbf16>
    %694 = vector.extract_strided_slice %605 {offsets = [0, 16], sizes = [8, 8], strides = [1, 1]} : vector<16x32xf32> to vector<8x8xf32>
    %695 = vector.broadcast %627 : f32 to vector<8x8xf32>
    %696 = arith.mulf %694, %695 : vector<8x8xf32>
    %697 = math.roundeven %696 : vector<8x8xf32>
    %698 = arith.truncf %697 : vector<8x8xf32> to vector<8x8xbf16>
    %cst_205 = arith.constant dense<0.000000e+00> : vector<8x8xf32>
    %699 = tpu.matmul %693, %698, %cst_205 {dimension_numbers = #tpu.dot_dimension_numbers<[1], [1], [0], [0], [0, 0, 1, 0], [], []>} : vector<8x8xbf16>, vector<8x8xbf16>, vector<8x8xf32> -> vector<8x8xf32>
    %cst_206 = arith.constant 0.353553385 : f32
    %700 = arith.mulf %637, %cst_206 : f32
    %701 = vector.broadcast %700 : f32 to vector<8x8xf32>
    %702 = arith.mulf %699, %701 : vector<8x8xf32>
    %703 = vector.broadcast %638 : vector<1x8xf32> to vector<8x8xf32>
    %704 = arith.addf %702, %703 : vector<8x8xf32>
    %cst_207 = arith.constant dense<0xFF800000> : vector<8xf32>
    %705 = vector.multi_reduction <maximumf>, %704, %cst_207 [1] : vector<8x8xf32> to vector<8xf32>
    %706 = vector.shape_cast %705 : vector<8xf32> to vector<8x1xf32>
    %707 = vector.broadcast %706 : vector<8x1xf32> to vector<8x8xf32>
    %708 = arith.subf %704, %707 : vector<8x8xf32>
    %709 = math.exp %708 : vector<8x8xf32>
    %cst_208 = arith.constant dense<0.000000e+00> : vector<8xf32>
    %710 = vector.multi_reduction <add>, %709, %cst_208 [1] : vector<8x8xf32> to vector<8xf32>
    %711 = vector.shape_cast %710 : vector<8xf32> to vector<8x1xf32>
    %712 = vector.broadcast %711 : vector<8x1xf32> to vector<8x8xf32>
    %713 = arith.divf %709, %712 : vector<8x8xf32>
    %714 = vector.extract_strided_slice %597 {offsets = [0, 24], sizes = [8, 8], strides = [1, 1]} : vector<16x32xf32> to vector<8x8xf32>
    %715 = vector.broadcast %620 : f32 to vector<8x8xf32>
    %716 = arith.mulf %714, %715 : vector<8x8xf32>
    %717 = math.roundeven %716 : vector<8x8xf32>
    %718 = arith.truncf %717 : vector<8x8xf32> to vector<8x8xbf16>
    %719 = vector.extract_strided_slice %605 {offsets = [0, 24], sizes = [8, 8], strides = [1, 1]} : vector<16x32xf32> to vector<8x8xf32>
    %720 = vector.broadcast %627 : f32 to vector<8x8xf32>
    %721 = arith.mulf %719, %720 : vector<8x8xf32>
    %722 = math.roundeven %721 : vector<8x8xf32>
    %723 = arith.truncf %722 : vector<8x8xf32> to vector<8x8xbf16>
    %cst_209 = arith.constant dense<0.000000e+00> : vector<8x8xf32>
    %724 = tpu.matmul %718, %723, %cst_209 {dimension_numbers = #tpu.dot_dimension_numbers<[1], [1], [0], [0], [0, 0, 1, 0], [], []>} : vector<8x8xbf16>, vector<8x8xbf16>, vector<8x8xf32> -> vector<8x8xf32>
    %cst_210 = arith.constant 0.353553385 : f32
    %725 = arith.mulf %637, %cst_210 : f32
    %726 = vector.broadcast %725 : f32 to vector<8x8xf32>
    %727 = arith.mulf %724, %726 : vector<8x8xf32>
    %728 = vector.broadcast %638 : vector<1x8xf32> to vector<8x8xf32>
    %729 = arith.addf %727, %728 : vector<8x8xf32>
    %cst_211 = arith.constant dense<0xFF800000> : vector<8xf32>
    %730 = vector.multi_reduction <maximumf>, %729, %cst_211 [1] : vector<8x8xf32> to vector<8xf32>
    %731 = vector.shape_cast %730 : vector<8xf32> to vector<8x1xf32>
    %732 = vector.broadcast %731 : vector<8x1xf32> to vector<8x8xf32>
    %733 = arith.subf %729, %732 : vector<8x8xf32>
    %734 = math.exp %733 : vector<8x8xf32>
    %cst_212 = arith.constant dense<0.000000e+00> : vector<8xf32>
    %735 = vector.multi_reduction <add>, %734, %cst_212 [1] : vector<8x8xf32> to vector<8xf32>
    %736 = vector.shape_cast %735 : vector<8xf32> to vector<8x1xf32>
    %737 = vector.broadcast %736 : vector<8x1xf32> to vector<8x8xf32>
    %738 = arith.divf %734, %737 : vector<8x8xf32>
    %739 = vector.extract_strided_slice %5 {offsets = [1, 0], sizes = [1, 8], strides = [1, 1]} : vector<2x8xf32> to vector<1x8xf32>
    %740 = vector.extract_strided_slice %597 {offsets = [8, 0], sizes = [8, 8], strides = [1, 1]} : vector<16x32xf32> to vector<8x8xf32>
    %741 = vector.broadcast %620 : f32 to vector<8x8xf32>
    %742 = arith.mulf %740, %741 : vector<8x8xf32>
    %743 = math.roundeven %742 : vector<8x8xf32>
    %744 = arith.truncf %743 : vector<8x8xf32> to vector<8x8xbf16>
    %745 = vector.extract_strided_slice %605 {offsets = [8, 0], sizes = [8, 8], strides = [1, 1]} : vector<16x32xf32> to vector<8x8xf32>
    %746 = vector.broadcast %627 : f32 to vector<8x8xf32>
    %747 = arith.mulf %745, %746 : vector<8x8xf32>
    %748 = math.roundeven %747 : vector<8x8xf32>
    %749 = arith.truncf %748 : vector<8x8xf32> to vector<8x8xbf16>
    %cst_213 = arith.constant dense<0.000000e+00> : vector<8x8xf32>
    %750 = tpu.matmul %744, %749, %cst_213 {dimension_numbers = #tpu.dot_dimension_numbers<[1], [1], [0], [0], [0, 0, 1, 0], [], []>} : vector<8x8xbf16>, vector<8x8xbf16>, vector<8x8xf32> -> vector<8x8xf32>
    %cst_214 = arith.constant 0.353553385 : f32
    %751 = arith.mulf %637, %cst_214 : f32
    %752 = vector.broadcast %751 : f32 to vector<8x8xf32>
    %753 = arith.mulf %750, %752 : vector<8x8xf32>
    %754 = vector.broadcast %739 : vector<1x8xf32> to vector<8x8xf32>
    %755 = arith.addf %753, %754 : vector<8x8xf32>
    %cst_215 = arith.constant dense<0xFF800000> : vector<8xf32>
    %756 = vector.multi_reduction <maximumf>, %755, %cst_215 [1] : vector<8x8xf32> to vector<8xf32>
    %757 = vector.shape_cast %756 : vector<8xf32> to vector<8x1xf32>
    %758 = vector.broadcast %757 : vector<8x1xf32> to vector<8x8xf32>
    %759 = arith.subf %755, %758 : vector<8x8xf32>
    %760 = math.exp %759 : vector<8x8xf32>
    %cst_216 = arith.constant dense<0.000000e+00> : vector<8xf32>
    %761 = vector.multi_reduction <add>, %760, %cst_216 [1] : vector<8x8xf32> to vector<8xf32>
    %762 = vector.shape_cast %761 : vector<8xf32> to vector<8x1xf32>
    %763 = vector.broadcast %762 : vector<8x1xf32> to vector<8x8xf32>
    %764 = arith.divf %760, %763 : vector<8x8xf32>
    %765 = vector.extract_strided_slice %597 {offsets = [8, 8], sizes = [8, 8], strides = [1, 1]} : vector<16x32xf32> to vector<8x8xf32>
    %766 = vector.broadcast %620 : f32 to vector<8x8xf32>
    %767 = arith.mulf %765, %766 : vector<8x8xf32>
    %768 = math.roundeven %767 : vector<8x8xf32>
    %769 = arith.truncf %768 : vector<8x8xf32> to vector<8x8xbf16>
    %770 = vector.extract_strided_slice %605 {offsets = [8, 8], sizes = [8, 8], strides = [1, 1]} : vector<16x32xf32> to vector<8x8xf32>
    %771 = vector.broadcast %627 : f32 to vector<8x8xf32>
    %772 = arith.mulf %770, %771 : vector<8x8xf32>
    %773 = math.roundeven %772 : vector<8x8xf32>
    %774 = arith.truncf %773 : vector<8x8xf32> to vector<8x8xbf16>
    %cst_217 = arith.constant dense<0.000000e+00> : vector<8x8xf32>
    %775 = tpu.matmul %769, %774, %cst_217 {dimension_numbers = #tpu.dot_dimension_numbers<[1], [1], [0], [0], [0, 0, 1, 0], [], []>} : vector<8x8xbf16>, vector<8x8xbf16>, vector<8x8xf32> -> vector<8x8xf32>
    %cst_218 = arith.constant 0.353553385 : f32
    %776 = arith.mulf %637, %cst_218 : f32
    %777 = vector.broadcast %776 : f32 to vector<8x8xf32>
    %778 = arith.mulf %775, %777 : vector<8x8xf32>
    %779 = vector.broadcast %739 : vector<1x8xf32> to vector<8x8xf32>
    %780 = arith.addf %778, %779 : vector<8x8xf32>
    %cst_219 = arith.constant dense<0xFF800000> : vector<8xf32>
    %781 = vector.multi_reduction <maximumf>, %780, %cst_219 [1] : vector<8x8xf32> to vector<8xf32>
    %782 = vector.shape_cast %781 : vector<8xf32> to vector<8x1xf32>
    %783 = vector.broadcast %782 : vector<8x1xf32> to vector<8x8xf32>
    %784 = arith.subf %780, %783 : vector<8x8xf32>
    %785 = math.exp %784 : vector<8x8xf32>
    %cst_220 = arith.constant dense<0.000000e+00> : vector<8xf32>
    %786 = vector.multi_reduction <add>, %785, %cst_220 [1] : vector<8x8xf32> to vector<8xf32>
    %787 = vector.shape_cast %786 : vector<8xf32> to vector<8x1xf32>
    %788 = vector.broadcast %787 : vector<8x1xf32> to vector<8x8xf32>
    %789 = arith.divf %785, %788 : vector<8x8xf32>
    %790 = vector.extract_strided_slice %597 {offsets = [8, 16], sizes = [8, 8], strides = [1, 1]} : vector<16x32xf32> to vector<8x8xf32>
    %791 = vector.broadcast %620 : f32 to vector<8x8xf32>
    %792 = arith.mulf %790, %791 : vector<8x8xf32>
    %793 = math.roundeven %792 : vector<8x8xf32>
    %794 = arith.truncf %793 : vector<8x8xf32> to vector<8x8xbf16>
    %795 = vector.extract_strided_slice %605 {offsets = [8, 16], sizes = [8, 8], strides = [1, 1]} : vector<16x32xf32> to vector<8x8xf32>
    %796 = vector.broadcast %627 : f32 to vector<8x8xf32>
    %797 = arith.mulf %795, %796 : vector<8x8xf32>
    %798 = math.roundeven %797 : vector<8x8xf32>
    %799 = arith.truncf %798 : vector<8x8xf32> to vector<8x8xbf16>
    %cst_221 = arith.constant dense<0.000000e+00> : vector<8x8xf32>
    %800 = tpu.matmul %794, %799, %cst_221 {dimension_numbers = #tpu.dot_dimension_numbers<[1], [1], [0], [0], [0, 0, 1, 0], [], []>} : vector<8x8xbf16>, vector<8x8xbf16>, vector<8x8xf32> -> vector<8x8xf32>
    %cst_222 = arith.constant 0.353553385 : f32
    %801 = arith.mulf %637, %cst_222 : f32
    %802 = vector.broadcast %801 : f32 to vector<8x8xf32>
    %803 = arith.mulf %800, %802 : vector<8x8xf32>
    %804 = vector.broadcast %739 : vector<1x8xf32> to vector<8x8xf32>
    %805 = arith.addf %803, %804 : vector<8x8xf32>
    %cst_223 = arith.constant dense<0xFF800000> : vector<8xf32>
    %806 = vector.multi_reduction <maximumf>, %805, %cst_223 [1] : vector<8x8xf32> to vector<8xf32>
    %807 = vector.shape_cast %806 : vector<8xf32> to vector<8x1xf32>
    %808 = vector.broadcast %807 : vector<8x1xf32> to vector<8x8xf32>
    %809 = arith.subf %805, %808 : vector<8x8xf32>
    %810 = math.exp %809 : vector<8x8xf32>
    %cst_224 = arith.constant dense<0.000000e+00> : vector<8xf32>
    %811 = vector.multi_reduction <add>, %810, %cst_224 [1] : vector<8x8xf32> to vector<8xf32>
    %812 = vector.shape_cast %811 : vector<8xf32> to vector<8x1xf32>
    %813 = vector.broadcast %812 : vector<8x1xf32> to vector<8x8xf32>
    %814 = arith.divf %810, %813 : vector<8x8xf32>
    %815 = vector.extract_strided_slice %597 {offsets = [8, 24], sizes = [8, 8], strides = [1, 1]} : vector<16x32xf32> to vector<8x8xf32>
    %816 = vector.broadcast %620 : f32 to vector<8x8xf32>
    %817 = arith.mulf %815, %816 : vector<8x8xf32>
    %818 = math.roundeven %817 : vector<8x8xf32>
    %819 = arith.truncf %818 : vector<8x8xf32> to vector<8x8xbf16>
    %820 = vector.extract_strided_slice %605 {offsets = [8, 24], sizes = [8, 8], strides = [1, 1]} : vector<16x32xf32> to vector<8x8xf32>
    %821 = vector.broadcast %627 : f32 to vector<8x8xf32>
    %822 = arith.mulf %820, %821 : vector<8x8xf32>
    %823 = math.roundeven %822 : vector<8x8xf32>
    %824 = arith.truncf %823 : vector<8x8xf32> to vector<8x8xbf16>
    %cst_225 = arith.constant dense<0.000000e+00> : vector<8x8xf32>
    %825 = tpu.matmul %819, %824, %cst_225 {dimension_numbers = #tpu.dot_dimension_numbers<[1], [1], [0], [0], [0, 0, 1, 0], [], []>} : vector<8x8xbf16>, vector<8x8xbf16>, vector<8x8xf32> -> vector<8x8xf32>
    %cst_226 = arith.constant 0.353553385 : f32
    %826 = arith.mulf %637, %cst_226 : f32
    %827 = vector.broadcast %826 : f32 to vector<8x8xf32>
    %828 = arith.mulf %825, %827 : vector<8x8xf32>
    %829 = vector.broadcast %739 : vector<1x8xf32> to vector<8x8xf32>
    %830 = arith.addf %828, %829 : vector<8x8xf32>
    %cst_227 = arith.constant dense<0xFF800000> : vector<8xf32>
    %831 = vector.multi_reduction <maximumf>, %830, %cst_227 [1] : vector<8x8xf32> to vector<8xf32>
    %832 = vector.shape_cast %831 : vector<8xf32> to vector<8x1xf32>
    %833 = vector.broadcast %832 : vector<8x1xf32> to vector<8x8xf32>
    %834 = arith.subf %830, %833 : vector<8x8xf32>
    %835 = math.exp %834 : vector<8x8xf32>
    %cst_228 = arith.constant dense<0.000000e+00> : vector<8xf32>
    %836 = vector.multi_reduction <add>, %835, %cst_228 [1] : vector<8x8xf32> to vector<8xf32>
    %837 = vector.shape_cast %836 : vector<8xf32> to vector<8x1xf32>
    %838 = vector.broadcast %837 : vector<8x1xf32> to vector<8x8xf32>
    %839 = arith.divf %835, %838 : vector<8x8xf32>
    %840 = vector.shape_cast %663 : vector<8x8xf32> to vector<1x8x8xf32>
    %cst_229 = arith.constant dense<0xFF800000> : vector<1xf32>
    %841 = vector.multi_reduction <maximumf>, %840, %cst_229 [1, 2] : vector<1x8x8xf32> to vector<1xf32>
    %842 = vector.shape_cast %841 : vector<1xf32> to vector<1x1x1xf32>
    %843 = vector.extract %842[0, 0, 0] : f32 from vector<1x1x1xf32>
    %844 = vector.shape_cast %688 : vector<8x8xf32> to vector<1x8x8xf32>
    %cst_230 = arith.constant dense<0xFF800000> : vector<1xf32>
    %845 = vector.multi_reduction <maximumf>, %844, %cst_230 [1, 2] : vector<1x8x8xf32> to vector<1xf32>
    %846 = vector.shape_cast %845 : vector<1xf32> to vector<1x1x1xf32>
    %847 = vector.extract %846[0, 0, 0] : f32 from vector<1x1x1xf32>
    %848 = arith.maximumf %843, %847 : f32
    %849 = vector.shape_cast %713 : vector<8x8xf32> to vector<1x8x8xf32>
    %cst_231 = arith.constant dense<0xFF800000> : vector<1xf32>
    %850 = vector.multi_reduction <maximumf>, %849, %cst_231 [1, 2] : vector<1x8x8xf32> to vector<1xf32>
    %851 = vector.shape_cast %850 : vector<1xf32> to vector<1x1x1xf32>
    %852 = vector.extract %851[0, 0, 0] : f32 from vector<1x1x1xf32>
    %853 = arith.maximumf %848, %852 : f32
    %854 = vector.shape_cast %738 : vector<8x8xf32> to vector<1x8x8xf32>
    %cst_232 = arith.constant dense<0xFF800000> : vector<1xf32>
    %855 = vector.multi_reduction <maximumf>, %854, %cst_232 [1, 2] : vector<1x8x8xf32> to vector<1xf32>
    %856 = vector.shape_cast %855 : vector<1xf32> to vector<1x1x1xf32>
    %857 = vector.extract %856[0, 0, 0] : f32 from vector<1x1x1xf32>
    %858 = arith.maximumf %853, %857 : f32
    %859 = vector.shape_cast %764 : vector<8x8xf32> to vector<1x8x8xf32>
    %cst_233 = arith.constant dense<0xFF800000> : vector<1xf32>
    %860 = vector.multi_reduction <maximumf>, %859, %cst_233 [1, 2] : vector<1x8x8xf32> to vector<1xf32>
    %861 = vector.shape_cast %860 : vector<1xf32> to vector<1x1x1xf32>
    %862 = vector.extract %861[0, 0, 0] : f32 from vector<1x1x1xf32>
    %863 = arith.maximumf %858, %862 : f32
    %864 = vector.shape_cast %789 : vector<8x8xf32> to vector<1x8x8xf32>
    %cst_234 = arith.constant dense<0xFF800000> : vector<1xf32>
    %865 = vector.multi_reduction <maximumf>, %864, %cst_234 [1, 2] : vector<1x8x8xf32> to vector<1xf32>
    %866 = vector.shape_cast %865 : vector<1xf32> to vector<1x1x1xf32>
    %867 = vector.extract %866[0, 0, 0] : f32 from vector<1x1x1xf32>
    %868 = arith.maximumf %863, %867 : f32
    %869 = vector.shape_cast %814 : vector<8x8xf32> to vector<1x8x8xf32>
    %cst_235 = arith.constant dense<0xFF800000> : vector<1xf32>
    %870 = vector.multi_reduction <maximumf>, %869, %cst_235 [1, 2] : vector<1x8x8xf32> to vector<1xf32>
    %871 = vector.shape_cast %870 : vector<1xf32> to vector<1x1x1xf32>
    %872 = vector.extract %871[0, 0, 0] : f32 from vector<1x1x1xf32>
    %873 = arith.maximumf %868, %872 : f32
    %874 = vector.shape_cast %839 : vector<8x8xf32> to vector<1x8x8xf32>
    %cst_236 = arith.constant dense<0xFF800000> : vector<1xf32>
    %875 = vector.multi_reduction <maximumf>, %874, %cst_236 [1, 2] : vector<1x8x8xf32> to vector<1xf32>
    %876 = vector.shape_cast %875 : vector<1xf32> to vector<1x1x1xf32>
    %877 = vector.extract %876[0, 0, 0] : f32 from vector<1x1x1xf32>
    %878 = arith.maximumf %873, %877 : f32
    %cst_237 = arith.constant 9.99999968E-21 : f32
    %879 = arith.maximumf %878, %cst_237 : f32
    %cst_238 = arith.constant 1.275000e+02 : f32
    %880 = arith.divf %cst_238, %879 : f32
    %cst_239 = arith.constant 1.000000e+00 : f32
    %881 = arith.divf %cst_239, %880 : f32
    %cst_240 = arith.constant 1.000000e+00 : f32
    %882 = arith.divf %cst_240, %634 : f32
    %883 = arith.mulf %881, %882 : f32
    %884 = vector.broadcast %880 : f32 to vector<8x8xf32>
    %885 = arith.mulf %663, %884 : vector<8x8xf32>
    %886 = math.roundeven %885 : vector<8x8xf32>
    %887 = arith.truncf %886 : vector<8x8xf32> to vector<8x8xbf16>
    %888 = vector.extract_strided_slice %613 {offsets = [0, 0], sizes = [8, 8], strides = [1, 1]} : vector<16x32xf32> to vector<8x8xf32>
    %889 = vector.broadcast %634 : f32 to vector<8x8xf32>
    %890 = arith.mulf %888, %889 : vector<8x8xf32>
    %891 = math.roundeven %890 : vector<8x8xf32>
    %892 = arith.truncf %891 : vector<8x8xf32> to vector<8x8xbf16>
    %cst_241 = arith.constant dense<0.000000e+00> : vector<8x8xf32>
    %893 = tpu.matmul %887, %892, %cst_241 {dimension_numbers = #tpu.dot_dimension_numbers<[1], [0], [0], [1], [0, 0, 1, 1], [], []>} : vector<8x8xbf16>, vector<8x8xbf16>, vector<8x8xf32> -> vector<8x8xf32>
    %894 = vector.broadcast %883 : f32 to vector<8x8xf32>
    %895 = arith.mulf %893, %894 : vector<8x8xf32>
    %c0_242 = arith.constant 0 : index
    %c0_243 = arith.constant 0 : index
    %896 = vector.load %arg18[%c0_242, %c0_243] : memref<16x32xf32, #tpu.memory_space<vmem>>, vector<8x8xf32>
    tpu.vector_store %arg18[%c0_242, %c0_243], %895 {strides = array<i32>} : memref<16x32xf32, #tpu.memory_space<vmem>>, vector<8x8xf32>,
    %897 = vector.broadcast %880 : f32 to vector<8x8xf32>
    %898 = arith.mulf %688, %897 : vector<8x8xf32>
    %899 = math.roundeven %898 : vector<8x8xf32>
    %900 = arith.truncf %899 : vector<8x8xf32> to vector<8x8xbf16>
    %901 = vector.extract_strided_slice %613 {offsets = [0, 8], sizes = [8, 8], strides = [1, 1]} : vector<16x32xf32> to vector<8x8xf32>
    %902 = vector.broadcast %634 : f32 to vector<8x8xf32>
    %903 = arith.mulf %901, %902 : vector<8x8xf32>
    %904 = math.roundeven %903 : vector<8x8xf32>
    %905 = arith.truncf %904 : vector<8x8xf32> to vector<8x8xbf16>
    %cst_244 = arith.constant dense<0.000000e+00> : vector<8x8xf32>
    %906 = tpu.matmul %900, %905, %cst_244 {dimension_numbers = #tpu.dot_dimension_numbers<[1], [0], [0], [1], [0, 0, 1, 1], [], []>} : vector<8x8xbf16>, vector<8x8xbf16>, vector<8x8xf32> -> vector<8x8xf32>
    %907 = vector.broadcast %883 : f32 to vector<8x8xf32>
    %908 = arith.mulf %906, %907 : vector<8x8xf32>
    %c0_245 = arith.constant 0 : index
    %c8_246 = arith.constant 8 : index
    %909 = vector.load %arg18[%c0_245, %c8_246] : memref<16x32xf32, #tpu.memory_space<vmem>>, vector<8x8xf32>
    tpu.vector_store %arg18[%c0_245, %c8_246], %908 {strides = array<i32>} : memref<16x32xf32, #tpu.memory_space<vmem>>, vector<8x8xf32>,
    %910 = vector.broadcast %880 : f32 to vector<8x8xf32>
    %911 = arith.mulf %713, %910 : vector<8x8xf32>
    %912 = math.roundeven %911 : vector<8x8xf32>
    %913 = arith.truncf %912 : vector<8x8xf32> to vector<8x8xbf16>
    %914 = vector.extract_strided_slice %613 {offsets = [0, 16], sizes = [8, 8], strides = [1, 1]} : vector<16x32xf32> to vector<8x8xf32>
    %915 = vector.broadcast %634 : f32 to vector<8x8xf32>
    %916 = arith.mulf %914, %915 : vector<8x8xf32>
    %917 = math.roundeven %916 : vector<8x8xf32>
    %918 = arith.truncf %917 : vector<8x8xf32> to vector<8x8xbf16>
    %cst_247 = arith.constant dense<0.000000e+00> : vector<8x8xf32>
    %919 = tpu.matmul %913, %918, %cst_247 {dimension_numbers = #tpu.dot_dimension_numbers<[1], [0], [0], [1], [0, 0, 1, 1], [], []>} : vector<8x8xbf16>, vector<8x8xbf16>, vector<8x8xf32> -> vector<8x8xf32>
    %920 = vector.broadcast %883 : f32 to vector<8x8xf32>
    %921 = arith.mulf %919, %920 : vector<8x8xf32>
    %c0_248 = arith.constant 0 : index
    %c16_249 = arith.constant 16 : index
    %922 = vector.load %arg18[%c0_248, %c16_249] : memref<16x32xf32, #tpu.memory_space<vmem>>, vector<8x8xf32>
    tpu.vector_store %arg18[%c0_248, %c16_249], %921 {strides = array<i32>} : memref<16x32xf32, #tpu.memory_space<vmem>>, vector<8x8xf32>,
    %923 = vector.broadcast %880 : f32 to vector<8x8xf32>
    %924 = arith.mulf %738, %923 : vector<8x8xf32>
    %925 = math.roundeven %924 : vector<8x8xf32>
    %926 = arith.truncf %925 : vector<8x8xf32> to vector<8x8xbf16>
    %927 = vector.extract_strided_slice %613 {offsets = [0, 24], sizes = [8, 8], strides = [1, 1]} : vector<16x32xf32> to vector<8x8xf32>
    %928 = vector.broadcast %634 : f32 to vector<8x8xf32>
    %929 = arith.mulf %927, %928 : vector<8x8xf32>
    %930 = math.roundeven %929 : vector<8x8xf32>
    %931 = arith.truncf %930 : vector<8x8xf32> to vector<8x8xbf16>
    %cst_250 = arith.constant dense<0.000000e+00> : vector<8x8xf32>
    %932 = tpu.matmul %926, %931, %cst_250 {dimension_numbers = #tpu.dot_dimension_numbers<[1], [0], [0], [1], [0, 0, 1, 1], [], []>} : vector<8x8xbf16>, vector<8x8xbf16>, vector<8x8xf32> -> vector<8x8xf32>
    %933 = vector.broadcast %883 : f32 to vector<8x8xf32>
    %934 = arith.mulf %932, %933 : vector<8x8xf32>
    %c0_251 = arith.constant 0 : index
    %c24_252 = arith.constant 24 : index
    %935 = vector.load %arg18[%c0_251, %c24_252] : memref<16x32xf32, #tpu.memory_space<vmem>>, vector<8x8xf32>
    tpu.vector_store %arg18[%c0_251, %c24_252], %934 {strides = array<i32>} : memref<16x32xf32, #tpu.memory_space<vmem>>, vector<8x8xf32>,
    %936 = vector.broadcast %880 : f32 to vector<8x8xf32>
    %937 = arith.mulf %764, %936 : vector<8x8xf32>
    %938 = math.roundeven %937 : vector<8x8xf32>
    %939 = arith.truncf %938 : vector<8x8xf32> to vector<8x8xbf16>
    %940 = vector.extract_strided_slice %613 {offsets = [8, 0], sizes = [8, 8], strides = [1, 1]} : vector<16x32xf32> to vector<8x8xf32>
    %941 = vector.broadcast %634 : f32 to vector<8x8xf32>
    %942 = arith.mulf %940, %941 : vector<8x8xf32>
    %943 = math.roundeven %942 : vector<8x8xf32>
    %944 = arith.truncf %943 : vector<8x8xf32> to vector<8x8xbf16>
    %cst_253 = arith.constant dense<0.000000e+00> : vector<8x8xf32>
    %945 = tpu.matmul %939, %944, %cst_253 {dimension_numbers = #tpu.dot_dimension_numbers<[1], [0], [0], [1], [0, 0, 1, 1], [], []>} : vector<8x8xbf16>, vector<8x8xbf16>, vector<8x8xf32> -> vector<8x8xf32>
    %946 = vector.broadcast %883 : f32 to vector<8x8xf32>
    %947 = arith.mulf %945, %946 : vector<8x8xf32>
    %c8_254 = arith.constant 8 : index
    %c0_255 = arith.constant 0 : index
    %948 = vector.load %arg18[%c8_254, %c0_255] : memref<16x32xf32, #tpu.memory_space<vmem>>, vector<8x8xf32>
    tpu.vector_store %arg18[%c8_254, %c0_255], %947 {strides = array<i32>} : memref<16x32xf32, #tpu.memory_space<vmem>>, vector<8x8xf32>,
    %949 = vector.broadcast %880 : f32 to vector<8x8xf32>
    %950 = arith.mulf %789, %949 : vector<8x8xf32>
    %951 = math.roundeven %950 : vector<8x8xf32>
    %952 = arith.truncf %951 : vector<8x8xf32> to vector<8x8xbf16>
    %953 = vector.extract_strided_slice %613 {offsets = [8, 8], sizes = [8, 8], strides = [1, 1]} : vector<16x32xf32> to vector<8x8xf32>
    %954 = vector.broadcast %634 : f32 to vector<8x8xf32>
    %955 = arith.mulf %953, %954 : vector<8x8xf32>
    %956 = math.roundeven %955 : vector<8x8xf32>
    %957 = arith.truncf %956 : vector<8x8xf32> to vector<8x8xbf16>
    %cst_256 = arith.constant dense<0.000000e+00> : vector<8x8xf32>
    %958 = tpu.matmul %952, %957, %cst_256 {dimension_numbers = #tpu.dot_dimension_numbers<[1], [0], [0], [1], [0, 0, 1, 1], [], []>} : vector<8x8xbf16>, vector<8x8xbf16>, vector<8x8xf32> -> vector<8x8xf32>
    %959 = vector.broadcast %883 : f32 to vector<8x8xf32>
    %960 = arith.mulf %958, %959 : vector<8x8xf32>
    %c8_257 = arith.constant 8 : index
    %c8_258 = arith.constant 8 : index
    %961 = vector.load %arg18[%c8_257, %c8_258] : memref<16x32xf32, #tpu.memory_space<vmem>>, vector<8x8xf32>
    tpu.vector_store %arg18[%c8_257, %c8_258], %960 {strides = array<i32>} : memref<16x32xf32, #tpu.memory_space<vmem>>, vector<8x8xf32>,
    %962 = vector.broadcast %880 : f32 to vector<8x8xf32>
    %963 = arith.mulf %814, %962 : vector<8x8xf32>
    %964 = math.roundeven %963 : vector<8x8xf32>
    %965 = arith.truncf %964 : vector<8x8xf32> to vector<8x8xbf16>
    %966 = vector.extract_strided_slice %613 {offsets = [8, 16], sizes = [8, 8], strides = [1, 1]} : vector<16x32xf32> to vector<8x8xf32>
    %967 = vector.broadcast %634 : f32 to vector<8x8xf32>
    %968 = arith.mulf %966, %967 : vector<8x8xf32>
    %969 = math.roundeven %968 : vector<8x8xf32>
    %970 = arith.truncf %969 : vector<8x8xf32> to vector<8x8xbf16>
    %cst_259 = arith.constant dense<0.000000e+00> : vector<8x8xf32>
    %971 = tpu.matmul %965, %970, %cst_259 {dimension_numbers = #tpu.dot_dimension_numbers<[1], [0], [0], [1], [0, 0, 1, 1], [], []>} : vector<8x8xbf16>, vector<8x8xbf16>, vector<8x8xf32> -> vector<8x8xf32>
    %972 = vector.broadcast %883 : f32 to vector<8x8xf32>
    %973 = arith.mulf %971, %972 : vector<8x8xf32>
    %c8_260 = arith.constant 8 : index
    %c16_261 = arith.constant 16 : index
    %974 = vector.load %arg18[%c8_260, %c16_261] : memref<16x32xf32, #tpu.memory_space<vmem>>, vector<8x8xf32>
    tpu.vector_store %arg18[%c8_260, %c16_261], %973 {strides = array<i32>} : memref<16x32xf32, #tpu.memory_space<vmem>>, vector<8x8xf32>,
    %975 = vector.broadcast %880 : f32 to vector<8x8xf32>
    %976 = arith.mulf %839, %975 : vector<8x8xf32>
    %977 = math.roundeven %976 : vector<8x8xf32>
    %978 = arith.truncf %977 : vector<8x8xf32> to vector<8x8xbf16>
    %979 = vector.extract_strided_slice %613 {offsets = [8, 24], sizes = [8, 8], strides = [1, 1]} : vector<16x32xf32> to vector<8x8xf32>
    %980 = vector.broadcast %634 : f32 to vector<8x8xf32>
    %981 = arith.mulf %979, %980 : vector<8x8xf32>
    %982 = math.roundeven %981 : vector<8x8xf32>
    %983 = arith.truncf %982 : vector<8x8xf32> to vector<8x8xbf16>
    %cst_262 = arith.constant dense<0.000000e+00> : vector<8x8xf32>
    %984 = tpu.matmul %978, %983, %cst_262 {dimension_numbers = #tpu.dot_dimension_numbers<[1], [0], [0], [1], [0, 0, 1, 1], [], []>} : vector<8x8xbf16>, vector<8x8xbf16>, vector<8x8xf32> -> vector<8x8xf32>
    %985 = vector.broadcast %883 : f32 to vector<8x8xf32>
    %986 = arith.mulf %984, %985 : vector<8x8xf32>
    %c8_263 = arith.constant 8 : index
    %c24_264 = arith.constant 24 : index
    %987 = vector.load %arg18[%c8_263, %c24_264] : memref<16x32xf32, #tpu.memory_space<vmem>>, vector<8x8xf32>
    tpu.vector_store %arg18[%c8_263, %c24_264], %986 {strides = array<i32>} : memref<16x32xf32, #tpu.memory_space<vmem>>, vector<8x8xf32>,
    %c0_265 = arith.constant 0 : index
    %c0_266 = arith.constant 0 : index
    %988 = vector.load %arg18[%c0_265, %c0_266] : memref<16x32xf32, #tpu.memory_space<vmem>>, vector<16x32xf32>
    %989 = math.absf %988 : vector<16x32xf32>
    %990 = vector.shape_cast %989 : vector<16x32xf32> to vector<1x16x32xf32>
    %cst_267 = arith.constant dense<0xFF800000> : vector<1xf32>
    %991 = vector.multi_reduction <maximumf>, %990, %cst_267 [1, 2] : vector<1x16x32xf32> to vector<1xf32>
    %992 = vector.shape_cast %991 : vector<1xf32> to vector<1x1x1xf32>
    %993 = vector.extract %992[0, 0, 0] : f32 from vector<1x1x1xf32>
    %cst_268 = arith.constant 9.99999968E-21 : f32
    %994 = arith.maximumf %993, %cst_268 : f32
    %cst_269 = arith.constant 1.275000e+02 : f32
    %995 = arith.divf %cst_269, %994 : f32
    %c1_270 = arith.constant 1 : index
    %c0_271 = arith.constant 0 : index
    %c0_272 = arith.constant 0 : index
    %996 = vector.load %arg8[%c1_270, %c0_271, %c0_272] : memref<2x32x32xbf16, #tpu.memory_space<vmem>>, vector<1x32x32xbf16>
    %997 = vector.shape_cast %996 : vector<1x32x32xbf16> to vector<32x32xbf16>
    %c1_273 = arith.constant 1 : index
    %c3_274 = arith.constant 3 : index
    %998 = memref.load %arg16[%c1_273, %c3_274] : memref<2x6xf32, #tpu.memory_space<smem>>
    %999 = vector.broadcast %995 : f32 to vector<16x32xf32>
    %1000 = arith.mulf %988, %999 : vector<16x32xf32>
    %1001 = math.roundeven %1000 : vector<16x32xf32>
    %1002 = arith.truncf %1001 : vector<16x32xf32> to vector<16x32xbf16>
    %cst_275 = arith.constant dense<0.000000e+00> : vector<16x32xf32>
    %1003 = tpu.matmul %1002, %997, %cst_275 {dimension_numbers = #tpu.dot_dimension_numbers<[1], [0], [0], [1], [0, 0, 1, 1], [], []>} : vector<16x32xbf16>, vector<32x32xbf16>, vector<16x32xf32> -> vector<16x32xf32>
    %cst_276 = arith.constant 1.000000e+00 : f32
    %1004 = arith.divf %cst_276, %995 : f32
    %1005 = arith.mulf %1004, %998 : f32
    %1006 = vector.broadcast %1005 : f32 to vector<16x32xf32>
    %1007 = arith.mulf %1003, %1006 : vector<16x32xf32>
    %c1_277 = arith.constant 1 : index
    %c0_278 = arith.constant 0 : index
    %c0_279 = arith.constant 0 : index
    %1008 = vector.load %arg9[%c1_277, %c0_278, %c0_279] : memref<2x1x32xf32, #tpu.memory_space<vmem>>, vector<1x1x32xf32>
    %1009 = vector.shape_cast %1008 : vector<1x1x32xf32> to vector<1x32xf32>
    %1010 = vector.broadcast %1009 : vector<1x32xf32> to vector<16x32xf32>
    %1011 = arith.addf %1007, %1010 : vector<16x32xf32>
    %1012 = arith.addf %548, %1011 : vector<16x32xf32>
    %c1_280 = arith.constant 1 : index
    %c0_281 = arith.constant 0 : index
    %c0_282 = arith.constant 0 : index
    %1013 = vector.load %arg4[%c1_280, %c0_281, %c0_282] : memref<2x1x32xf32, #tpu.memory_space<vmem>>, vector<1x1x32xf32>
    %1014 = vector.shape_cast %1013 : vector<1x1x32xf32> to vector<1x32xf32>
    %c1_283 = arith.constant 1 : index
    %c0_284 = arith.constant 0 : index
    %c0_285 = arith.constant 0 : index
    %1015 = vector.load %arg5[%c1_283, %c0_284, %c0_285] : memref<2x1x32xf32, #tpu.memory_space<vmem>>, vector<1x1x32xf32>
    %1016 = vector.shape_cast %1015 : vector<1x1x32xf32> to vector<1x32xf32>
    %cst_286 = arith.constant dense<0.000000e+00> : vector<16xf32>
    %1017 = vector.multi_reduction <add>, %1012, %cst_286 [1] : vector<16x32xf32> to vector<16xf32>
    %1018 = vector.shape_cast %1017 : vector<16xf32> to vector<16x1xf32>
    %cst_287 = arith.constant 3.200000e+01 : f32
    %1019 = vector.broadcast %cst_287 : f32 to vector<16x1xf32>
    %1020 = arith.divf %1018, %1019 : vector<16x1xf32>
    %1021 = vector.broadcast %1020 : vector<16x1xf32> to vector<16x32xf32>
    %1022 = arith.subf %1012, %1021 : vector<16x32xf32>
    %1023 = arith.mulf %1022, %1022 : vector<16x32xf32>
    %cst_288 = arith.constant dense<0.000000e+00> : vector<16xf32>
    %1024 = vector.multi_reduction <add>, %1023, %cst_288 [1] : vector<16x32xf32> to vector<16xf32>
    %1025 = vector.shape_cast %1024 : vector<16xf32> to vector<16x1xf32>
    %cst_289 = arith.constant 3.200000e+01 : f32
    %1026 = vector.broadcast %cst_289 : f32 to vector<16x1xf32>
    %1027 = arith.divf %1025, %1026 : vector<16x1xf32>
    %cst_290 = arith.constant 9.99999996E-13 : f32
    %1028 = vector.broadcast %cst_290 : f32 to vector<16x1xf32>
    %1029 = arith.addf %1027, %1028 : vector<16x1xf32>
    %1030 = math.sqrt %1029 : vector<16x1xf32>
    %1031 = vector.broadcast %1030 : vector<16x1xf32> to vector<16x32xf32>
    %1032 = arith.divf %1022, %1031 : vector<16x32xf32>
    %1033 = vector.broadcast %1014 : vector<1x32xf32> to vector<16x32xf32>
    %1034 = arith.mulf %1032, %1033 : vector<16x32xf32>
    %1035 = vector.broadcast %1016 : vector<1x32xf32> to vector<16x32xf32>
    %1036 = arith.addf %1034, %1035 : vector<16x32xf32>
    %1037 = math.absf %1036 : vector<16x32xf32>
    %1038 = vector.shape_cast %1037 : vector<16x32xf32> to vector<1x16x32xf32>
    %cst_291 = arith.constant dense<0xFF800000> : vector<1xf32>
    %1039 = vector.multi_reduction <maximumf>, %1038, %cst_291 [1, 2] : vector<1x16x32xf32> to vector<1xf32>
    %1040 = vector.shape_cast %1039 : vector<1xf32> to vector<1x1x1xf32>
    %1041 = vector.extract %1040[0, 0, 0] : f32 from vector<1x1x1xf32>
    %cst_292 = arith.constant 9.99999968E-21 : f32
    %1042 = arith.maximumf %1041, %cst_292 : f32
    %cst_293 = arith.constant 1.275000e+02 : f32
    %1043 = arith.divf %cst_293, %1042 : f32
    %c1_294 = arith.constant 1 : index
    %c0_295 = arith.constant 0 : index
    %c0_296 = arith.constant 0 : index
    %1044 = vector.load %arg10[%c1_294, %c0_295, %c0_296] : memref<2x32x128xbf16, #tpu.memory_space<vmem>>, vector<1x32x128xbf16>
    %1045 = vector.shape_cast %1044 : vector<1x32x128xbf16> to vector<32x128xbf16>
    %c1_297 = arith.constant 1 : index
    %c4_298 = arith.constant 4 : index
    %1046 = memref.load %arg16[%c1_297, %c4_298] : memref<2x6xf32, #tpu.memory_space<smem>>
    %1047 = vector.broadcast %1043 : f32 to vector<16x32xf32>
    %1048 = arith.mulf %1036, %1047 : vector<16x32xf32>
    %1049 = math.roundeven %1048 : vector<16x32xf32>
    %1050 = arith.truncf %1049 : vector<16x32xf32> to vector<16x32xbf16>
    %cst_299 = arith.constant dense<0.000000e+00> : vector<16x128xf32>
    %1051 = tpu.matmul %1050, %1045, %cst_299 {dimension_numbers = #tpu.dot_dimension_numbers<[1], [0], [0], [1], [0, 0, 1, 1], [], []>} : vector<16x32xbf16>, vector<32x128xbf16>, vector<16x128xf32> -> vector<16x128xf32>
    %cst_300 = arith.constant 1.000000e+00 : f32
    %1052 = arith.divf %cst_300, %1043 : f32
    %1053 = arith.mulf %1052, %1046 : f32
    %1054 = vector.broadcast %1053 : f32 to vector<16x128xf32>
    %1055 = arith.mulf %1051, %1054 : vector<16x128xf32>
    %c1_301 = arith.constant 1 : index
    %c0_302 = arith.constant 0 : index
    %c0_303 = arith.constant 0 : index
    %1056 = vector.load %arg11[%c1_301, %c0_302, %c0_303] : memref<2x1x128xf32, #tpu.memory_space<vmem>>, vector<1x1x128xf32>
    %1057 = vector.shape_cast %1056 : vector<1x1x128xf32> to vector<1x128xf32>
    %1058 = vector.broadcast %1057 : vector<1x128xf32> to vector<16x128xf32>
    %1059 = arith.addf %1055, %1058 : vector<16x128xf32>
    %cst_304 = arith.constant 5.000000e-01 : f32
    %1060 = vector.broadcast %cst_304 : f32 to vector<16x128xf32>
    %1061 = arith.mulf %1060, %1059 : vector<16x128xf32>
    %cst_305 = arith.constant 0.707106769 : f32
    %1062 = vector.broadcast %cst_305 : f32 to vector<16x128xf32>
    %1063 = arith.mulf %1059, %1062 : vector<16x128xf32>
    %1064 = math.erf %1063 : vector<16x128xf32>
    %cst_306 = arith.constant 1.000000e+00 : f32
    %1065 = vector.broadcast %cst_306 : f32 to vector<16x128xf32>
    %1066 = arith.addf %1065, %1064 : vector<16x128xf32>
    %1067 = arith.mulf %1061, %1066 : vector<16x128xf32>
    %1068 = math.absf %1067 : vector<16x128xf32>
    %1069 = vector.shape_cast %1068 : vector<16x128xf32> to vector<1x16x128xf32>
    %cst_307 = arith.constant dense<0xFF800000> : vector<1xf32>
    %1070 = vector.multi_reduction <maximumf>, %1069, %cst_307 [1, 2] : vector<1x16x128xf32> to vector<1xf32>
    %1071 = vector.shape_cast %1070 : vector<1xf32> to vector<1x1x1xf32>
    %1072 = vector.extract %1071[0, 0, 0] : f32 from vector<1x1x1xf32>
    %cst_308 = arith.constant 9.99999968E-21 : f32
    %1073 = arith.maximumf %1072, %cst_308 : f32
    %cst_309 = arith.constant 1.275000e+02 : f32
    %1074 = arith.divf %cst_309, %1073 : f32
    %c1_310 = arith.constant 1 : index
    %c0_311 = arith.constant 0 : index
    %c0_312 = arith.constant 0 : index
    %1075 = vector.load %arg12[%c1_310, %c0_311, %c0_312] : memref<2x128x32xbf16, #tpu.memory_space<vmem>>, vector<1x128x32xbf16>
    %1076 = vector.shape_cast %1075 : vector<1x128x32xbf16> to vector<128x32xbf16>
    %c1_313 = arith.constant 1 : index
    %c5_314 = arith.constant 5 : index
    %1077 = memref.load %arg16[%c1_313, %c5_314] : memref<2x6xf32, #tpu.memory_space<smem>>
    %1078 = vector.broadcast %1074 : f32 to vector<16x128xf32>
    %1079 = arith.mulf %1067, %1078 : vector<16x128xf32>
    %1080 = math.roundeven %1079 : vector<16x128xf32>
    %1081 = arith.truncf %1080 : vector<16x128xf32> to vector<16x128xbf16>
    %cst_315 = arith.constant dense<0.000000e+00> : vector<16x32xf32>
    %1082 = tpu.matmul %1081, %1076, %cst_315 {dimension_numbers = #tpu.dot_dimension_numbers<[1], [0], [0], [1], [0, 0, 1, 1], [], []>} : vector<16x128xbf16>, vector<128x32xbf16>, vector<16x32xf32> -> vector<16x32xf32>
    %cst_316 = arith.constant 1.000000e+00 : f32
    %1083 = arith.divf %cst_316, %1074 : f32
    %1084 = arith.mulf %1083, %1077 : f32
    %1085 = vector.broadcast %1084 : f32 to vector<16x32xf32>
    %1086 = arith.mulf %1082, %1085 : vector<16x32xf32>
    %c1_317 = arith.constant 1 : index
    %c0_318 = arith.constant 0 : index
    %c0_319 = arith.constant 0 : index
    %1087 = vector.load %arg13[%c1_317, %c0_318, %c0_319] : memref<2x1x32xf32, #tpu.memory_space<vmem>>, vector<1x1x32xf32>
    %1088 = vector.shape_cast %1087 : vector<1x1x32xf32> to vector<1x32xf32>
    %1089 = vector.broadcast %1088 : vector<1x32xf32> to vector<16x32xf32>
    %1090 = arith.addf %1086, %1089 : vector<16x32xf32>
    %1091 = arith.addf %1012, %1090 : vector<16x32xf32>
    %c0_320 = arith.constant 0 : index
    %c0_321 = arith.constant 0 : index
    %1092 = vector.load %arg14[%c0_320, %c0_321] : memref<1x32xf32, #tpu.memory_space<vmem>>, vector<1x32xf32>
    %c0_322 = arith.constant 0 : index
    %c0_323 = arith.constant 0 : index
    %1093 = vector.load %arg15[%c0_322, %c0_323] : memref<1x32xf32, #tpu.memory_space<vmem>>, vector<1x32xf32>
    %cst_324 = arith.constant dense<0.000000e+00> : vector<16xf32>
    %1094 = vector.multi_reduction <add>, %1091, %cst_324 [1] : vector<16x32xf32> to vector<16xf32>
    %1095 = vector.shape_cast %1094 : vector<16xf32> to vector<16x1xf32>
    %cst_325 = arith.constant 3.200000e+01 : f32
    %1096 = vector.broadcast %cst_325 : f32 to vector<16x1xf32>
    %1097 = arith.divf %1095, %1096 : vector<16x1xf32>
    %1098 = vector.broadcast %1097 : vector<16x1xf32> to vector<16x32xf32>
    %1099 = arith.subf %1091, %1098 : vector<16x32xf32>
    %1100 = arith.mulf %1099, %1099 : vector<16x32xf32>
    %cst_326 = arith.constant dense<0.000000e+00> : vector<16xf32>
    %1101 = vector.multi_reduction <add>, %1100, %cst_326 [1] : vector<16x32xf32> to vector<16xf32>
    %1102 = vector.shape_cast %1101 : vector<16xf32> to vector<16x1xf32>
    %cst_327 = arith.constant 3.200000e+01 : f32
    %1103 = vector.broadcast %cst_327 : f32 to vector<16x1xf32>
    %1104 = arith.divf %1102, %1103 : vector<16x1xf32>
    %cst_328 = arith.constant 9.99999996E-13 : f32
    %1105 = vector.broadcast %cst_328 : f32 to vector<16x1xf32>
    %1106 = arith.addf %1104, %1105 : vector<16x1xf32>
    %1107 = math.sqrt %1106 : vector<16x1xf32>
    %1108 = vector.broadcast %1107 : vector<16x1xf32> to vector<16x32xf32>
    %1109 = arith.divf %1099, %1108 : vector<16x32xf32>
    %1110 = vector.broadcast %1092 : vector<1x32xf32> to vector<16x32xf32>
    %1111 = arith.mulf %1109, %1110 : vector<16x32xf32>
    %1112 = vector.broadcast %1093 : vector<1x32xf32> to vector<16x32xf32>
    %1113 = arith.addf %1111, %1112 : vector<16x32xf32>
    %c0_329 = arith.constant 0 : index
    %c0_330 = arith.constant 0 : index
    %1114 = vector.load %arg17[%c0_329, %c0_330] : memref<16x32xf32, #tpu.memory_space<vmem>>, vector<16x32xf32>
    tpu.vector_store %arg17[%c0_329, %c0_330], %1113 {strides = array<i32>} : memref<16x32xf32, #tpu.memory_space<vmem>>, vector<16x32xf32>,
    return
  }
}

</mosaic_0001>

<bundles_post_ra>
// kernel: encoder_forward.1
= control target key start
LH: loop header
LB: loop body
LE: loop exit
PB: predicated region body
PF: predicated region fallthrough
CT: control target
= control target key end

     0   :  { %s5789_s0 = inlined_call_operand.vmem [shape: f32[16,32], index: 0, kind: input, shape index: {}]   ;;  %s5790_s1 = inlined_call_operand.vmem [shape: f32[2,8], index: 1, kind: input, shape index: {}]   ;;  %s5791_s2 = inlined_call_operand.vmem [shape: f32[2,1,32], index: 2, kind: input, shape index: {}]   ;;  %s5792_s3 = inlined_call_operand.vmem [shape: f32[2,1,32], index: 3, kind: input, shape index: {}]   ;;  %s5793_s4 = inlined_call_operand.vmem [shape: f32[2,1,32], index: 4, kind: input, shape index: {}]   ;;  %s5794_s5 = inlined_call_operand.vmem [shape: f32[2,1,32], index: 5, kind: input, shape index: {}]   ;;  %s5795_s6 = inlined_call_operand.vmem [shape: bf16[2,32,96], index: 6, kind: input, shape index: {}]   ;;  %s5796_s7 = inlined_call_operand.vmem [shape: f32[2,1,96], index: 7, kind: input, shape index: {}]   ;;  %s5797_s8 = inlined_call_operand.vmem [shape: bf16[2,32,32], index: 8, kind: input, shape index: {}]   ;;  %s5798_s9 = inlined_call_operand.vmem [shape: f32[2,1,32], index: 9, kind: input, shape index: {}]   ;;  %s5799_s10 = inlined_call_operand.vmem [shape: bf16[2,32,128], index: 10, kind: input, shape index: {}]   ;;  %s5800_s11 = inlined_call_operand.vmem [shape: f32[2,1,128], index: 11, kind: input, shape index: {}]   ;;  %s5801_s12 = inlined_call_operand.vmem [shape: bf16[2,128,32], index: 12, kind: input, shape index: {}]   ;;  %s5802_s13 = inlined_call_operand.vmem [shape: f32[2,1,32], index: 13, kind: input, shape index: {}]   ;;  %s5803_s14 = inlined_call_operand.vmem [shape: f32[1,32], index: 14, kind: input, shape index: {}]   ;;  %s5804_s15 = inlined_call_operand.vmem [shape: f32[1,32], index: 15, kind: input, shape index: {}]   ;;  %s5805_s16 = inlined_call_operand.vmem [shape: f32[2,6], index: 16, kind: input, shape index: {}]   ;;  %s5806_s17 = inlined_call_operand.hbm [shape: f32[16,32], index: 17, kind: output, shape index: {}]  }
   0x1   :  { %5832 = sst [smem:[#allocation9_spill]] %s5789_s0 }
   0x2   :  { %5833 = sst [smem:[#allocation10_spill]] %s5790_s1 }
   0x3   :  { %5834 = sst [smem:[#allocation11_spill]] %s5803_s14 }
   0x4   :  { %5835 = sst [smem:[#allocation12_spill]] %s5804_s15 }
   0x5   :  { %5836 = sst [smem:[#allocation13_spill]] %s5806_s17 }
   0x6   :  { %22 = vsyncpa [#allocation5], 0 }
   0x7   :  { %23 = vsyncpa [#allocation4], 0  ;;  %s62_s26 = sshll.u32 %s5805_s16, 4  ;;  %s63_s26 = int_to_ptr.vmem [resolvable:$true] %s62_s26 }
   0x8   :  { %s4873_s27 = scalar_lea.vmem %s63_s26, 32  ;;  %p4878_p1 = scmp.lt.s32.totalorder %s63_s26, %s63_s26 }
   0x9   :  { %p4874_p0 = scmp.ne.s32.totalorder %s63_s26, %s4873_s27  ;;  %p4879_p2 = scmp.lt.s32.totalorder %s4873_s27, %s4873_s27 }
   0xb   :  { %p4880_p3 = por %p4879_p2, %p4878_p1 }
   0xd   :  { %p4881_p4 = pnand %p4880_p3, %p4874_p0 }
   0xf   :  { %4884 = shalt.err (!%p4881_p4)
}
  0x10   :  { %s4909_s28 = smov [#allocation3]  }
  0x11   :  { %65 = dma.vmem_to_smem %s63_s26, 32, %s4909_s28, [#allocation5]  }
  0x12   :  { %4905 = dma.done.wait [#allocation5], 32  }
  0x13   :  { %4906 = vsyncadd [#allocation5], 4294967264 }
  0x14   :  { %69 = sfence }
  0x15   :  { %s5837_s30 = sld [smem:[#allocation9_spill]]  ;;  %vm78_vm0 = vcmask 261120   ;;  %v3660_v31 = vld [vmem:[%s5791_s2] ss:$0 sm:$0xff]  ;;  %v4667_v50 = vld [vmem:[%s5795_s6 + $0x8] sm:$0xff]   ;;  %v4910_v52 = vmov 0.0  }
  0x16   :  { %v3661_v33 = vld [vmem:[%s5792_s3] ss:$0 sm:$0xff]  ;;  %3891 = vmatprep.subr.bf16.mxu1 %v4910_v52  ;;  %3917 = vmatprep.subr.bf16.mxu0 %v4910_v52  ;;  %vm4911_vm5 = vmmov 0   ;;  %s5830_s27 = smov 1e-20   ;;  %s225_s18 = sld [smem:[#allocation3]] }
  0x17   :  { %3892 = vmatpush3.bf16.msra.mxu1 %v4667_v50  ;;  %v4668_v53 = vld [vmem:[%s5795_s6] sm:$0xff]   ;;  %3895 = vmatprep.mubr.msk.bf16.mxu1 %vm4911_vm5, %v4910_v52  ;;  %s3666_s16 = sld [smem:[#allocation3 + $0x1]]  ;;  %vm273_vm8 = vcmask 523520   ;;  %s5816_s23 = smov 104   ;;  %vm293_vm13 = vcmask 785920   ;;  %vm329_vm14 = vcmask 64512  }
  0x18   :  { %3893 = vmatprep.subr.bf16.mxu1 %v4910_v52  ;;  %3919 = vmatprep.mubr.msk.bf16.mxu0 %vm4911_vm5, %v4910_v52  ;;  %s3667_s19 = sld [smem:[#allocation3 + $0x2]]  ;;  %s5820_s24 = smov 80  }
  0x19   :  { %s5839_s17 = smov 1e-20  }
  0x1b   :  { %v71_v0 = vld [vmem:[%s5837_s30] sm:$0xff]  ;;  %v72_v1 = vld [vmem:[%s5837_s30 + $0x8] sm:$0xff]  ;;  %3894 = vmatpush3.bf16.msra.mxu1 %v4668_v53 }
  0x1c   :  { %v79_v2 = vsel %vm78_vm0, %v71_v0, 0.0  ;;  %v82_v3 = vsel %vm78_vm0, %v72_v1, 0.0  ;;  %3899 = vmatprep.subr.bf16.mxu1 %v4910_v52 }
  0x1d   :  { %80 = vadd.xlane.f32.xlu0 %v79_v2 }
  0x21   :  { %83 = vadd.xlane.f32.xlu0 %v82_v3 }
  0xa6   :  { %v81_v4 = vpop.xlane.xlu0 %80 }
  0xa7   :  { %v86_v5 = vmul.f32 0.03125, %v81_v4 }
  0xa9   :  { %v88_v6 = vsub.f32 %v71_v0, %v86_v5 }
  0xaa   :  { %v84_v7 = vpop.xlane.xlu0 %83 }
  0xab   :  { %v87_v8 = vmul.f32 0.03125, %v84_v7  ;;  %v90_v9 = vmul.f32 %v88_v6, %v88_v6 }
  0xad   :  { %v89_v10 = vsub.f32 %v72_v1, %v87_v8  ;;  %v92_v11 = vsel %vm78_vm0, %v90_v9, 0.0 }
  0xae   :  { %93 = vadd.xlane.f32.xlu1 %v92_v11 }
  0xaf   :  { %v91_v12 = vmul.f32 %v89_v10, %v89_v10 }
  0xb1   :  { %v95_v13 = vsel %vm78_vm0, %v91_v12, 0.0 }
  0xb2   :  { %96 = vadd.xlane.f32.xlu1 %v95_v13 }
 0x137   :  { %v94_v14 = vpop.xlane.xlu1 %93 }
 0x138   :  { %v98_v15 = vmul.f32 0.03125, %v94_v14 }
 0x13a   :  { %v100_v16 = vadd.f32 1e-12, %v98_v15 }
 0x13b   :  { %v97_v17 = vpop.xlane.xlu1 %96 }
 0x13c   :  { %4695 = vrsqrt.f32 %v100_v16  ;;  %v99_v18 = vmul.f32 0.03125, %v97_v17  ;;  %vm104_vm1 = vcmp.eq.f32.partialorder %v100_v16, inf  ;;  %v107_v22 = vand.u32 2147483648, %v100_v16 }
 0x13d   :  { %vm106_vm2 = vcmp.eq.f32.partialorder %v100_v16, 0.0 }
 0x13e   :  { %v101_v19 = vadd.f32 1e-12, %v99_v18 }
 0x140   :  { %4697 = vrsqrt.f32 %v101_v19  ;;  %vm111_vm3 = vcmp.eq.f32.partialorder %v101_v19, inf  ;;  %v114_v27 = vand.u32 2147483648, %v101_v19  ;;  %vm113_vm4 = vcmp.eq.f32.partialorder %v101_v19, 0.0 }
 0x149   :  { %v4696_v20 = vpop.eup %4695 }
 0x14a   :  { %v103_v21 = vmul.f32 %v4696_v20, %v100_v16 }
 0x14c   :  { %v105_v23 = vsel %vm104_vm1, %v100_v16, %v103_v21  ;;  %v3665_v16 = vld [vmem:[%s5796_s7] ss:$0 sm:$0xff] }
 0x14d   :  { %v108_v24 = vsel %vm106_vm2, %v107_v22, %v105_v23  ;;  %v4698_v25 = vpop.eup %4697  ;;  %vm960_vm2 = vcmask 1043456  }
 0x14e   :  { %4699 = vrcp.f32 %v108_v24  ;;  %v110_v26 = vmul.f32 %v4698_v25, %v101_v19 }
 0x150   :  { %v112_v28 = vsel %vm111_vm3, %v101_v19, %v110_v26 }
 0x151   :  { %v115_v29 = vsel %vm113_vm4, %v114_v27, %v112_v28 }
 0x152   :  { %4701 = vrcp.f32 %v115_v29 }
 0x15b   :  { %v4700_v30 = vpop.eup %4699 }
 0x15c   :  { %v117_v32 = vmul.f32 %v4700_v30, %v88_v6 }
 0x15e   :  { %v126_v34 = vmul.f32 %v3660_v31, %v117_v32 }
 0x15f   :  { %v4702_v35 = vpop.eup %4701 }
 0x160   :  { %v119_v36 = vmul.f32 %v4702_v35, %v89_v10  ;;  %v134_v37 = vadd.f32 %v3661_v33, %v126_v34 }
 0x162   :  { %v127_v38 = vmul.f32 %v3660_v31, %v119_v36  ;;  %v136_v40 = vand.u32 2147483647, %v134_v37 }
 0x164   :  { %v135_v39 = vadd.f32 %v3661_v33, %v127_v38  ;;  %v138_v42 = vsel %vm78_vm0, %v136_v40, -inf }
 0x166   :  { %v137_v41 = vand.u32 2147483647, %v135_v39 }
 0x168   :  { %v139_v43 = vsel %vm78_vm0, %v137_v41, -inf }
 0x169   :  { %v140_v44 = vmax.f32 %v138_v42, %v139_v43 }
 0x16b   :  { %141 = vmax.xlane.f32.xlu0 %v140_v44 }
 0x1f4   :  { %v142_v45 = vpop.xlane.xlu0 %141 }
 0x1f5   :  { %v143_v46 = vrot.slane %v142_v45, 4 }
 0x1f7   :  { %v144_v47 = vmax.f32 %v142_v45, %v143_v46 }
 0x1f9   :  { %v145_v48 = vrot.slane %v144_v47, 2 }
 0x1fb   :  { %v146_v49 = vmax.f32 %v144_v47, %v145_v48 }
 0x1fd   :  { %v147_v51 = vrot.slane %v146_v49, 1 }
 0x1ff   :  { %v148_v54 = vmax.f32 %v146_v49, %v147_v51 }
 0x201   :  { %4171 = vpush %v148_v54 }
 0x232   :  { %s4172_s26 = spop %4171 }
 0x233   :  { %s150_s28 = smax.f32 %s5830_s27, %s4172_s26 }
 0x234   :  { %v151_v55 = vstv %s150_s28 }
 0x235   :  { %4703 = vrcp.f32 %v151_v55 }
 0x242   :  { %v4704_v56 = vpop.eup %4703 }
 0x243   :  { %4173 = vpush %v4704_v56 }
 0x274   :  { %s4174_s29 = spop %4173 }
 0x275   :  { %s154_s0 = smul.f32 127.5, %s4174_s29 }
 0x277   :  { %v155_v57 = vstv %s154_s0 }
 0x278   :  { %v156_v58 = vmul.f32 %v155_v57, %v134_v37  ;;  %v157_v59 = vmul.f32 %v155_v57, %v135_v39  ;;  %4705 = vrcp.f32 %v155_v57 }
 0x27a   :  { %v4177_v60 = vcvt.f32.s32 %v156_v58  ;;  %v4185_v61 = vcvt.f32.s32 %v157_v59  ;;  %v4175_v0 = vand.u32 2147483647, %v156_v58  ;;  %v4183_v1 = vand.u32 2147483647, %v157_v59 }
 0x27b   :  { %v4180_v3 = vand.u32 2147483648, %v156_v58  ;;  %v4188_v5 = vand.u32 2147483648, %v157_v59 }
 0x27c   :  { %v4178_v62 = vcvt.s32.f32 %v4177_v60  ;;  %v4186_v63 = vcvt.s32.f32 %v4185_v61  ;;  %vm4176_vm6 = vcmp.lt.f32.partialorder %v4175_v0, 8388608.0  ;;  %vm4184_vm7 = vcmp.lt.f32.partialorder %v4183_v1, 8388608.0 }
 0x27e   :  { %v4179_v2 = vand.u32 2147483647, %v4178_v62  ;;  %v4187_v4 = vand.u32 2147483647, %v4186_v63 }
 0x280   :  { %v4181_v6 = vor.u32 %v4180_v3, %v4179_v2  ;;  %v4189_v7 = vor.u32 %v4188_v5, %v4187_v4 }
 0x282   :  { %v4182_v8 = vsel %vm4176_vm6, %v4181_v6, %v156_v58  ;;  %v4190_v9 = vsel %vm4184_vm7, %v4189_v7, %v157_v59 }
 0x283   :  { %v160_v10 = vpack.c.bf16 %v4190_v9, %v4182_v8 }
 0x285   :  { %v4706_v11 = vpop.eup %4705  ;;  %3896 = vmatmul.mubr.msk.bf16.vlgmr.msra.gmra.mxu1 %vm78_vm0, %v160_v10 }
 0x286   :  { %4191 = vpush %v4706_v11  ;;  %3901 = vmatprep.mubr.msk.bf16.mxu1 %vm4911_vm5, %v4910_v52 }
 0x2b7   :  { %s4192_s1 = spop %4191 }
 0x2b8   :  { %s226_s20 = smul.f32 %s4192_s1, %s225_s18 }
 0x2b9   :  { %s239_s21 = smul.f32 %s4192_s1, %s3666_s16 }
 0x2ba   :  { %s246_s22 = smul.f32 %s4192_s1, %s3667_s19  ;;  %v227_v12 = vstv %s226_s20  ;;  %s5828_s1 = smov 88  }
 0x2bb   :  { %v240_v13 = vstv %s239_s21  ;;  %s5826_s20 = smov 96   ;;  %s5818_s21 = smov 112  }
 0x2bc   :  { %v247_v14 = vstv %s246_s22  ;;  %s5822_s22 = smov 120  }
 0x345   :  { %v214_v15 = vpop.f32.mrf.mxu1 }
 0x346   :  { %v228_v17 = vmul.f32 %v227_v12, %v214_v15  ;;  %v241_v18 = vmul.f32 %v240_v13, %v214_v15  ;;  %v248_v19 = vmul.f32 %v247_v14, %v214_v15 }
 0x347   :  { %v3897_v20 = vpop.f32.mrf.mxu1 }
 0x348   :  { %v236_v21 = vadd.f32 %v3665_v16, %v228_v17  ;;  %v243_v22 = vadd.f32 %v3665_v16, %v241_v18  ;;  %v5061_v23 = vadd.f32 %v3665_v16, %v248_v19 }
 0x349   :  { %v217_v24 = vpop.f32.mrf.mxu1 }
 0x34a   :  { %v229_v25 = vmul.f32 %v227_v12, %v217_v24  ;;  %v242_v26 = vmul.f32 %v240_v13, %v217_v24  ;;  %v249_v27 = vmul.f32 %v247_v14, %v217_v24  ;;  %v271_v29 = vand.u32 2147483647, %v243_v22 }
 0x34b   :  { %v3898_v28 = vpop.f32.mrf.mxu1  ;;  %v252_v33 = vand.u32 2147483647, %v236_v21 }
 0x34c   :  { %v5063_v30 = vadd.f32 %v3665_v16, %v229_v25  ;;  %v244_v31 = vadd.f32 %v3665_v16, %v242_v26  ;;  %v5065_v32 = vadd.f32 %v3665_v16, %v249_v27  ;;  %v274_v36 = vsel %vm273_vm8, %v271_v29, -inf }
 0x34d   :  { %v254_v38 = vsel %vm78_vm0, %v252_v33, -inf }
 0x34e   :  { %v272_v34 = vand.u32 2147483647, %v244_v31  ;;  %v253_v35 = vand.u32 2147483647, %v5063_v30 }
 0x350   :  { %v275_v37 = vsel %vm273_vm8, %v272_v34, -inf  ;;  %v255_v39 = vsel %vm78_vm0, %v253_v35, -inf }
 0x351   :  { %v276_v40 = vmax.f32 %v274_v36, %v275_v37  ;;  %v256_v41 = vmax.f32 %v254_v38, %v255_v39  ;;  %v292_v37 = vand.u32 2147483647, %v5065_v32  ;;  %v291_v38 = vand.u32 2147483647, %v5061_v23 }
 0x353   :  { %277 = vmax.xlane.f32.xlu0 %v276_v40  ;;  %257 = vmax.xlane.f32.xlu1 %v256_v41  ;;  %v295_v39 = vsel %vm293_vm13, %v292_v37, -inf  ;;  %v294_v40 = vsel %vm293_vm13, %v291_v38, -inf }
 0x354   :  { %v296_v41 = vmax.f32 %v294_v40, %v295_v39 }
 0x3dc   :  { %v258_v42 = vpop.xlane.xlu1 %257  ;;  %v278_v49 = vpop.xlane.xlu0 %277 }
 0x3dd   :  { %v259_v43 = vrot.slane %v258_v42, 4  ;;  %v279_v50 = vrot.slane %v278_v49, 4 }
 0x3df   :  { %v260_v44 = vmax.f32 %v258_v42, %v259_v43  ;;  %v280_v51 = vmax.f32 %v278_v49, %v279_v50 }
 0x3e1   :  { %v261_v45 = vrot.slane %v260_v44, 2  ;;  %v281_v54 = vrot.slane %v280_v51, 2 }
 0x3e3   :  { %v262_v46 = vmax.f32 %v260_v44, %v261_v45  ;;  %v282_v55 = vmax.f32 %v280_v51, %v281_v54 }
 0x3e5   :  { %v263_v47 = vrot.slane %v262_v46, 1  ;;  %v283_v56 = vrot.slane %v282_v55, 1 }
 0x3e7   :  { %v264_v48 = vmax.f32 %v262_v46, %v263_v47  ;;  %v284_v58 = vmax.f32 %v282_v55, %v283_v56 }
 0x3e9   :  { %4193 = vpush %v264_v48 }
 0x41a   :  { %s4194_s25 = spop %4193 }
 0x41b   :  { %s266_s26 = smax.f32 %s5830_s27, %s4194_s25  ;;  %s5824_s25 = smov 72  }
 0x41c   :  { %v267_v53 = vstv %s266_s26 }
 0x41d   :  { %4707 = vrcp.f32 %v267_v53 }
 0x42a   :  { %v4708_v57 = vpop.eup %4707 }
 0x42b   :  { %4195 = vpush %v4708_v57 }
 0x42c   :  { %4197 = vpush %v284_v58 }
 0x45c   :  { %s4196_s28 = spop %4195 }
 0x45d   :  { %s4198_s29 = spop %4197  ;;  %s270_s18 = smul.f32 127.5, %s4196_s28 }
 0x45e   :  { %s286_s0 = smax.f32 %s5830_s27, %s4198_s29 }
 0x45f   :  { %v287_v59 = vstv %s286_s0  ;;  %v5074_v61 = vstv %s270_s18  ;;  %s5838_s18 = sld [smem:[#allocation10_spill]] }
 0x460   :  { %4709 = vrcp.f32 %v287_v59  ;;  %v319_v62 = vmul.f32 %v5074_v61, %v236_v21  ;;  %v585_v13 = vmul.f32 %v5074_v61, %v5063_v30 }
 0x462   :  { %v4211_v63 = vcvt.f32.s32 %v319_v62  ;;  %v4214_v9 = vand.u32 2147483648, %v319_v62  ;;  %v4209_v12 = vand.u32 2147483647, %v319_v62  ;;  %v4227_v19 = vcvt.f32.s32 %v585_v13 }
 0x463   :  { %v4230_v30 = vand.u32 2147483648, %v585_v13  ;;  %v4225_v33 = vand.u32 2147483647, %v585_v13 }
 0x464   :  { %v4212_v1 = vcvt.s32.f32 %v4211_v63  ;;  %vm4210_vm10 = vcmp.lt.f32.partialorder %v4209_v12, 8388608.0  ;;  %v4228_v26 = vcvt.s32.f32 %v4227_v19  ;;  %v379_v19 = vlaneseq }
 0x465   :  { %vm4226_vm12 = vcmp.lt.f32.partialorder %v4225_v33, 8388608.0 }
 0x466   :  { %v4213_v5 = vand.u32 2147483647, %v4212_v1  ;;  %v4229_v28 = vand.u32 2147483647, %v4228_v26 }
 0x468   :  { %v4215_v16 = vor.u32 %v4214_v9, %v4213_v5  ;;  %v4231_v34 = vor.u32 %v4230_v30, %v4229_v28 }
 0x46a   :  { %v4216_v21 = vsel %vm4210_vm10, %v4215_v16, %v319_v62  ;;  %v4232_v35 = vsel %vm4226_vm12, %v4231_v34, %v585_v13 }
 0x46b   :  { %v321_v24 = vpack.c.bf16 %v4216_v21, %v4216_v21  ;;  %v587_v36 = vpack.c.bf16 %v4232_v35, %v4232_v35  ;;  %v73_v21 = vld [vmem:[%s5838_s18] sm:$0x3]  ;;  %s5814_s18 = smov 56  }
 0x46d   :  { %v4710_v60 = vpop.eup %4709 }
 0x46e   :  { %4199 = vpush %v4710_v60 }
 0x49f   :  { %s4200_s16 = spop %4199 }
 0x4a0   :  { %s290_s19 = smul.f32 127.5, %s4200_s16 }
 0x4a2   :  { %v5077_v0 = vstv %s290_s19 }
 0x4a3   :  { %v323_v2 = vmul.f32 %v5077_v0, %v243_v22  ;;  %v588_v3 = vmul.f32 %v5077_v0, %v244_v31 }
 0x4a5   :  { %v4219_v4 = vcvt.f32.s32 %v323_v2  ;;  %v4235_v7 = vcvt.f32.s32 %v588_v3  ;;  %v4217_v8 = vand.u32 2147483647, %v323_v2  ;;  %v4222_v11 = vand.u32 2147483648, %v323_v2 }
 0x4a6   :  { %v4238_v22 = vand.u32 2147483648, %v588_v3  ;;  %v4233_v25 = vand.u32 2147483647, %v588_v3 }
 0x4a7   :  { %v4220_v6 = vcvt.s32.f32 %v4219_v4  ;;  %v4236_v14 = vcvt.s32.f32 %v4235_v7  ;;  %vm4218_vm9 = vcmp.lt.f32.partialorder %v4217_v8, 8388608.0 }
 0x4a8   :  { %vm4234_vm11 = vcmp.lt.f32.partialorder %v4233_v25, 8388608.0 }
 0x4a9   :  { %v4221_v10 = vand.u32 2147483647, %v4220_v6  ;;  %v4237_v20 = vand.u32 2147483647, %v4236_v14 }
 0x4ab   :  { %v4223_v15 = vor.u32 %v4222_v11, %v4221_v10  ;;  %v4239_v27 = vor.u32 %v4238_v22, %v4237_v20 }
 0x4ad   :  { %v4224_v17 = vsel %vm4218_vm9, %v4223_v15, %v323_v2  ;;  %v4240_v29 = vsel %vm4234_vm11, %v4239_v27, %v588_v3 }
 0x4ae   :  { %v325_v18 = vpack.c.bf16 %v4224_v17, %v4224_v17  ;;  %v590_v31 = vpack.c.bf16 %v4240_v29, %v4240_v29 }
 0x4b0   :  { %398 = vrot.lane.b32.xlu0 %v325_v18, %s5828_s1  ;;  %327 = vrot.lane.b32.xlu1 %v325_v18, %s5826_s20 }
 0x4b4   :  { %459 = vrot.lane.b32.xlu0 %v321_v24, %s5818_s21  ;;  %396 = vrot.lane.b32.xlu1 %v321_v24, %s5822_s22 }
 0x4b8   :  { %522 = vrot.lane.b32.xlu0 %v321_v24, %s5816_s23  ;;  %461 = vrot.lane.b32.xlu1 %v325_v18, %s5820_s24 }
 0x4bc   :  { %723 = vrot.lane.b32.xlu0 %v590_v31, %s5820_s24  ;;  %524 = vrot.lane.b32.xlu1 %v325_v18, %s5824_s25 }
 0x4c0   :  { %786 = vrot.lane.b32.xlu0 %v590_v31, %s5824_s25  ;;  %592 = vrot.lane.b32.xlu1 %v590_v31, %s5826_s20 }
 0x4c4   :  { %784 = vrot.lane.b32.xlu0 %v587_v36, %s5816_s23  ;;  %660 = vrot.lane.b32.xlu1 %v590_v31, %s5828_s1 }
 0x4c8   :  { %658 = vrot.lane.b32.xlu1 %v587_v36, %s5822_s22 }
 0x4cc   :  { %721 = vrot.lane.b32.xlu1 %v587_v36, %s5818_s21 }
 0x4f0   :  { %297 = vmax.xlane.f32.xlu1 %v296_v41 }
 0x522   :  { %v328_v42 = vpop.permute.xlu1 %327  ;;  %v399_v44 = vpop.permute.xlu0 %398 }
 0x523   :  { %v334_v43 = vsel %vm329_vm14, %v328_v42, 0  ;;  %v404_v48 = vsel %vm329_vm14, %v399_v44, 0 }
 0x524   :  { %3900 = vmatpush3.bf16.xpose.msra.mxu1 %v334_v43 }
 0x525   :  { %3905 = vmatprep.subr.bf16.mxu1 %v4910_v52 }
 0x526   :  { %v397_v45 = vpop.permute.xlu1 %396  ;;  %v460_v46 = vpop.permute.xlu0 %459 }
 0x52a   :  { %v462_v47 = vpop.permute.xlu1 %461  ;;  %v523_v51 = vpop.permute.xlu0 %522 }
 0x52b   :  { %3902 = vmatmul.mubr.msk.bf16.vlgmr.msra.gmra.mxu1 %vm329_vm14, %v321_v24  ;;  %v467_v54 = vsel %vm329_vm14, %v462_v47, 0  ;;  %v380_v24 = vshrl.u32 %v379_v19, 7 }
 0x52c   :  { %3906 = vmatpush3.bf16.xpose.msra.mxu1 %v404_v48  ;;  %3907 = vmatprep.mubr.msk.bf16.mxu1 %vm4911_vm5, %v4910_v52 }
 0x52d   :  { %3911 = vmatprep.subr.bf16.mxu1 %v4910_v52  ;;  %v381_v30 = vsub.s32 0, %v380_v24  ;;  %v643_v34 = vsub.s32 1, %v380_v24 }
 0x52e   :  { %v525_v49 = vpop.permute.xlu1 %524  ;;  %v724_v55 = vpop.permute.xlu0 %723 }
 0x52f   :  { %v530_v50 = vsel %vm329_vm14, %v525_v49, 0  ;;  %v729_v63 = vsel %vm329_vm14, %v724_v55, 0 }
 0x530   :  { %3918 = vmatpush3.bf16.xpose.msra.mxu0 %v530_v50 }
 0x531   :  { %3929 = vmatprep.subr.bf16.mxu0 %v4910_v52 }
 0x532   :  { %v593_v53 = vpop.permute.xlu1 %592  ;;  %v787_v59 = vpop.permute.xlu0 %786 }
 0x533   :  { %3908 = vmatmul.mubr.msk.bf16.vlgmr.msra.gmra.mxu1 %vm329_vm14, %v397_v45  ;;  %v598_v58 = vsel %vm329_vm14, %v593_v53, 0  ;;  %v792_v62 = vsel %vm329_vm14, %v787_v59, 0 }
 0x534   :  { %3912 = vmatpush3.bf16.xpose.msra.mxu1 %v467_v54  ;;  %3913 = vmatprep.mubr.msk.bf16.mxu1 %vm4911_vm5, %v4910_v52 }
 0x535   :  { %3923 = vmatprep.subr.bf16.mxu1 %v4910_v52 }
 0x536   :  { %v661_v56 = vpop.permute.xlu1 %660  ;;  %v785_v1 = vpop.permute.xlu0 %784 }
 0x537   :  { %v666_v57 = vsel %vm329_vm14, %v661_v56, 0  ;;  %3920 = vmatmul.mubr.msk.bf16.vlgmr.msra.gmra.mxu0 %vm329_vm14, %v523_v51 }
 0x538   :  { %3930 = vmatpush3.bf16.xpose.msra.mxu0 %v666_v57  ;;  %3931 = vmatprep.mubr.msk.bf16.mxu0 %vm4911_vm5, %v4910_v52 }
 0x539   :  { %3941 = vmatprep.subr.bf16.mxu0 %v4910_v52 }
 0x53a   :  { %v659_v60 = vpop.permute.xlu1 %658 }
 0x53b   :  { %3914 = vmatmul.mubr.msk.bf16.vlgmr.msra.gmra.mxu1 %vm329_vm14, %v460_v46 }
 0x53c   :  { %3924 = vmatpush3.bf16.xpose.msra.mxu1 %v598_v58  ;;  %3925 = vmatprep.mubr.msk.bf16.mxu1 %vm4911_vm5, %v4910_v52 }
 0x53d   :  { %3935 = vmatprep.subr.bf16.mxu1 %v4910_v52 }
 0x53e   :  { %v722_v2 = vpop.permute.xlu1 %721 }
 0x53f   :  { %3932 = vmatmul.mubr.msk.bf16.vlgmr.msra.gmra.mxu0 %vm329_vm14, %v659_v60 }
 0x540   :  { %3942 = vmatpush3.bf16.xpose.msra.mxu0 %v792_v62  ;;  %3943 = vmatprep.mubr.msk.bf16.mxu0 %vm4911_vm5, %v4910_v52 }
 0x541   :  { %3953 = vmatprep.subr.bf16.mxu0 %v4910_v52 }
 0x543   :  { %3926 = vmatmul.mubr.msk.bf16.vlgmr.msra.gmra.mxu1 %vm329_vm14, %v587_v36 }
 0x544   :  { %3936 = vmatpush3.bf16.xpose.msra.mxu1 %v729_v63  ;;  %3937 = vmatprep.mubr.msk.bf16.mxu1 %vm4911_vm5, %v4910_v52 }
 0x545   :  { %3947 = vmatprep.subr.bf16.mxu1 %v4910_v52 }
 0x547   :  { %3944 = vmatmul.mubr.msk.bf16.vlgmr.msra.gmra.mxu0 %vm329_vm14, %v785_v1 }
 0x548   :  { %3955 = vmatprep.mubr.msk.bf16.mxu0 %vm4911_vm5, %v4910_v52 }
 0x54b   :  { %3938 = vmatmul.mubr.msk.bf16.vlgmr.msra.gmra.mxu1 %vm329_vm14, %v722_v2 }
 0x54c   :  { %3949 = vmatprep.mubr.msk.bf16.mxu1 %vm4911_vm5, %v4910_v52 }
 0x579   :  { %v298_v3 = vpop.xlane.xlu1 %297 }
 0x57a   :  { %v299_v4 = vrot.slane %v298_v3, 4 }
 0x57c   :  { %v300_v5 = vmax.f32 %v298_v3, %v299_v4 }
 0x57e   :  { %v301_v6 = vrot.slane %v300_v5, 2 }
 0x580   :  { %v302_v7 = vmax.f32 %v300_v5, %v301_v6 }
 0x582   :  { %v303_v8 = vrot.slane %v302_v7, 1 }
 0x584   :  { %v304_v9 = vmax.f32 %v302_v7, %v303_v8 }
 0x586   :  { %4201 = vpush %v304_v9 }
 0x5b7   :  { %s4202_s26 = spop %4201 }
 0x5b8   :  { %s306_s28 = smax.f32 %s5830_s27, %s4202_s26 }
 0x5b9   :  { %v307_v10 = vstv %s306_s28 }
 0x5ba   :  { %4711 = vrcp.f32 %v307_v10 }
 0x5bb   :  { %4713 = vrcp.f32 %v5074_v61 }
 0x5bc   :  { %4715 = vrcp.f32 %v5077_v0  ;;  %v74_v0 = vsub.f32 1.0, %v73_v21 }
 0x5be   :  { %v75_v29 = vmul.f32 -1000.0, %v74_v0 }
 0x5c0   :  { %v5149_v38 = vrot.slane %v75_v29, %v381_v30  ;;  %v5151_v41 = vrot.slane %v75_v29, %v643_v34 }
 0x5c7   :  { %v4712_v11 = vpop.eup %4711 }
 0x5c8   :  { %v4714_v12 = vpop.eup %4713  ;;  %4203 = vpush %v4712_v11 }
 0x5c9   :  { %v4716_v13 = vpop.eup %4715  ;;  %4205 = vpush %v4714_v12 }
 0x5ca   :  { %4207 = vpush %v4716_v13 }
 0x5eb   :  { %v370_v14 = vpop.f32.mrf.mxu1 }
 0x5ed   :  { %v3903_v15 = vpop.f32.mrf.mxu1 }
 0x5ef   :  { %v373_v16 = vpop.f32.mrf.mxu1 }
 0x5f1   :  { %v3904_v17 = vpop.f32.mrf.mxu1 }
 0x5f3   :  { %v440_v18 = vpop.f32.mrf.mxu1 }
 0x5f5   :  { %v3909_v20 = vpop.f32.mrf.mxu1 }
 0x5f7   :  { %v443_v61 = vpop.f32.mrf.mxu1  ;;  %v566_v22 = vpop.f32.mrf.mxu0 }
 0x5f9   :  { %s5147_s16 = spop %4203  ;;  %v3910_v25 = vpop.f32.mrf.mxu1  ;;  %v3921_v26 = vpop.f32.mrf.mxu0 }
 0x5fa   :  { %s4206_s19 = spop %4205  ;;  %s310_s0 = smul.f32 127.5, %s5147_s16 }
 0x5fb   :  { %s4208_s26 = spop %4207  ;;  %v503_v27 = vpop.f32.mrf.mxu1  ;;  %v569_v28 = vpop.f32.mrf.mxu0  ;;  %s5810_s16 = smov 48  }
 0x5fc   :  { %s317_s28 = smul.f32 %s4208_s26, %s4206_s19  ;;  %s5808_s19 = smov 40  }
 0x5fd   :  { %v3915_v31 = vpop.f32.mrf.mxu1  ;;  %v3922_v33 = vpop.f32.mrf.mxu0  ;;  %s5812_s26 = smov 64  }
 0x5fe   :  { %s376_s29 = smul.f32 0.35355338, %s317_s28 }
 0x5ff   :  { %v506_v35 = vpop.f32.mrf.mxu1  ;;  %v702_v36 = vpop.f32.mrf.mxu0 }
 0x600   :  { %v377_v37 = vstv %s376_s29 }
 0x601   :  { %v3916_v39 = vpop.f32.mrf.mxu1  ;;  %v3933_v40 = vpop.f32.mrf.mxu0  ;;  %v708_v42 = vmul.f32 %v702_v36, %v377_v37  ;;  %v572_v43 = vmul.f32 %v566_v22, %v377_v37  ;;  %v378_v44 = vmul.f32 %v377_v37, %v370_v14  ;;  %v446_v45 = vmul.f32 %v440_v18, %v377_v37 }
 0x602   :  { %v509_v50 = vmul.f32 %v503_v27, %v377_v37 }
 0x603   :  { %v634_v46 = vpop.f32.mrf.mxu1  ;;  %v705_v47 = vpop.f32.mrf.mxu0  ;;  %v573_v48 = vadd.f32 %v572_v43, %v5149_v38  ;;  %v383_v49 = vadd.f32 %v5149_v38, %v378_v44  ;;  %v709_v56 = vadd.f32 %v708_v42, %v5151_v41  ;;  %v447_v57 = vadd.f32 %v446_v45, %v5149_v38 }
 0x604   :  { %v510_v1 = vadd.f32 %v509_v50, %v5149_v38  ;;  %v640_v2 = vmul.f32 %v634_v46, %v377_v37 }
 0x605   :  { %v3927_v51 = vpop.f32.mrf.mxu1  ;;  %v3934_v53 = vpop.f32.mrf.mxu0  ;;  %v574_v54 = vsel %vm329_vm14, %v573_v48, -inf  ;;  %v384_v55 = vsel %vm329_vm14, %v383_v49, -inf  ;;  %v710_v3 = vsel %vm329_vm14, %v709_v56, -inf  ;;  %v448_v4 = vsel %vm329_vm14, %v447_v57, -inf }
 0x606   :  { %575 = vmax.xlane.f32.xlu1 %v574_v54  ;;  %385 = vmax.xlane.f32.xlu0 %v384_v55  ;;  %v511_v12 = vsel %vm329_vm14, %v510_v1, -inf  ;;  %v645_v13 = vadd.f32 %v5151_v41, %v640_v2 }
 0x607   :  { %v637_v58 = vpop.f32.mrf.mxu1  ;;  %v828_v59 = vpop.f32.mrf.mxu0 }
 0x608   :  { %v834_v60 = vmul.f32 %v828_v59, %v377_v37  ;;  %v646_v16 = vsel %vm329_vm14, %v645_v13, -inf }
 0x609   :  { %v3928_v62 = vpop.f32.mrf.mxu1  ;;  %v3945_v63 = vpop.f32.mrf.mxu0 }
 0x60a   :  { %v835_v5 = vadd.f32 %v834_v60, %v5151_v41  ;;  %711 = vmax.xlane.f32.xlu1 %v710_v3  ;;  %449 = vmax.xlane.f32.xlu0 %v448_v4 }
 0x60b   :  { %v765_v6 = vpop.f32.mrf.mxu1  ;;  %v831_v7 = vpop.f32.mrf.mxu0 }
 0x60c   :  { %v836_v8 = vsel %vm329_vm14, %v835_v5, -inf  ;;  %v771_v11 = vmul.f32 %v765_v6, %v377_v37 }
 0x60d   :  { %v3946_v9 = vpop.f32.mrf.mxu0  ;;  %v3939_v10 = vpop.f32.mrf.mxu1 }
 0x60e   :  { %512 = vmax.xlane.f32.xlu0 %v511_v12  ;;  %837 = vmax.xlane.f32.xlu1 %v836_v8  ;;  %v772_v17 = vadd.f32 %v771_v11, %v5151_v41 }
 0x60f   :  { %v768_v14 = vpop.f32.mrf.mxu1 }
 0x610   :  { %v773_v18 = vsel %vm329_vm14, %v772_v17, -inf }
 0x611   :  { %v3940_v15 = vpop.f32.mrf.mxu1 }
 0x612   :  { %647 = vmax.xlane.f32.xlu0 %v646_v16  ;;  %v5186_v15 = vstv %s310_s0 }
 0x616   :  { %774 = vmax.xlane.f32.xlu0 %v773_v18 }
 0x68f   :  { %v576_v19 = vpop.xlane.xlu1 %575  ;;  %v386_v20 = vpop.xlane.xlu0 %385 }
 0x690   :  { %v577_v21 = vsub.f32 %v573_v48, %v576_v19  ;;  %v387_v61 = vsub.f32 %v383_v49, %v386_v20  ;;  %v951_v20 = vmul.f32 %v5186_v15, %v5061_v23 }
 0x692   :  { %v578_v22 = vmul.f32 1.442695, %v577_v21  ;;  %v388_v0 = vmul.f32 1.442695, %v387_v61 }
 0x693   :  { %v712_v24 = vpop.xlane.xlu1 %711  ;;  %v450_v25 = vpop.xlane.xlu0 %449 }
 0x694   :  { %4717 = vpow2.f32 %v578_v22  ;;  %v713_v26 = vsub.f32 %v709_v56, %v712_v24  ;;  %v451_v27 = vsub.f32 %v447_v57, %v450_v25 }
 0x695   :  { %4719 = vpow2.f32 %v388_v0 }
 0x696   :  { %v452_v28 = vmul.f32 1.442695, %v451_v27  ;;  %v714_v29 = vmul.f32 1.442695, %v713_v26  ;;  %v4273_v26 = vcvt.f32.s32 %v951_v20 }
 0x697   :  { %v513_v30 = vpop.xlane.xlu0 %512  ;;  %v838_v31 = vpop.xlane.xlu1 %837 }
 0x698   :  { %v514_v33 = vsub.f32 %v510_v1, %v513_v30  ;;  %v839_v34 = vsub.f32 %v835_v5, %v838_v31  ;;  %4721 = vpow2.f32 %v452_v28  ;;  %v4274_v31 = vcvt.s32.f32 %v4273_v26 }
 0x699   :  { %4723 = vpow2.f32 %v714_v29 }
 0x69a   :  { %v515_v35 = vmul.f32 1.442695, %v514_v33  ;;  %v840_v36 = vmul.f32 1.442695, %v839_v34 }
 0x69b   :  { %v648_v37 = vpop.xlane.xlu0 %647 }
 0x69c   :  { %4725 = vpow2.f32 %v515_v35  ;;  %v649_v39 = vsub.f32 %v645_v13, %v648_v37  ;;  %v4275_v35 = vand.u32 2147483647, %v4274_v31  ;;  %v4276_v37 = vand.u32 2147483648, %v951_v20 }
 0x69d   :  { %4727 = vpow2.f32 %v840_v36  ;;  %v1184_v36 = vmul.f32 %v5186_v15, %v5065_v32 }
 0x69e   :  { %v650_v40 = vmul.f32 1.442695, %v649_v39  ;;  %v4271_v39 = vand.u32 2147483647, %v951_v20 }
 0x69f   :  { %v775_v42 = vpop.xlane.xlu0 %774 }
 0x6a0   :  { %4729 = vpow2.f32 %v650_v40  ;;  %v776_v43 = vsub.f32 %v772_v17, %v775_v42  ;;  %v4313_v40 = vcvt.f32.s32 %v1184_v36  ;;  %v4277_v42 = vor.u32 %v4276_v37, %v4275_v35 }
 0x6a1   :  { %v4718_v44 = vpop.eup %4717  ;;  %vm4272_vm15 = vcmp.lt.f32.partialorder %v4271_v39, 8388608.0 }
 0x6a2   :  { %v4720_v45 = vpop.eup %4719  ;;  %v777_v46 = vmul.f32 1.442695, %v776_v43  ;;  %v580_v47 = vsel %vm329_vm14, %v4718_v44, 0.0  ;;  %v4314_v43 = vcvt.s32.f32 %v4313_v40 }
 0x6a3   :  { %581 = vadd.xlane.f32.xlu1 %v580_v47  ;;  %v390_v48 = vsel %vm329_vm14, %v4720_v45, 0.0  ;;  %v4316_v47 = vand.u32 2147483648, %v1184_v36 }
 0x6a4   :  { %4731 = vpow2.f32 %v777_v46  ;;  %391 = vadd.xlane.f32.xlu0 %v390_v48  ;;  %v4315_v46 = vand.u32 2147483647, %v4314_v43  ;;  %v4311_v48 = vand.u32 2147483647, %v1184_v36 }
 0x6a5   :  { %v4722_v49 = vpop.eup %4721 }
 0x6a6   :  { %v454_v50 = vsel %vm329_vm14, %v4722_v49, 0.0  ;;  %v4724_v51 = vpop.eup %4723  ;;  %vm4312_vm1 = vcmp.lt.f32.partialorder %v4311_v48, 8388608.0 }
 0x6a7   :  { %455 = vadd.xlane.f32.xlu1 %v454_v50  ;;  %v716_v55 = vsel %vm329_vm14, %v4724_v51, 0.0 }
 0x6a9   :  { %v4726_v53 = vpop.eup %4725 }
 0x6aa   :  { %v517_v54 = vsel %vm329_vm14, %v4726_v53, 0.0  ;;  %v4728_v56 = vpop.eup %4727 }
 0x6ab   :  { %518 = vadd.xlane.f32.xlu0 %v517_v54  ;;  %717 = vadd.xlane.f32.xlu1 %v716_v55  ;;  %v842_v59 = vsel %vm329_vm14, %v4728_v56, 0.0 }
 0x6ad   :  { %v4730_v57 = vpop.eup %4729 }
 0x6ae   :  { %v652_v58 = vsel %vm329_vm14, %v4730_v57, 0.0 }
 0x6af   :  { %653 = vadd.xlane.f32.xlu0 %v652_v58  ;;  %843 = vadd.xlane.f32.xlu1 %v842_v59 }
 0x6b1   :  { %v4732_v60 = vpop.eup %4731 }
 0x6b2   :  { %v779_v62 = vsel %vm329_vm14, %v4732_v60, 0.0 }
 0x6b3   :  { %780 = vadd.xlane.f32.xlu0 %v779_v62 }
 0x72c   :  { %v582_v63 = vpop.xlane.xlu1 %581 }
 0x72d   :  { %4733 = vrcp.f32 %v582_v63  ;;  %v392_v1 = vpop.xlane.xlu0 %391 }
 0x72e   :  { %4735 = vrcp.f32 %v392_v1 }
 0x730   :  { %v456_v2 = vpop.xlane.xlu1 %455 }
 0x731   :  { %4737 = vrcp.f32 %v456_v2 }
 0x734   :  { %v519_v3 = vpop.xlane.xlu0 %518  ;;  %v718_v4 = vpop.xlane.xlu1 %717 }
 0x735   :  { %4739 = vrcp.f32 %v519_v3 }
 0x736   :  { %4741 = vrcp.f32 %v718_v4 }
 0x738   :  { %v654_v5 = vpop.xlane.xlu0 %653  ;;  %v844_v6 = vpop.xlane.xlu1 %843 }
 0x739   :  { %4743 = vrcp.f32 %v654_v5 }
 0x73a   :  { %v4734_v7 = vpop.eup %4733  ;;  %4745 = vrcp.f32 %v844_v6 }
 0x73b   :  { %v4736_v8 = vpop.eup %4735  ;;  %v5177_v9 = vmul.f32 %v4734_v7, %v4718_v44  ;;  %v4278_v44 = vsel %vm4272_vm15, %v4277_v42, %v951_v20  ;;  %vm1063_vm15 = vcmask 130112  }
 0x73c   :  { %v781_v10 = vpop.xlane.xlu0 %780  ;;  %v5180_v11 = vmul.f32 %v4736_v8, %v4720_v45  ;;  %v953_v45 = vpack.c.bf16 %v4278_v44, %v4278_v44 }
 0x73d   :  { %4747 = vrcp.f32 %v781_v10  ;;  %v879_v12 = vsel %vm329_vm14, %v5177_v9, -inf }
 0x73e   :  { %880 = vmax.xlane.f32.xlu1 %v879_v12  ;;  %v847_v13 = vsel %vm329_vm14, %v5180_v11, -inf  ;;  %v4738_v14 = vpop.eup %4737 }
 0x73f   :  { %848 = vmax.xlane.f32.xlu0 %v847_v13  ;;  %v5188_v16 = vmul.f32 %v4738_v14, %v4722_v49  ;;  %v4317_v49 = vor.u32 %v4316_v47, %v4315_v46 }
 0x741   :  { %v857_v18 = vsel %vm329_vm14, %v5188_v16, -inf  ;;  %v4318_v32 = vsel %vm4312_vm1, %v4317_v49, %v1184_v36  ;;  %vm1121_vm1 = vcmask 195712  }
 0x742   :  { %v4740_v17 = vpop.eup %4739  ;;  %858 = vmax.xlane.f32.xlu1 %v857_v18  ;;  %v1186_v50 = vpack.c.bf16 %v4318_v32, %v4318_v32 }
 0x743   :  { %v4742_v19 = vpop.eup %4741  ;;  %v5194_v21 = vmul.f32 %v4740_v17, %v4726_v53 }
 0x744   :  { %v5196_v61 = vmul.f32 %v4742_v19, %v4724_v51 }
 0x745   :  { %v868_v22 = vsel %vm329_vm14, %v5194_v21, -inf }
 0x746   :  { %v4744_v0 = vpop.eup %4743  ;;  %v901_v24 = vsel %vm329_vm14, %v5196_v61, -inf  ;;  %869 = vmax.xlane.f32.xlu0 %v868_v22 }
 0x747   :  { %v4746_v25 = vpop.eup %4745  ;;  %902 = vmax.xlane.f32.xlu1 %v901_v24  ;;  %v5202_v27 = vmul.f32 %v4744_v0, %v4730_v57 }
 0x748   :  { %v5204_v28 = vmul.f32 %v4746_v25, %v4728_v56 }
 0x749   :  { %v890_v23 = vsel %vm329_vm14, %v5202_v27, -inf }
 0x74a   :  { %v4748_v29 = vpop.eup %4747  ;;  %v923_v30 = vsel %vm329_vm14, %v5204_v28, -inf  ;;  %891 = vmax.xlane.f32.xlu0 %v890_v23 }
 0x74b   :  { %924 = vmax.xlane.f32.xlu1 %v923_v30  ;;  %v5210_v33 = vmul.f32 %v4748_v29, %v4732_v60 }
 0x74d   :  { %v912_v34 = vsel %vm329_vm14, %v5210_v33, -inf }
 0x74e   :  { %913 = vmax.xlane.f32.xlu0 %v912_v34 }
 0x75c   :  { %1010 = vrot.lane.b32.xlu1 %v953_v45, %s5814_s18 }
 0x760   :  { %1068 = vrot.lane.b32.xlu1 %v953_v45, %s5810_s16 }
 0x764   :  { %1126 = vrot.lane.b32.xlu1 %v953_v45, %s5808_s19  ;;  %955 = vrot.lane.b32.xlu0 %v953_v45, %s5812_s26 }
 0x768   :  { %1241 = vrot.lane.b32.xlu1 %v1186_v50, %s5814_s18  ;;  %1188 = vrot.lane.b32.xlu0 %v1186_v50, %s5812_s26 }
 0x76c   :  { %1355 = vrot.lane.b32.xlu1 %v1186_v50, %s5808_s19  ;;  %1298 = vrot.lane.b32.xlu0 %v1186_v50, %s5810_s16 }
 0x7c7   :  { %v881_v51 = vpop.xlane.xlu1 %880 }
 0x7c8   :  { %v882_v53 = vrot.slane %v881_v51, 4  ;;  %v849_v54 = vpop.xlane.xlu0 %848 }
 0x7c9   :  { %v850_v55 = vrot.slane %v849_v54, 4 }
 0x7ca   :  { %v883_v56 = vmax.f32 %v881_v51, %v882_v53 }
 0x7cb   :  { %v851_v57 = vmax.f32 %v849_v54, %v850_v55  ;;  %v859_v58 = vpop.xlane.xlu1 %858 }
 0x7cc   :  { %v860_v59 = vrot.slane %v859_v58, 4  ;;  %v884_v2 = vrot.slane %v883_v56, 2 }
 0x7cd   :  { %v852_v60 = vrot.slane %v851_v57, 2 }
 0x7ce   :  { %v861_v62 = vmax.f32 %v859_v58, %v860_v59  ;;  %v885_v17 = vmax.f32 %v883_v56, %v884_v2 }
 0x7cf   :  { %v870_v63 = vpop.xlane.xlu0 %869  ;;  %v853_v1 = vmax.f32 %v851_v57, %v852_v60 }
 0x7d0   :  { %v903_v3 = vpop.xlane.xlu1 %902  ;;  %v871_v4 = vrot.slane %v870_v63, 4  ;;  %v862_v5 = vrot.slane %v861_v62, 2  ;;  %v886_v31 = vrot.slane %v885_v17, 1 }
 0x7d1   :  { %v904_v6 = vrot.slane %v903_v3, 4  ;;  %v854_v7 = vrot.slane %v853_v1, 1 }
 0x7d2   :  { %v872_v8 = vmax.f32 %v870_v63, %v871_v4  ;;  %v863_v14 = vmax.f32 %v861_v62, %v862_v5  ;;  %v887_v47 = vmax.f32 %v885_v17, %v886_v31 }
 0x7d3   :  { %v905_v10 = vmax.f32 %v903_v3, %v904_v6  ;;  %v892_v12 = vpop.xlane.xlu0 %891  ;;  %v855_v13 = vmax.f32 %v853_v1, %v854_v7 }
 0x7d4   :  { %v873_v18 = vrot.slane %v872_v8, 2  ;;  %v925_v19 = vpop.xlane.xlu1 %924  ;;  %v893_v20 = vrot.slane %v892_v12, 4  ;;  %v864_v24 = vrot.slane %v863_v14, 1 }
 0x7d5   :  { %v906_v22 = vrot.slane %v905_v10, 2  ;;  %v926_v0 = vrot.slane %v925_v19, 4  ;;  %4241 = vpush %v855_v13 }
 0x7d6   :  { %v894_v25 = vmax.f32 %v892_v12, %v893_v20  ;;  %v874_v26 = vmax.f32 %v872_v8, %v873_v18  ;;  %v865_v30 = vmax.f32 %v863_v14, %v864_v24 }
 0x7d7   :  { %v927_v23 = vmax.f32 %v925_v19, %v926_v0  ;;  %v914_v29 = vpop.xlane.xlu0 %913  ;;  %v907_v34 = vmax.f32 %v905_v10, %v906_v22 }
 0x7d8   :  { %v895_v35 = vrot.slane %v894_v25, 2  ;;  %v1011_v36 = vpop.permute.xlu1 %1010  ;;  %v915_v37 = vrot.slane %v914_v29, 4  ;;  %v875_v39 = vrot.slane %v874_v26, 1  ;;  %4243 = vpush %v865_v30 }
 0x7d9   :  { %v928_v40 = vrot.slane %v927_v23, 2  ;;  %v1016_v42 = vsel %vm960_vm2, %v1011_v36, 0  ;;  %v908_v48 = vrot.slane %v907_v34, 1 }
 0x7da   :  { %v916_v43 = vmax.f32 %v914_v29, %v915_v37  ;;  %3954 = vmatpush3.bf16.msra.mxu0 %v1016_v42  ;;  %v876_v44 = vmax.f32 %v874_v26, %v875_v39  ;;  %v896_v45 = vmax.f32 %v894_v25, %v895_v35 }
 0x7db   :  { %v956_v46 = vpop.permute.xlu0 %955  ;;  %v929_v49 = vmax.f32 %v927_v23, %v928_v40  ;;  %3965 = vmatprep.subr.bf16.mxu0 %v4910_v52  ;;  %v909_v55 = vmax.f32 %v907_v34, %v908_v48 }
 0x7dc   :  { %v917_v32 = vrot.slane %v916_v43, 2  ;;  %v962_v50 = vsel %vm960_vm2, %v956_v46, 0  ;;  %4245 = vpush %v876_v44  ;;  %v897_v51 = vrot.slane %v896_v45, 1  ;;  %v1069_v12 = vpop.permute.xlu1 %1068 }
 0x7dd   :  { %4247 = vpush %v887_v47  ;;  %3948 = vmatpush3.bf16.msra.mxu1 %v962_v50  ;;  %v930_v56 = vrot.slane %v929_v49, 1  ;;  %v1074_v44 = vsel %vm960_vm2, %v1069_v12, 0 }
 0x7de   :  { %v898_v53 = vmax.f32 %v896_v45, %v897_v51  ;;  %v918_v54 = vmax.f32 %v916_v43, %v917_v32  ;;  %3959 = vmatprep.subr.bf16.mxu1 %v4910_v52 }
 0x7df   :  { %v931_v59 = vmax.f32 %v929_v49, %v930_v56 }
 0x7e0   :  { %4249 = vpush %v898_v53  ;;  %v919_v57 = vrot.slane %v918_v54, 1 }
 0x7e1   :  { %4251 = vpush %v909_v55 }
 0x7e2   :  { %v920_v58 = vmax.f32 %v918_v54, %v919_v57  ;;  %v1189_v54 = vpop.permute.xlu0 %1188 }
 0x7e4   :  { %4253 = vpush %v920_v58 }
 0x7e5   :  { %4255 = vpush %v931_v59 }
 0x806   :  { %s4242_s28 = spop %4241 }
 0x809   :  { %s4244_s29 = spop %4243 }
 0x80a   :  { %s867_s0 = smax.f32 %s4244_s29, %s4242_s28  ;;  %s3684_s29 = sld [smem:[#allocation3 + $0x3]] }
 0x80d   :  { %s4246_s19 = spop %4245 }
 0x80e   :  { %s878_s16 = smax.f32 %s4246_s19, %s867_s0  ;;  %s4248_s26 = spop %4247 }
 0x80f   :  { %s889_s18 = smax.f32 %s4248_s26, %s878_s16 }
 0x811   :  { %s4250_s23 = spop %4249 }
 0x812   :  { %s900_s21 = smax.f32 %s4250_s23, %s889_s18  ;;  %s4252_s24 = spop %4251 }
 0x813   :  { %s911_s22 = smax.f32 %s4252_s24, %s900_s21  ;;  %s4926_s21 = smov 24  }
 0x815   :  { %s4254_s25 = spop %4253 }
 0x816   :  { %s922_s20 = smax.f32 %s4254_s25, %s911_s22  ;;  %s4256_s1 = spop %4255 }
 0x817   :  { %s933_s27 = smax.f32 %s4256_s1, %s922_s20  ;;  %s4924_s1 = smov 8  }
 0x818   :  { %s934_s15 = smax.f32 %s5839_s17, %s933_s27  ;;  %s4925_s20 = smov 16  }
 0x819   :  { %v935_v60 = vstv %s934_s15  ;;  %s3691_s22 = sld [smem:[#allocation3 + $0x4]] }
 0x81a   :  { %4749 = vrcp.f32 %v935_v60 }
 0x827   :  { %v4750_v62 = vpop.eup %4749 }
 0x828   :  { %4257 = vpush %v4750_v62 }
 0x859   :  { %s4258_s14 = spop %4257 }
 0x85a   :  { %s938_s28 = smul.f32 127.5, %s4258_s14 }
 0x85c   :  { %v939_v63 = vstv %s938_s28 }
 0x85d   :  { %v947_v1 = vmul.f32 %v939_v63, %v5180_v11  ;;  %v1007_v2 = vmul.f32 %v939_v63, %v5188_v16  ;;  %4751 = vrcp.f32 %v939_v63  ;;  %v1065_v3 = vmul.f32 %v939_v63, %v5194_v21 }
 0x85e   :  { %4753 = vrcp.f32 %v5186_v15  ;;  %v1123_v5 = vmul.f32 %v939_v63, %v5177_v9  ;;  %v5235_v10 = vmul.f32 %v939_v63, %v5202_v27  ;;  %v5238_v21 = vmul.f32 %v939_v63, %v5196_v61  ;;  %v1127_v61 = vpop.permute.xlu1 %1126 }
 0x85f   :  { %v4265_v4 = vcvt.f32.s32 %v947_v1  ;;  %v4281_v6 = vcvt.f32.s32 %v1007_v2  ;;  %v4289_v7 = vcvt.f32.s32 %v1065_v3  ;;  %v4263_v13 = vand.u32 2147483647, %v947_v1 }
 0x860   :  { %v4279_v14 = vand.u32 2147483647, %v1007_v2  ;;  %v4268_v18 = vand.u32 2147483648, %v947_v1  ;;  %v4297_v19 = vcvt.f32.s32 %v1123_v5  ;;  %v4284_v20 = vand.u32 2147483648, %v1007_v2 }
 0x861   :  { %v4266_v8 = vcvt.s32.f32 %v4265_v4  ;;  %v4282_v11 = vcvt.s32.f32 %v4281_v6  ;;  %v4290_v17 = vcvt.s32.f32 %v4289_v7  ;;  %v4305_v24 = vcvt.f32.s32 %v5235_v10 }
 0x862   :  { %v4298_v0 = vcvt.s32.f32 %v4297_v19  ;;  %vm4264_vm3 = vcmp.lt.f32.partialorder %v4263_v13, 8388608.0  ;;  %vm4280_vm4 = vcmp.lt.f32.partialorder %v4279_v14, 8388608.0  ;;  %v5242_v25 = vmul.f32 %v939_v63, %v5210_v33  ;;  %v1242_v56 = vpop.permute.xlu1 %1241  ;;  %v1299_v13 = vpop.permute.xlu0 %1298 }
 0x863   :  { %v4267_v16 = vand.u32 2147483647, %v4266_v8  ;;  %v4283_v15 = vand.u32 2147483647, %v4282_v11  ;;  %v4291_v22 = vand.u32 2147483647, %v4290_v17  ;;  %v4321_v30 = vcvt.f32.s32 %v5238_v21 }
 0x864   :  { %v4292_v23 = vand.u32 2147483648, %v1065_v3  ;;  %v4299_v29 = vand.u32 2147483647, %v4298_v0  ;;  %v4287_v35 = vand.u32 2147483647, %v1065_v3  ;;  %v4300_v36 = vand.u32 2147483648, %v1123_v5 }
 0x865   :  { %v4269_v9 = vor.u32 %v4268_v18, %v4267_v16  ;;  %v4285_v27 = vor.u32 %v4284_v20, %v4283_v15  ;;  %v4295_v40 = vand.u32 2147483647, %v1123_v5  ;;  %v4306_v42 = vcvt.s32.f32 %v4305_v24 }
 0x866   :  { %v4293_v39 = vor.u32 %v4292_v23, %v4291_v22  ;;  %v4301_v33 = vor.u32 %v4300_v36, %v4299_v29  ;;  %v4322_v45 = vcvt.s32.f32 %v4321_v30  ;;  %v1132_v47 = vsel %vm960_vm2, %v1127_v61, 0  ;;  %v1356_v11 = vpop.permute.xlu1 %1355 }
 0x867   :  { %v4270_v26 = vsel %vm4264_vm3, %v4269_v9, %v947_v1  ;;  %v4286_v34 = vsel %vm4280_vm4, %v4285_v27, %v1007_v2  ;;  %v5250_v48 = vmul.f32 %v939_v63, %v5204_v28  ;;  %vm4288_vm6 = vcmp.lt.f32.partialorder %v4287_v35, 8388608.0 }
 0x868   :  { %v949_v31 = vpack.c.bf16 %v4270_v26, %v4270_v26  ;;  %v1009_v37 = vpack.c.bf16 %v4286_v34, %v4286_v34  ;;  %v4294_v49 = vsel %vm4288_vm6, %v4293_v39, %v1065_v3  ;;  %vm4296_vm7 = vcmp.lt.f32.partialorder %v4295_v40, 8388608.0 }
 0x869   :  { %v4307_v32 = vand.u32 2147483647, %v4306_v42  ;;  %v4329_v50 = vcvt.f32.s32 %v5242_v25  ;;  %v4302_v28 = vsel %vm4296_vm7, %v4301_v33, %v1123_v5  ;;  %v4323_v51 = vand.u32 2147483647, %v4322_v45 }
 0x86a   :  { %v4752_v43 = vpop.eup %4751  ;;  %3950 = vmatmul.mubr.msk.bf16.vlgmr.msra.gmra.mxu1 %vm329_vm14, %v949_v31  ;;  %3956 = vmatmul.mubr.msk.bf16.vlgmr.msra.gmra.mxu0 %vm329_vm14, %v1009_v37  ;;  %v4337_v53 = vcvt.f32.s32 %v5250_v48  ;;  %v4308_v55 = vand.u32 2147483648, %v5235_v10  ;;  %v1067_v57 = vpack.c.bf16 %v4294_v49, %v4294_v49  ;;  %v4303_v58 = vand.u32 2147483647, %v5235_v10 }
 0x86b   :  { %v4754_v46 = vpop.eup %4753  ;;  %3960 = vmatpush3.bf16.msra.mxu1 %v1074_v44  ;;  %4259 = vpush %v4752_v43  ;;  %3966 = vmatpush3.bf16.msra.mxu0 %v1132_v47  ;;  %v4324_v59 = vand.u32 2147483648, %v5238_v21  ;;  %v1125_v60 = vpack.c.bf16 %v4302_v28, %v4302_v28  ;;  %v4319_v63 = vand.u32 2147483647, %v5238_v21  ;;  %v4330_v1 = vcvt.s32.f32 %v4329_v50 }
 0x86c   :  { %4261 = vpush %v4754_v46  ;;  %3961 = vmatprep.mubr.msk.bf16.mxu1 %vm4911_vm5, %v4910_v52  ;;  %3967 = vmatprep.mubr.msk.bf16.mxu0 %vm4911_vm5, %v4910_v52  ;;  %v4309_v62 = vor.u32 %v4308_v55, %v4307_v32  ;;  %v1194_v2 = vsel %vm960_vm2, %v1189_v54, 0  ;;  %v4338_v4 = vcvt.s32.f32 %v4337_v53  ;;  %v1247_v5 = vsel %vm960_vm2, %v1242_v56, 0 }
 0x86d   :  { %3971 = vmatprep.subr.bf16.mxu1 %v4910_v52  ;;  %3977 = vmatprep.subr.bf16.mxu0 %v4910_v52  ;;  %v4325_v3 = vor.u32 %v4324_v59, %v4323_v51  ;;  %vm4304_vm9 = vcmp.lt.f32.partialorder %v4303_v58, 8388608.0  ;;  %vm4320_vm10 = vcmp.lt.f32.partialorder %v4319_v63, 8388608.0  ;;  %v4331_v7 = vand.u32 2147483647, %v4330_v1 }
 0x86e   :  { %v4310_v6 = vsel %vm4304_vm9, %v4309_v62, %v5235_v10  ;;  %v4339_v12 = vand.u32 2147483647, %v4338_v4  ;;  %v4332_v14 = vand.u32 2147483648, %v5242_v25  ;;  %v4327_v16 = vand.u32 2147483647, %v5242_v25 }
 0x86f   :  { %v4326_v8 = vsel %vm4320_vm10, %v4325_v3, %v5238_v21  ;;  %v1183_v17 = vpack.c.bf16 %v4310_v6, %v4310_v6  ;;  %v4340_v18 = vand.u32 2147483648, %v5250_v48  ;;  %v4335_v10 = vand.u32 2147483647, %v5250_v48 }
 0x870   :  { %v1240_v19 = vpack.c.bf16 %v4326_v8, %v4326_v8  ;;  %v4333_v15 = vor.u32 %v4332_v14, %v4331_v7  ;;  %v1304_v20 = vsel %vm960_vm2, %v1299_v13, 0  ;;  %v1361_v21 = vsel %vm960_vm2, %v1356_v11, 0 }
 0x871   :  { %v4341_v9 = vor.u32 %v4340_v18, %v4339_v12  ;;  %vm4328_vm11 = vcmp.lt.f32.partialorder %v4327_v16, 8388608.0  ;;  %vm4336_vm12 = vcmp.lt.f32.partialorder %v4335_v10, 8388608.0  ;;  %vm1179_vm3 = vcmask 261312  }
 0x872   :  { %3962 = vmatmul.mubr.msk.bf16.vlgmr.msra.gmra.mxu1 %vm329_vm14, %v1067_v57  ;;  %3968 = vmatmul.mubr.msk.bf16.vlgmr.msra.gmra.mxu0 %vm329_vm14, %v1125_v60  ;;  %v4334_v22 = vsel %vm4328_vm11, %v4333_v15, %v5242_v25 }
 0x873   :  { %3972 = vmatpush3.bf16.msra.mxu1 %v1194_v2  ;;  %3978 = vmatpush3.bf16.msra.mxu0 %v1247_v5  ;;  %v4342_v0 = vsel %vm4336_vm12, %v4341_v9, %v5250_v48  ;;  %v1297_v24 = vpack.c.bf16 %v4334_v22, %v4334_v22 }
 0x874   :  { %3973 = vmatprep.mubr.msk.bf16.mxu1 %vm4911_vm5, %v4910_v52  ;;  %3979 = vmatprep.mubr.msk.bf16.mxu0 %vm4911_vm5, %v4910_v52  ;;  %v1354_v27 = vpack.c.bf16 %v4342_v0, %v4342_v0 }
 0x875   :  { %3983 = vmatprep.subr.bf16.mxu1 %v4910_v52  ;;  %3989 = vmatprep.subr.bf16.mxu0 %v4910_v52 }
 0x87a   :  { %3974 = vmatmul.mubr.msk.bf16.vlgmr.msra.gmra.mxu1 %vm329_vm14, %v1183_v17  ;;  %3980 = vmatmul.mubr.msk.bf16.vlgmr.msra.gmra.mxu0 %vm329_vm14, %v1240_v19 }
 0x87b   :  { %3984 = vmatpush3.bf16.msra.mxu1 %v1304_v20  ;;  %3990 = vmatpush3.bf16.msra.mxu0 %v1361_v21 }
 0x87c   :  { %3985 = vmatprep.mubr.msk.bf16.mxu1 %vm4911_vm5, %v4910_v52  ;;  %3991 = vmatprep.mubr.msk.bf16.mxu0 %vm4911_vm5, %v4910_v52 }
 0x87d   :  { %3995 = vmatprep.subr.bf16.mxu1 %v4910_v52  ;;  %4003 = vmatprep.subr.bf16.mxu0 %v4910_v52 }
 0x882   :  { %3986 = vmatmul.mubr.msk.bf16.vlgmr.msra.gmra.mxu1 %vm329_vm14, %v1297_v24  ;;  %3992 = vmatmul.mubr.msk.bf16.vlgmr.msra.gmra.mxu0 %vm329_vm14, %v1354_v27 }
 0x883   :  { %3999 = vmatprep.mubr.msk.bf16.mxu1 %vm4911_vm5, %v4910_v52  ;;  %4007 = vmatprep.mubr.msk.bf16.mxu0 %vm4911_vm5, %v4910_v52 }
 0x89c   :  { %s4260_s14 = spop %4259 }
 0x89d   :  { %s4262_s15 = spop %4261 }
 0x89e   :  { %s945_s27 = smul.f32 %s4262_s15, %s4260_s14 }
 0x8a0   :  { %v1004_v25 = vstv %s945_s27 }
 0x92a   :  { %v998_v26 = vpop.f32.mrf.mxu1  ;;  %v1052_v29 = vpop.f32.mrf.mxu0 }
 0x92b   :  { %v1005_v23 = vmul.f32 %v1004_v25, %v998_v26  ;;  %v1058_v30 = vmul.f32 %v1052_v29, %v1004_v25  ;;  %v4670_v26 = vld [vmem:[%s5797_s8] sm:$0xff]  }
 0x92c   :  { %v3951_v61 = vpop.f32.mrf.mxu1  ;;  %v3957_v31 = vpop.f32.mrf.mxu0 }
 0x92d   :  { %1006 = vst.msk [vmem:[#allocation2] sm:$0xff] %vm329_vm14, %v1005_v23  ;;  %1060 = vrot.lane.b32.xlu0 %v1058_v30, %s4924_s1 }
 0x92e   :  { %v1001_v34 = vpop.f32.mrf.mxu1  ;;  %v1055_v35 = vpop.f32.mrf.mxu0 }
 0x930   :  { %v3952_v36 = vpop.f32.mrf.mxu1  ;;  %v3958_v37 = vpop.f32.mrf.mxu0 }
 0x932   :  { %v1110_v39 = vpop.f32.mrf.mxu1  ;;  %v1168_v42 = vpop.f32.mrf.mxu0 }
 0x933   :  { %v1116_v40 = vmul.f32 %v1110_v39, %v1004_v25  ;;  %v1174_v45 = vmul.f32 %v1168_v42, %v1004_v25 }
 0x934   :  { %v3963_v43 = vpop.f32.mrf.mxu1  ;;  %v3969_v44 = vpop.f32.mrf.mxu0 }
 0x935   :  { %1118 = vrot.lane.b32.xlu0 %v1116_v40, %s4925_s20 }
 0x936   :  { %v1113_v33 = vpop.f32.mrf.mxu1  ;;  %v1171_v46 = vpop.f32.mrf.mxu0 }
 0x938   :  { %v3964_v47 = vpop.f32.mrf.mxu1  ;;  %v3970_v48 = vpop.f32.mrf.mxu0 }
 0x939   :  { %1176 = vrot.lane.b32.xlu0 %v1174_v45, %s4926_s21 }
 0x93a   :  { %v1230_v49 = vpop.f32.mrf.mxu1  ;;  %v1283_v50 = vpop.f32.mrf.mxu0 }
 0x93b   :  { %v1236_v32 = vmul.f32 %v1230_v49, %v1004_v25  ;;  %v1289_v28 = vmul.f32 %v1283_v50, %v1004_v25 }
 0x93c   :  { %v3975_v51 = vpop.f32.mrf.mxu1  ;;  %v3981_v53 = vpop.f32.mrf.mxu0 }
 0x93d   :  { %1237 = vst.msk [vmem:[#allocation2 + $0x8] sm:$0xff] %vm329_vm14, %v1236_v32  ;;  %1291 = vrot.lane.b32.xlu1 %v1289_v28, %s4924_s1  ;;  %v3688_v51 = vld [vmem:[%s5798_s9] ss:$0 sm:$0xff] }
 0x93e   :  { %v1233_v54 = vpop.f32.mrf.mxu1  ;;  %v1286_v55 = vpop.f32.mrf.mxu0 }
 0x940   :  { %v3976_v56 = vpop.f32.mrf.mxu1  ;;  %v3982_v57 = vpop.f32.mrf.mxu0 }
 0x941   :  { %v4871_v57 = vld [vmem:[%s5837_s30] sm:$0xff] }
 0x942   :  { %v1340_v58 = vpop.f32.mrf.mxu1  ;;  %v1397_v60 = vpop.f32.mrf.mxu0 }
 0x943   :  { %v1346_v59 = vmul.f32 %v1340_v58, %v1004_v25  ;;  %v1403_v2 = vmul.f32 %v1397_v60, %v1004_v25  ;;  %v4669_v25 = vld [vmem:[%s5797_s8 + $0x8] sm:$0xff]  }
 0x944   :  { %v3987_v62 = vpop.f32.mrf.mxu1  ;;  %v3993_v63 = vpop.f32.mrf.mxu0  ;;  %3996 = vmatpush3.bf16.msra.mxu1 %v4669_v25 }
 0x945   :  { %1348 = vrot.lane.b32.xlu1 %v1346_v59, %s4925_s20  ;;  %3997 = vmatprep.subr.bf16.mxu1 %v4910_v52 }
 0x946   :  { %v1343_v1 = vpop.f32.mrf.mxu1  ;;  %v1400_v3 = vpop.f32.mrf.mxu0 }
 0x947   :  { %v4872_v1 = vld [vmem:[%s5837_s30 + $0x8] sm:$0xff] }
 0x948   :  { %v3988_v4 = vpop.f32.mrf.mxu1  ;;  %v3994_v5 = vpop.f32.mrf.mxu0  ;;  %3998 = vmatpush3.bf16.msra.mxu1 %v4670_v26 }
 0x949   :  { %1405 = vrot.lane.b32.xlu1 %v1403_v2, %s4926_s21  ;;  %4011 = vmatprep.subr.bf16.mxu1 %v4910_v52 }
 0x99f   :  { %v1061_v6 = vpop.permute.xlu0 %1060 }
 0x9a0   :  { %1064 = vst.msk [vmem:[#allocation2] sm:$0xff] %vm1063_vm15, %v1061_v6 }
 0x9a7   :  { %v1119_v7 = vpop.permute.xlu0 %1118 }
 0x9a8   :  { %1122 = vst.msk [vmem:[#allocation2] sm:$0xff] %vm1121_vm1, %v1119_v7 }
 0x9ab   :  { %v1177_v8 = vpop.permute.xlu0 %1176 }
 0x9ac   :  { %1180 = vst.msk [vmem:[#allocation2] sm:$0xff] %vm1179_vm3, %v1177_v8 }
 0x9af   :  { %v1292_v12 = vpop.permute.xlu1 %1291 }
 0x9b0   :  { %1294 = vst.msk [vmem:[#allocation2 + $0x8] sm:$0xff] %vm1063_vm15, %v1292_v12 }
 0x9b3   :  { %v1409_v11 = vld [vmem:[#allocation2] sm:$0xff] }
 0x9b4   :  { %v1411_v17 = vand.u32 2147483647, %v1409_v11 }
 0x9b6   :  { %v1413_v19 = vsel %vm78_vm0, %v1411_v17, -inf }
 0x9b7   :  { %v1349_v13 = vpop.permute.xlu1 %1348 }
 0x9b8   :  { %1351 = vst.msk [vmem:[#allocation2 + $0x8] sm:$0xff] %vm1121_vm1, %v1349_v13 }
 0x9bb   :  { %v1406_v14 = vpop.permute.xlu1 %1405 }
 0x9bc   :  { %1408 = vst.msk [vmem:[#allocation2 + $0x8] sm:$0xff] %vm1179_vm3, %v1406_v14 }
 0x9c3   :  { %v1410_v16 = vld [vmem:[#allocation2 + $0x8] sm:$0xff] }
 0x9c4   :  { %v1412_v18 = vand.u32 2147483647, %v1410_v16 }
 0x9c6   :  { %v1414_v15 = vsel %vm78_vm0, %v1412_v18, -inf }
 0x9c7   :  { %v1415_v10 = vmax.f32 %v1413_v19, %v1414_v15 }
 0x9c9   :  { %1416 = vmax.xlane.f32.xlu0 %v1415_v10 }
 0xa52   :  { %v1417_v20 = vpop.xlane.xlu0 %1416 }
 0xa53   :  { %v1418_v9 = vrot.slane %v1417_v20, 4 }
 0xa55   :  { %v1419_v21 = vmax.f32 %v1417_v20, %v1418_v9 }
 0xa57   :  { %v1420_v22 = vrot.slane %v1419_v21, 2 }
 0xa59   :  { %v1421_v0 = vmax.f32 %v1419_v21, %v1420_v22 }
 0xa5b   :  { %v1422_v24 = vrot.slane %v1421_v0, 1 }
 0xa5d   :  { %v1423_v27 = vmax.f32 %v1421_v0, %v1422_v24 }
 0xa5f   :  { %4343 = vpush %v1423_v27 }
 0xa90   :  { %s4344_s18 = spop %4343 }
 0xa91   :  { %s1425_s16 = smax.f32 %s5839_s17, %s4344_s18 }
 0xa92   :  { %v1426_v23 = vstv %s1425_s16 }
 0xa93   :  { %4755 = vrcp.f32 %v1426_v23 }
 0xaa0   :  { %v4756_v29 = vpop.eup %4755 }
 0xaa1   :  { %4345 = vpush %v4756_v29 }
 0xad2   :  { %s4346_s19 = spop %4345 }
 0xad3   :  { %s1429_s26 = smul.f32 127.5, %s4346_s19 }
 0xad5   :  { %v1435_v30 = vstv %s1429_s26 }
 0xad6   :  { %v1436_v61 = vmul.f32 %v1435_v30, %v1409_v11  ;;  %v1437_v31 = vmul.f32 %v1435_v30, %v1410_v16  ;;  %4757 = vrcp.f32 %v1435_v30 }
 0xad8   :  { %v4349_v34 = vcvt.f32.s32 %v1436_v61  ;;  %v4357_v35 = vcvt.f32.s32 %v1437_v31  ;;  %v4347_v37 = vand.u32 2147483647, %v1436_v61  ;;  %v4352_v42 = vand.u32 2147483648, %v1436_v61 }
 0xad9   :  { %v4355_v43 = vand.u32 2147483647, %v1437_v31  ;;  %v4360_v33 = vand.u32 2147483648, %v1437_v31 }
 0xada   :  { %v4350_v36 = vcvt.s32.f32 %v4349_v34  ;;  %v4358_v39 = vcvt.s32.f32 %v4357_v35  ;;  %vm4348_vm4 = vcmp.lt.f32.partialorder %v4347_v37, 8388608.0  ;;  %v3690_v34 = vld [vmem:[%s5794_s5] ss:$0 sm:$0xff] }
 0xadb   :  { %vm4356_vm6 = vcmp.lt.f32.partialorder %v4355_v43, 8388608.0 }
 0xadc   :  { %v4351_v40 = vand.u32 2147483647, %v4350_v36  ;;  %v4359_v44 = vand.u32 2147483647, %v4358_v39 }
 0xade   :  { %v4353_v45 = vor.u32 %v4352_v42, %v4351_v40  ;;  %v4361_v46 = vor.u32 %v4360_v33, %v4359_v44 }
 0xae0   :  { %v4354_v47 = vsel %vm4348_vm4, %v4353_v45, %v1436_v61  ;;  %v4362_v48 = vsel %vm4356_vm6, %v4361_v46, %v1437_v31  ;;  %v3689_v61 = vld [vmem:[%s5793_s4] ss:$0 sm:$0xff] }
 0xae1   :  { %v1440_v49 = vpack.c.bf16 %v4362_v48, %v4354_v47 }
 0xae3   :  { %v4758_v32 = vpop.eup %4757  ;;  %4000 = vmatmul.mubr.msk.bf16.vlgmr.msra.gmra.mxu1 %vm78_vm0, %v1440_v49 }
 0xae4   :  { %4363 = vpush %v4758_v32  ;;  %4027 = vmatprep.mubr.msk.bf16.mxu1 %vm4911_vm5, %v4910_v52 }
 0xb15   :  { %s4364_s0 = spop %4363 }
 0xb16   :  { %s1500_s28 = smul.f32 %s4364_s0, %s3684_s29  ;;  %s3696_s0 = sld [smem:[#allocation3 + $0x5]] }
 0xb18   :  { %v1501_v50 = vstv %s1500_s28 }
 0xba3   :  { %v1490_v28 = vpop.f32.mrf.mxu1 }
 0xba4   :  { %v1502_v53 = vmul.f32 %v1501_v50, %v1490_v28 }
 0xba5   :  { %v4001_v54 = vpop.f32.mrf.mxu1 }
 0xba6   :  { %v1511_v55 = vadd.f32 %v3688_v51, %v1502_v53  ;;  %v4671_v53 = vld [vmem:[%s5799_s10 + $0x8] sm:$0xff]   ;;  %v4672_v54 = vld [vmem:[%s5799_s10] sm:$0xff]  }
 0xba7   :  { %v1493_v56 = vpop.f32.mrf.mxu1  ;;  %4004 = vmatpush3.bf16.msra.mxu0 %v4671_v53  ;;  %v4679_v53 = vld [vmem:[%s5801_s12 + $0x8] sm:$0xff]  }
 0xba8   :  { %v5332_v58 = vadd.f32 %v4871_v57, %v1511_v55  ;;  %v1503_v59 = vmul.f32 %v1501_v50, %v1493_v56  ;;  %4005 = vmatprep.subr.bf16.mxu0 %v4910_v52 }
 0xba9   :  { %v4002_v60 = vpop.f32.mrf.mxu1 }
 0xbaa   :  { %v1512_v62 = vadd.f32 %v3688_v51, %v1503_v59  ;;  %v1517_v63 = vsel %vm78_vm0, %v5332_v58, 0.0 }
 0xbab   :  { %1518 = vadd.xlane.f32.xlu1 %v1517_v63  ;;  %4006 = vmatpush3.bf16.msra.mxu0 %v4672_v54  ;;  %v4680_v54 = vld [vmem:[%s5801_s12] sm:$0xff]  }
 0xbac   :  { %v5339_v2 = vadd.f32 %v4872_v1, %v1512_v62  ;;  %4031 = vmatprep.subr.bf16.mxu0 %v4910_v52 }
 0xbae   :  { %v1520_v3 = vsel %vm78_vm0, %v5339_v2, 0.0 }
 0xbaf   :  { %1521 = vadd.xlane.f32.xlu0 %v1520_v3 }
 0xc34   :  { %v1519_v4 = vpop.xlane.xlu1 %1518 }
 0xc35   :  { %v1523_v5 = vmul.f32 0.03125, %v1519_v4 }
 0xc37   :  { %v1525_v6 = vsub.f32 %v5332_v58, %v1523_v5 }
 0xc38   :  { %v1522_v7 = vpop.xlane.xlu0 %1521 }
 0xc39   :  { %v1524_v8 = vmul.f32 0.03125, %v1522_v7  ;;  %v1527_v12 = vmul.f32 %v1525_v6, %v1525_v6 }
 0xc3b   :  { %v1526_v13 = vsub.f32 %v5339_v2, %v1524_v8  ;;  %v1529_v14 = vsel %vm78_vm0, %v1527_v12, 0.0 }
 0xc3c   :  { %1530 = vadd.xlane.f32.xlu0 %v1529_v14 }
 0xc3d   :  { %v1528_v11 = vmul.f32 %v1526_v13, %v1526_v13 }
 0xc3f   :  { %v1532_v17 = vsel %vm78_vm0, %v1528_v11, 0.0 }
 0xc40   :  { %1533 = vadd.xlane.f32.xlu0 %v1532_v17 }
 0xcc5   :  { %v1531_v16 = vpop.xlane.xlu0 %1530 }
 0xcc6   :  { %v1535_v18 = vmul.f32 0.03125, %v1531_v16 }
 0xcc8   :  { %v1537_v19 = vadd.f32 1e-12, %v1535_v18 }
 0xcc9   :  { %v1534_v15 = vpop.xlane.xlu0 %1533 }
 0xcca   :  { %4759 = vrsqrt.f32 %v1537_v19  ;;  %v1536_v10 = vmul.f32 0.03125, %v1534_v15  ;;  %vm1541_vm7 = vcmp.eq.f32.partialorder %v1537_v19, inf  ;;  %v1544_v22 = vand.u32 2147483648, %v1537_v19 }
 0xccb   :  { %vm1543_vm9 = vcmp.eq.f32.partialorder %v1537_v19, 0.0 }
 0xccc   :  { %v1538_v20 = vadd.f32 1e-12, %v1536_v10  ;;  %v3695_v10 = vld [vmem:[%s5800_s11] ss:$0 sm:$0xff] }
 0xcce   :  { %4761 = vrsqrt.f32 %v1538_v20  ;;  %vm1548_vm10 = vcmp.eq.f32.partialorder %v1538_v20, inf  ;;  %v1551_v26 = vand.u32 2147483648, %v1538_v20  ;;  %vm1550_vm11 = vcmp.eq.f32.partialorder %v1538_v20, 0.0 }
 0xcd7   :  { %v4760_v9 = vpop.eup %4759 }
 0xcd8   :  { %v1540_v21 = vmul.f32 %v4760_v9, %v1537_v19 }
 0xcda   :  { %v1542_v0 = vsel %vm1541_vm7, %v1537_v19, %v1540_v21 }
 0xcdb   :  { %v1545_v24 = vsel %vm1543_vm9, %v1544_v22, %v1542_v0  ;;  %v4762_v27 = vpop.eup %4761 }
 0xcdc   :  { %4763 = vrcp.f32 %v1545_v24  ;;  %v1547_v25 = vmul.f32 %v4762_v27, %v1538_v20 }
 0xcde   :  { %v1549_v23 = vsel %vm1548_vm10, %v1538_v20, %v1547_v25 }
 0xcdf   :  { %v1552_v29 = vsel %vm1550_vm11, %v1551_v26, %v1549_v23 }
 0xce0   :  { %4765 = vrcp.f32 %v1552_v29 }
 0xce9   :  { %v4764_v30 = vpop.eup %4763 }
 0xcea   :  { %v1554_v31 = vmul.f32 %v4764_v30, %v1525_v6 }
 0xcec   :  { %v1563_v35 = vmul.f32 %v3689_v61, %v1554_v31 }
 0xced   :  { %v4766_v36 = vpop.eup %4765 }
 0xcee   :  { %v1556_v37 = vmul.f32 %v4766_v36, %v1526_v13  ;;  %v1571_v39 = vadd.f32 %v3690_v34, %v1563_v35 }
 0xcf0   :  { %v1564_v40 = vmul.f32 %v3689_v61, %v1556_v37  ;;  %v1573_v43 = vand.u32 2147483647, %v1571_v39 }
 0xcf2   :  { %v1572_v42 = vadd.f32 %v3690_v34, %v1564_v40  ;;  %v1575_v33 = vsel %vm78_vm0, %v1573_v43, -inf  ;;  %v4674_v43 = vld [vmem:[%s5801_s12 + $0x30] sm:$0xff]  }
 0xcf4   :  { %v1574_v44 = vand.u32 2147483647, %v1572_v42 }
 0xcf6   :  { %v1576_v45 = vsel %vm78_vm0, %v1574_v44, -inf  ;;  %v4675_v44 = vld [vmem:[%s5801_s12 + $0x28] sm:$0xff]  }
 0xcf7   :  { %v1577_v46 = vmax.f32 %v1575_v33, %v1576_v45  ;;  %v4676_v33 = vld [vmem:[%s5801_s12 + $0x20] sm:$0xff]  }
 0xcf9   :  { %1578 = vmax.xlane.f32.xlu1 %v1577_v46 }
 0xd82   :  { %v1579_v47 = vpop.xlane.xlu1 %1578 }
 0xd83   :  { %v1580_v48 = vrot.slane %v1579_v47, 4 }
 0xd85   :  { %v1581_v49 = vmax.f32 %v1579_v47, %v1580_v48 }
 0xd87   :  { %v1582_v32 = vrot.slane %v1581_v49, 2 }
 0xd89   :  { %v1583_v50 = vmax.f32 %v1581_v49, %v1582_v32 }
 0xd8b   :  { %v1584_v28 = vrot.slane %v1583_v50, 1 }
 0xd8d   :  { %v1585_v51 = vmax.f32 %v1583_v50, %v1584_v28  ;;  %v4677_v50 = vld [vmem:[%s5801_s12 + $0x18] sm:$0xff]  }
 0xd8f   :  { %4365 = vpush %v1585_v51  ;;  %v4678_v51 = vld [vmem:[%s5801_s12 + $0x10] sm:$0xff]  }
 0xdc0   :  { %s4366_s28 = spop %4365 }
 0xdc1   :  { %s1587_s14 = smax.f32 %s5839_s17, %s4366_s28 }
 0xdc2   :  { %v1588_v55 = vstv %s1587_s14 }
 0xdc3   :  { %4767 = vrcp.f32 %v1588_v55 }
 0xdd0   :  { %v4768_v56 = vpop.eup %4767 }
 0xdd1   :  { %4367 = vpush %v4768_v56 }
 0xe02   :  { %s4368_s15 = spop %4367 }
 0xe03   :  { %s1591_s27 = smul.f32 127.5, %s4368_s15 }
 0xe05   :  { %v1597_v57 = vstv %s1591_s27 }
 0xe06   :  { %v1598_v59 = vmul.f32 %v1597_v57, %v1571_v39  ;;  %v1599_v60 = vmul.f32 %v1597_v57, %v1572_v42  ;;  %4769 = vrcp.f32 %v1597_v57  ;;  %v4673_v42 = vld [vmem:[%s5801_s12 + $0x38] sm:$0xff]  }
 0xe07   :  { %4012 = vmatpush3.bf16.msra.mxu1 %v4673_v42 }
 0xe08   :  { %v4371_v62 = vcvt.f32.s32 %v1598_v59  ;;  %v4379_v63 = vcvt.f32.s32 %v1599_v60  ;;  %v4369_v3 = vand.u32 2147483647, %v1598_v59  ;;  %v4374_v6 = vand.u32 2147483648, %v1598_v59  ;;  %4013 = vmatprep.subr.bf16.mxu1 %v4910_v52 }
 0xe09   :  { %v4377_v7 = vand.u32 2147483647, %v1599_v60  ;;  %v4382_v12 = vand.u32 2147483648, %v1599_v60 }
 0xe0a   :  { %v4372_v1 = vcvt.s32.f32 %v4371_v62  ;;  %v4380_v4 = vcvt.s32.f32 %v4379_v63  ;;  %vm4370_vm12 = vcmp.lt.f32.partialorder %v4369_v3, 8388608.0 }
 0xe0b   :  { %vm4378_vm4 = vcmp.lt.f32.partialorder %v4377_v7, 8388608.0  ;;  %4014 = vmatpush3.bf16.msra.mxu1 %v4674_v43 }
 0xe0c   :  { %v4373_v5 = vand.u32 2147483647, %v4372_v1  ;;  %v4381_v8 = vand.u32 2147483647, %v4380_v4  ;;  %4015 = vmatprep.subr.bf16.mxu1 %v4910_v52 }
 0xe0e   :  { %v4375_v13 = vor.u32 %v4374_v6, %v4373_v5  ;;  %v4383_v14 = vor.u32 %v4382_v12, %v4381_v8 }
 0xe0f   :  { %4016 = vmatpush3.bf16.msra.mxu1 %v4675_v44 }
 0xe10   :  { %v4376_v11 = vsel %vm4370_vm12, %v4375_v13, %v1598_v59  ;;  %v4384_v17 = vsel %vm4378_vm4, %v4383_v14, %v1599_v60  ;;  %4017 = vmatprep.subr.bf16.mxu1 %v4910_v52 }
 0xe11   :  { %v1602_v16 = vpack.c.bf16 %v4384_v17, %v4376_v11 }
 0xe13   :  { %v4770_v18 = vpop.eup %4769  ;;  %4008 = vmatmul.mubr.msk.bf16.vlgmr.msra.gmra.mxu0 %vm78_vm0, %v1602_v16  ;;  %4018 = vmatpush3.bf16.msra.mxu1 %v4676_v33 }
 0xe14   :  { %4385 = vpush %v4770_v18  ;;  %4035 = vmatprep.mubr.msk.bf16.mxu0 %vm4911_vm5, %v4910_v52  ;;  %4019 = vmatprep.subr.bf16.mxu1 %v4910_v52 }
 0xe17   :  { %4020 = vmatpush3.bf16.msra.mxu1 %v4677_v50 }
 0xe18   :  { %4021 = vmatprep.subr.bf16.mxu1 %v4910_v52 }
 0xe1b   :  { %4022 = vmatpush3.bf16.msra.mxu1 %v4678_v51 }
 0xe1c   :  { %4023 = vmatprep.subr.bf16.mxu1 %v4910_v52 }
 0xe1f   :  { %4024 = vmatpush3.bf16.msra.mxu1 %v4679_v53 }
 0xe20   :  { %4025 = vmatprep.subr.bf16.mxu1 %v4910_v52 }
 0xe23   :  { %4026 = vmatpush3.bf16.msra.mxu1 %v4680_v54 }
 0xe24   :  { %4057 = vmatprep.subr.bf16.mxu1 %v4910_v52 }
 0xe45   :  { %s4386_s23 = spop %4385 }
 0xe46   :  { %s1662_s24 = smul.f32 %s4386_s23, %s3691_s22 }
 0xe48   :  { %v1663_v19 = vstv %s1662_s24 }
 0xed3   :  { %v1652_v15 = vpop.f32.mrf.mxu0 }
 0xed4   :  { %v1664_v20 = vmul.f32 %v1663_v19, %v1652_v15 }
 0xed5   :  { %v4009_v9 = vpop.f32.mrf.mxu0 }
 0xed6   :  { %v1673_v21 = vadd.f32 %v3695_v10, %v1664_v20 }
 0xed7   :  { %v1655_v22 = vpop.f32.mrf.mxu0 }
 0xed8   :  { %v1677_v0 = vmul.f32 0.70710677, %v1673_v21  ;;  %v1665_v24 = vmul.f32 %v1663_v19, %v1655_v22  ;;  %v1675_v30 = vmul.f32 0.5, %v1673_v21 }
 0xed9   :  { %v4010_v27 = vpop.f32.mrf.mxu0 }
 0xeda   :  { %4771 = verf.f32 %v1677_v0  ;;  %v1674_v25 = vadd.f32 %v3695_v10, %v1665_v24  ;;  %v3705_v10 = vld [vmem:[%s5802_s13] ss:$0 sm:$0xff] }
 0xedc   :  { %v1678_v26 = vmul.f32 0.70710677, %v1674_v25  ;;  %v1676_v31 = vmul.f32 0.5, %v1674_v25 }
 0xede   :  { %4773 = verf.f32 %v1678_v26 }
 0xee7   :  { %v4772_v23 = vpop.eup %4771 }
 0xee8   :  { %v1681_v29 = vadd.f32 1.0, %v4772_v23 }
 0xeea   :  { %v1683_v35 = vmul.f32 %v1681_v29, %v1675_v30 }
 0xeeb   :  { %v4774_v61 = vpop.eup %4773 }
 0xeec   :  { %v1682_v34 = vadd.f32 1.0, %v4774_v61  ;;  %v1685_v37 = vand.u32 2147483647, %v1683_v35 }
 0xeee   :  { %v1684_v36 = vmul.f32 %v1682_v34, %v1676_v31 }
 0xef0   :  { %v1686_v39 = vand.u32 2147483647, %v1684_v36 }
 0xef2   :  { %v1687_v40 = vmax.f32.f32 %v1685_v37, %v1686_v39 }
 0xef4   :  { %1688 = vmax.xlane.f32.xlu0 %v1687_v40 }
 0xf7d   :  { %v1689_v45 = vpop.xlane.xlu0 %1688 }
 0xf7e   :  { %v1690_v46 = vrot.slane %v1689_v45, 4 }
 0xf80   :  { %v1691_v47 = vmax.f32 %v1689_v45, %v1690_v46 }
 0xf82   :  { %v1692_v48 = vrot.slane %v1691_v47, 2 }
 0xf84   :  { %v1693_v49 = vmax.f32 %v1691_v47, %v1692_v48 }
 0xf86   :  { %v1694_v32 = vrot.slane %v1693_v49, 1 }
 0xf88   :  { %v1695_v28 = vmax.f32 %v1693_v49, %v1694_v32 }
 0xf8a   :  { %4387 = vpush %v1695_v28 }
 0xfbb   :  { %s4388_s16 = spop %4387 }
 0xfbc   :  { %s1697_s19 = smax.f32 %s5839_s17, %s4388_s16 }
 0xfbd   :  { %v1698_v55 = vstv %s1697_s19 }
 0xfbe   :  { %4775 = vrcp.f32 %v1698_v55 }
 0xfcb   :  { %v4776_v56 = vpop.eup %4775 }
 0xfcc   :  { %4389 = vpush %v4776_v56  ;;  %v3708_v56 = vld [vmem:[%s5791_s2 + $0x1] ss:$0 sm:$0xff] }
 0xffd   :  { %s4390_s26 = spop %4389 }
 0xffe   :  { %s1701_s29 = smul.f32 127.5, %s4390_s26 }
0x1000   :  { %v1719_v57 = vstv %s1701_s29 }
0x1001   :  { %v1720_v59 = vmul.f32 %v1719_v57, %v1683_v35  ;;  %v1721_v60 = vmul.f32 %v1719_v57, %v1684_v36  ;;  %4777 = vrcp.f32 %v1719_v57 }
0x1003   :  { %v4393_v62 = vcvt.f32.s32 %v1720_v59  ;;  %v4401_v63 = vcvt.f32.s32 %v1721_v60  ;;  %v4391_v4 = vand.u32 2147483647, %v1720_v59  ;;  %v4399_v5 = vand.u32 2147483647, %v1721_v60 }
0x1004   :  { %v4396_v7 = vand.u32 2147483648, %v1720_v59  ;;  %v4404_v12 = vand.u32 2147483648, %v1721_v60 }
0x1005   :  { %v4394_v1 = vcvt.s32.f32 %v4393_v62  ;;  %v4402_v3 = vcvt.s32.f32 %v4401_v63  ;;  %vm4392_vm6 = vcmp.lt.f32.partialorder %v4391_v4, 8388608.0  ;;  %vm4400_vm7 = vcmp.lt.f32.partialorder %v4399_v5, 8388608.0 }
0x1007   :  { %v4395_v6 = vand.u32 2147483647, %v4394_v1  ;;  %v4403_v8 = vand.u32 2147483647, %v4402_v3 }
0x1009   :  { %v4397_v13 = vor.u32 %v4396_v7, %v4395_v6  ;;  %v4405_v14 = vor.u32 %v4404_v12, %v4403_v8 }
0x100b   :  { %v4398_v11 = vsel %vm4392_vm6, %v4397_v13, %v1720_v59  ;;  %v4406_v17 = vsel %vm4400_vm7, %v4405_v14, %v1721_v60  ;;  %v3709_v59 = vld [vmem:[%s5792_s3 + $0x1] ss:$0 sm:$0xff] }
0x100c   :  { %v1724_v16 = vpack.c.bf16 %v4406_v17, %v4398_v11 }
0x100e   :  { %v4778_v18 = vpop.eup %4777  ;;  %4028 = vmatmul.mubr.bf16.vlgmr.msra.gmra.mxu1 %v1724_v16 }
0x100f   :  { %4407 = vpush %v4778_v18  ;;  %4059 = vmatprep.mubr.msk.bf16.mxu1 %vm4911_vm5, %v4910_v52 }
0x1040   :  { %s4408_s28 = spop %4407 }
0x1041   :  { %s1817_s14 = smul.f32 %s4408_s28, %s3696_s0  ;;  %s3720_s0 = sld [smem:[#allocation3 + $0x81]] }
0x1042   :  { %s3721_s28 = sld [smem:[#allocation3 + $0x82]] }
0x1043   :  { %v1818_v19 = vstv %s1817_s14 }
0x10ce   :  { %v1807_v15 = vpop.f32.mrf.mxu1 }
0x10cf   :  { %v1819_v20 = vmul.f32 %v1818_v19, %v1807_v15  ;;  %v4681_v15 = vld [vmem:[%s5795_s6 + $0x18] sm:$0xff]  }
0x10d0   :  { %v4029_v9 = vpop.f32.mrf.mxu1  ;;  %4032 = vmatpush3.bf16.msra.mxu0 %v4681_v15 }
0x10d1   :  { %v1828_v21 = vadd.f32 %v3705_v10, %v1819_v20  ;;  %4033 = vmatprep.subr.bf16.mxu0 %v4910_v52 }
0x10d2   :  { %v1810_v22 = vpop.f32.mrf.mxu1 }
0x10d3   :  { %v5409_v0 = vadd.f32 %v1828_v21, %v5332_v58  ;;  %v1820_v24 = vmul.f32 %v1818_v19, %v1810_v22 }
0x10d4   :  { %v4030_v27 = vpop.f32.mrf.mxu1 }
0x10d5   :  { %v1829_v25 = vadd.f32 %v3705_v10, %v1820_v24  ;;  %v1836_v26 = vsel %vm78_vm0, %v5409_v0, 0.0  ;;  %v4682_v10 = vld [vmem:[%s5795_s6 + $0x10] sm:$0xff]   ;;  %s3718_s6 = sld [smem:[#allocation3 + $0x80]] }
0x10d6   :  { %1837 = vadd.xlane.f32.xlu1 %v1836_v26  ;;  %4034 = vmatpush3.bf16.msra.mxu0 %v4682_v10 }
0x10d7   :  { %v5414_v23 = vadd.f32 %v1829_v25, %v5339_v2  ;;  %4039 = vmatprep.subr.bf16.mxu0 %v4910_v52 }
0x10d9   :  { %v1839_v29 = vsel %vm78_vm0, %v5414_v23, 0.0 }
0x10da   :  { %1840 = vadd.xlane.f32.xlu0 %v1839_v29 }
0x115f   :  { %v1838_v30 = vpop.xlane.xlu1 %1837 }
0x1160   :  { %v1842_v61 = vmul.f32 0.03125, %v1838_v30 }
0x1162   :  { %v1844_v31 = vsub.f32 %v5409_v0, %v1842_v61 }
0x1163   :  { %v1841_v58 = vpop.xlane.xlu0 %1840 }
0x1164   :  { %v1843_v34 = vmul.f32 0.03125, %v1841_v58  ;;  %v1846_v35 = vmul.f32 %v1844_v31, %v1844_v31 }
0x1166   :  { %v1845_v36 = vsub.f32 %v5414_v23, %v1843_v34  ;;  %v1848_v37 = vsel %vm78_vm0, %v1846_v35, 0.0 }
0x1167   :  { %1849 = vadd.xlane.f32.xlu1 %v1848_v37 }
0x1168   :  { %v1847_v39 = vmul.f32 %v1845_v36, %v1845_v36 }
0x116a   :  { %v1851_v2 = vsel %vm78_vm0, %v1847_v39, 0.0 }
0x116b   :  { %1852 = vadd.xlane.f32.xlu0 %v1851_v2 }
0x11f0   :  { %v1850_v40 = vpop.xlane.xlu1 %1849 }
0x11f1   :  { %v1854_v42 = vmul.f32 0.03125, %v1850_v40 }
0x11f3   :  { %v1856_v43 = vadd.f32 1e-12, %v1854_v42 }
0x11f4   :  { %v1853_v44 = vpop.xlane.xlu0 %1852 }
0x11f5   :  { %4779 = vrsqrt.f32 %v1856_v43  ;;  %v1855_v33 = vmul.f32 0.03125, %v1853_v44  ;;  %vm1860_vm9 = vcmp.eq.f32.partialorder %v1856_v43, inf  ;;  %v1863_v48 = vand.u32 2147483648, %v1856_v43 }
0x11f6   :  { %vm1862_vm10 = vcmp.eq.f32.partialorder %v1856_v43, 0.0 }
0x11f7   :  { %v1857_v45 = vadd.f32 1e-12, %v1855_v33 }
0x11f9   :  { %4781 = vrsqrt.f32 %v1857_v45  ;;  %vm1867_vm11 = vcmp.eq.f32.partialorder %v1857_v45, inf  ;;  %v1870_v51 = vand.u32 2147483648, %v1857_v45  ;;  %vm1869_vm12 = vcmp.eq.f32.partialorder %v1857_v45, 0.0 }
0x1202   :  { %v4780_v46 = vpop.eup %4779 }
0x1203   :  { %v1859_v47 = vmul.f32 %v4780_v46, %v1856_v43  ;;  %v3719_v46 = vld [vmem:[%s5796_s7 + $0x1] ss:$0 sm:$0xff] }
0x1205   :  { %v1861_v49 = vsel %vm1860_vm9, %v1856_v43, %v1859_v47 }
0x1206   :  { %v1864_v32 = vsel %vm1862_vm10, %v1863_v48, %v1861_v49  ;;  %v4782_v50 = vpop.eup %4781 }
0x1207   :  { %4783 = vrcp.f32 %v1864_v32  ;;  %v1866_v28 = vmul.f32 %v4782_v50, %v1857_v45 }
0x1209   :  { %v1868_v53 = vsel %vm1867_vm11, %v1857_v45, %v1866_v28 }
0x120a   :  { %v1871_v54 = vsel %vm1869_vm12, %v1870_v51, %v1868_v53 }
0x120b   :  { %4785 = vrcp.f32 %v1871_v54 }
0x1214   :  { %v4784_v55 = vpop.eup %4783 }
0x1215   :  { %v1873_v57 = vmul.f32 %v4784_v55, %v1844_v31 }
0x1217   :  { %v1882_v60 = vmul.f32 %v3708_v56, %v1873_v57 }
0x1218   :  { %v4786_v62 = vpop.eup %4785 }
0x1219   :  { %v1875_v63 = vmul.f32 %v4786_v62, %v1845_v36  ;;  %v1890_v1 = vadd.f32 %v3709_v59, %v1882_v60 }
0x121b   :  { %v1883_v3 = vmul.f32 %v3708_v56, %v1875_v63  ;;  %v1892_v5 = vand.u32 2147483647, %v1890_v1 }
0x121d   :  { %v1891_v4 = vadd.f32 %v3709_v59, %v1883_v3  ;;  %v1894_v7 = vsel %vm78_vm0, %v1892_v5, -inf }
0x121f   :  { %v1893_v6 = vand.u32 2147483647, %v1891_v4 }
0x1221   :  { %v1895_v8 = vsel %vm78_vm0, %v1893_v6, -inf }
0x1222   :  { %v1896_v12 = vmax.f32 %v1894_v7, %v1895_v8 }
0x1224   :  { %1897 = vmax.xlane.f32.xlu1 %v1896_v12 }
0x12ad   :  { %v1898_v13 = vpop.xlane.xlu1 %1897 }
0x12ae   :  { %v1899_v14 = vrot.slane %v1898_v13, 4 }
0x12b0   :  { %v1900_v11 = vmax.f32 %v1898_v13, %v1899_v14 }
0x12b2   :  { %v1901_v17 = vrot.slane %v1900_v11, 2 }
0x12b4   :  { %v1902_v16 = vmax.f32 %v1900_v11, %v1901_v17 }
0x12b6   :  { %v1903_v18 = vrot.slane %v1902_v16, 1 }
0x12b8   :  { %v1904_v19 = vmax.f32 %v1902_v16, %v1903_v18 }
0x12ba   :  { %4409 = vpush %v1904_v19 }
0x12eb   :  { %s4410_s16 = spop %4409 }
0x12ec   :  { %s1906_s19 = smax.f32 %s5839_s17, %s4410_s16 }
0x12ed   :  { %v1907_v20 = vstv %s1906_s19 }
0x12ee   :  { %4787 = vrcp.f32 %v1907_v20 }
0x12fb   :  { %v4788_v9 = vpop.eup %4787 }
0x12fc   :  { %4411 = vpush %v4788_v9 }
0x132d   :  { %s4412_s26 = spop %4411 }
0x132e   :  { %s1910_s29 = smul.f32 127.5, %s4412_s26  ;;  %s5840_s26 = smov 88  }
0x1330   :  { %v1911_v21 = vstv %s1910_s29  ;;  %s5841_s29 = smov 96  }
0x1331   :  { %v1912_v22 = vmul.f32 %v1911_v21, %v1890_v1  ;;  %v1913_v24 = vmul.f32 %v1911_v21, %v1891_v4  ;;  %4789 = vrcp.f32 %v1911_v21 }
0x1333   :  { %v4415_v27 = vcvt.f32.s32 %v1912_v22  ;;  %v4423_v25 = vcvt.f32.s32 %v1913_v24  ;;  %v4413_v29 = vand.u32 2147483647, %v1912_v22  ;;  %v4418_v31 = vand.u32 2147483648, %v1912_v22 }
0x1334   :  { %v4421_v58 = vand.u32 2147483647, %v1913_v24  ;;  %v4426_v35 = vand.u32 2147483648, %v1913_v24 }
0x1335   :  { %v4416_v26 = vcvt.s32.f32 %v4415_v27  ;;  %v4424_v30 = vcvt.s32.f32 %v4423_v25  ;;  %vm4414_vm4 = vcmp.lt.f32.partialorder %v4413_v29, 8388608.0 }
0x1336   :  { %vm4422_vm6 = vcmp.lt.f32.partialorder %v4421_v58, 8388608.0 }
0x1337   :  { %v4417_v61 = vand.u32 2147483647, %v4416_v26  ;;  %v4425_v34 = vand.u32 2147483647, %v4424_v30 }
0x1339   :  { %v4419_v36 = vor.u32 %v4418_v31, %v4417_v61  ;;  %v4427_v37 = vor.u32 %v4426_v35, %v4425_v34 }
0x133b   :  { %v4420_v39 = vsel %vm4414_vm4, %v4419_v36, %v1912_v22  ;;  %v4428_v2 = vsel %vm4422_vm6, %v4427_v37, %v1913_v24 }
0x133c   :  { %v1916_v40 = vpack.c.bf16 %v4428_v2, %v4420_v39 }
0x133e   :  { %v4790_v42 = vpop.eup %4789  ;;  %4036 = vmatmul.mubr.msk.bf16.vlgmr.msra.gmra.mxu0 %vm78_vm0, %v1916_v40 }
0x133f   :  { %4429 = vpush %v4790_v42  ;;  %4041 = vmatprep.mubr.msk.bf16.mxu0 %vm4911_vm5, %v4910_v52 }
0x1370   :  { %s4430_s14 = spop %4429 }
0x1371   :  { %s1984_s15 = smul.f32 %s4430_s14, %s3718_s6  ;;  %s5842_s6 = smov 72  }
0x1372   :  { %s1997_s27 = smul.f32 %s4430_s14, %s3720_s0  ;;  %s5843_s0 = smov 120  }
0x1373   :  { %s2004_s22 = smul.f32 %s4430_s14, %s3721_s28  ;;  %v1985_v43 = vstv %s1984_s15  ;;  %s5844_s28 = smov 80  }
0x1374   :  { %v1998_v44 = vstv %s1997_s27  ;;  %s5845_s14 = smov 112   ;;  %s5846_s15 = smov 104  }
0x1375   :  { %v2005_v33 = vstv %s2004_s22 }
0x13fe   :  { %v1971_v45 = vpop.f32.mrf.mxu0 }
0x13ff   :  { %v1986_v47 = vmul.f32 %v1985_v43, %v1971_v45  ;;  %v1999_v48 = vmul.f32 %v1998_v44, %v1971_v45  ;;  %v2006_v49 = vmul.f32 %v2005_v33, %v1971_v45 }
0x1400   :  { %v4037_v32 = vpop.f32.mrf.mxu0 }
0x1401   :  { %v1994_v50 = vadd.f32 %v3719_v46, %v1986_v47  ;;  %v2001_v28 = vadd.f32 %v3719_v46, %v1999_v48  ;;  %v5445_v51 = vadd.f32 %v3719_v46, %v2006_v49 }
0x1402   :  { %v1974_v53 = vpop.f32.mrf.mxu0 }
0x1403   :  { %v1987_v54 = vmul.f32 %v1985_v43, %v1974_v53  ;;  %v2000_v55 = vmul.f32 %v1998_v44, %v1974_v53  ;;  %v2007_v56 = vmul.f32 %v2005_v33, %v1974_v53  ;;  %v2029_v59 = vand.u32 2147483647, %v2001_v28 }
0x1404   :  { %v4038_v57 = vpop.f32.mrf.mxu0  ;;  %v2010_v1 = vand.u32 2147483647, %v1994_v50 }
0x1405   :  { %v1995_v60 = vadd.f32 %v3719_v46, %v1987_v54  ;;  %v2002_v62 = vadd.f32 %v3719_v46, %v2000_v55  ;;  %v5447_v63 = vadd.f32 %v3719_v46, %v2007_v56  ;;  %v2031_v5 = vsel %vm273_vm8, %v2029_v59, -inf }
0x1406   :  { %v2012_v7 = vsel %vm78_vm0, %v2010_v1, -inf }
0x1407   :  { %v2030_v3 = vand.u32 2147483647, %v2002_v62  ;;  %v2011_v4 = vand.u32 2147483647, %v1995_v60 }
0x1409   :  { %v2032_v6 = vsel %vm273_vm8, %v2030_v3, -inf  ;;  %v2013_v8 = vsel %vm78_vm0, %v2011_v4, -inf }
0x140a   :  { %v2033_v12 = vmax.f32 %v2031_v5, %v2032_v6  ;;  %v2014_v13 = vmax.f32 %v2012_v7, %v2013_v8 }
0x140c   :  { %2034 = vmax.xlane.f32.xlu1 %v2033_v12  ;;  %2015 = vmax.xlane.f32.xlu0 %v2014_v13  ;;  %v2049_v13 = vand.u32 2147483647, %v5447_v63 }
0x1495   :  { %v2016_v14 = vpop.xlane.xlu0 %2015  ;;  %v2035_v10 = vpop.xlane.xlu1 %2034 }
0x1496   :  { %v2017_v11 = vrot.slane %v2016_v14, 4  ;;  %v2036_v20 = vrot.slane %v2035_v10, 4 }
0x1498   :  { %v2018_v17 = vmax.f32 %v2016_v14, %v2017_v11  ;;  %v2037_v9 = vmax.f32 %v2035_v10, %v2036_v20  ;;  %v2048_v14 = vand.u32 2147483647, %v5445_v51  ;;  %v2051_v11 = vsel %vm293_vm13, %v2049_v13, -inf }
0x149a   :  { %v2019_v16 = vrot.slane %v2018_v17, 2  ;;  %v2038_v22 = vrot.slane %v2037_v9, 2 }
0x149c   :  { %v2020_v18 = vmax.f32 %v2018_v17, %v2019_v16  ;;  %v2039_v24 = vmax.f32 %v2037_v9, %v2038_v22  ;;  %v2050_v17 = vsel %vm293_vm13, %v2048_v14, -inf }
0x149d   :  { %v2052_v16 = vmax.f32 %v2050_v17, %v2051_v11 }
0x149e   :  { %v2021_v19 = vrot.slane %v2020_v18, 1  ;;  %v2040_v27 = vrot.slane %v2039_v24, 1 }
0x14a0   :  { %v2022_v15 = vmax.f32 %v2020_v18, %v2021_v19  ;;  %v2041_v26 = vmax.f32 %v2039_v24, %v2040_v27 }
0x14a2   :  { %4431 = vpush %v2022_v15 }
0x14d3   :  { %s4432_s7 = spop %4431 }
0x14d4   :  { %s2024_s30 = smax.f32 %s5839_s17, %s4432_s7 }
0x14d5   :  { %v2025_v21 = vstv %s2024_s30 }
0x14d6   :  { %4791 = vrcp.f32 %v2025_v21 }
0x14e3   :  { %v4792_v25 = vpop.eup %4791 }
0x14e4   :  { %4433 = vpush %v4792_v25 }
0x14e5   :  { %4435 = vpush %v2041_v26 }
0x1515   :  { %s4434_s2 = spop %4433 }
0x1516   :  { %s4436_s3 = spop %4435  ;;  %s2028_s18 = smul.f32 127.5, %s4434_s2 }
0x1517   :  { %s2043_s25 = smax.f32 %s5839_s17, %s4436_s3 }
0x1518   :  { %v2044_v29 = vstv %s2043_s25  ;;  %v5455_v61 = vstv %s2028_s18  ;;  %s5847_s25 = smov 56   ;;  %s5848_s18 = smov 64  }
0x1519   :  { %4793 = vrcp.f32 %v2044_v29  ;;  %v2075_v31 = vmul.f32 %v5455_v61, %v1994_v50  ;;  %v2336_v42 = vmul.f32 %v5455_v61, %v1995_v60 }
0x151b   :  { %v4449_v58 = vcvt.f32.s32 %v2075_v31  ;;  %v4452_v45 = vand.u32 2147483648, %v2075_v31  ;;  %v4447_v48 = vand.u32 2147483647, %v2075_v31  ;;  %v4465_v49 = vcvt.f32.s32 %v2336_v42 }
0x151c   :  { %v4468_v4 = vand.u32 2147483648, %v2336_v42  ;;  %v4463_v6 = vand.u32 2147483647, %v2336_v42 }
0x151d   :  { %v4450_v35 = vcvt.s32.f32 %v4449_v58  ;;  %vm4448_vm7 = vcmp.lt.f32.partialorder %v4447_v48, 8388608.0  ;;  %v4466_v57 = vcvt.s32.f32 %v4465_v49 }
0x151e   :  { %vm4464_vm10 = vcmp.lt.f32.partialorder %v4463_v6, 8388608.0 }
0x151f   :  { %v4451_v40 = vand.u32 2147483647, %v4450_v35  ;;  %v4467_v1 = vand.u32 2147483647, %v4466_v57 }
0x1521   :  { %v4453_v53 = vor.u32 %v4452_v45, %v4451_v40  ;;  %v4469_v7 = vor.u32 %v4468_v4, %v4467_v1 }
0x1523   :  { %v4454_v59 = vsel %vm4448_vm7, %v4453_v53, %v2075_v31  ;;  %v4470_v8 = vsel %vm4464_vm10, %v4469_v7, %v2336_v42 }
0x1524   :  { %v2338_v12 = vpack.c.bf16 %v4470_v8, %v4470_v8 }
0x1526   :  { %v4794_v30 = vpop.eup %4793 }
0x1527   :  { %4437 = vpush %v4794_v30 }
0x1558   :  { %s4438_s16 = spop %4437 }
0x1559   :  { %s2047_s19 = smul.f32 127.5, %s4438_s16  ;;  %s5849_s16 = smov 48  }
0x155b   :  { %v5458_v34 = vstv %s2047_s19  ;;  %s5850_s19 = smov 40  }
0x155c   :  { %v2079_v36 = vmul.f32 %v5458_v34, %v2001_v28  ;;  %v2339_v37 = vmul.f32 %v5458_v34, %v2002_v62  ;;  %v2077_v62 = vpack.c.bf16 %v4454_v59, %v4454_v59 }
0x155e   :  { %v4457_v39 = vcvt.f32.s32 %v2079_v36  ;;  %v4473_v2 = vcvt.f32.s32 %v2339_v37  ;;  %v4455_v33 = vand.u32 2147483647, %v2079_v36  ;;  %v4460_v47 = vand.u32 2147483648, %v2079_v36 }
0x155f   :  { %v4476_v28 = vand.u32 2147483648, %v2339_v37  ;;  %v4471_v56 = vand.u32 2147483647, %v2339_v37 }
0x1560   :  { %v4458_v43 = vcvt.s32.f32 %v4457_v39  ;;  %v4474_v44 = vcvt.s32.f32 %v4473_v2  ;;  %vm4456_vm8 = vcmp.lt.f32.partialorder %v4455_v33, 8388608.0 }
0x1561   :  { %vm4472_vm9 = vcmp.lt.f32.partialorder %v4471_v56, 8388608.0 }
0x1562   :  { %v4459_v46 = vand.u32 2147483647, %v4458_v43  ;;  %v4475_v32 = vand.u32 2147483647, %v4474_v44 }
0x1564   :  { %v4461_v50 = vor.u32 %v4460_v47, %v4459_v46  ;;  %v4477_v60 = vor.u32 %v4476_v28, %v4475_v32 }
0x1566   :  { %v4462_v54 = vsel %vm4456_vm8, %v4461_v50, %v2079_v36  ;;  %v4478_v3 = vsel %vm4472_vm9, %v4477_v60, %v2339_v37 }
0x1567   :  { %v2081_v55 = vpack.c.bf16 %v4462_v54, %v4462_v54  ;;  %v2341_v5 = vpack.c.bf16 %v4478_v3, %v4478_v3 }
0x1569   :  { %2149 = vrot.lane.b32.xlu1 %v2081_v55, %s5840_s26  ;;  %2083 = vrot.lane.b32.xlu0 %v2081_v55, %s5841_s29 }
0x156d   :  { %2275 = vrot.lane.b32.xlu0 %v2081_v55, %s5842_s6  ;;  %2147 = vrot.lane.b32.xlu1 %v2077_v62, %s5843_s0 }
0x1571   :  { %2343 = vrot.lane.b32.xlu0 %v2341_v5, %s5841_s29  ;;  %2212 = vrot.lane.b32.xlu1 %v2081_v55, %s5844_s28 }
0x1575   :  { %2407 = vrot.lane.b32.xlu0 %v2341_v5, %s5840_s26  ;;  %2210 = vrot.lane.b32.xlu1 %v2077_v62, %s5845_s14 }
0x1579   :  { %2405 = vrot.lane.b32.xlu0 %v2338_v12, %s5843_s0  ;;  %2273 = vrot.lane.b32.xlu1 %v2077_v62, %s5846_s15 }
0x157d   :  { %2468 = vrot.lane.b32.xlu0 %v2338_v12, %s5845_s14  ;;  %2470 = vrot.lane.b32.xlu1 %v2341_v5, %s5844_s28 }
0x1581   :  { %2533 = vrot.lane.b32.xlu1 %v2341_v5, %s5842_s6 }
0x1585   :  { %2531 = vrot.lane.b32.xlu1 %v2338_v12, %s5846_s15 }
0x159c   :  { %2053 = vmax.xlane.f32.xlu0 %v2052_v16 }
0x15db   :  { %v2150_v18 = vpop.permute.xlu1 %2149  ;;  %v2084_v19 = vpop.permute.xlu0 %2083 }
0x15dc   :  { %v2089_v15 = vsel %vm329_vm14, %v2084_v19, 0  ;;  %v2155_v24 = vsel %vm329_vm14, %v2150_v18, 0 }
0x15dd   :  { %4040 = vmatpush3.bf16.xpose.msra.mxu0 %v2089_v15 }
0x15de   :  { %4045 = vmatprep.subr.bf16.mxu0 %v4910_v52 }
0x15df   :  { %v2276_v10 = vpop.permute.xlu0 %2275  ;;  %v2148_v20 = vpop.permute.xlu1 %2147 }
0x15e0   :  { %v2281_v9 = vsel %vm329_vm14, %v2276_v10, 0 }
0x15e1   :  { %4058 = vmatpush3.bf16.xpose.msra.mxu1 %v2281_v9 }
0x15e2   :  { %4069 = vmatprep.subr.bf16.mxu1 %v4910_v52 }
0x15e3   :  { %v2344_v21 = vpop.permute.xlu0 %2343  ;;  %v2213_v22 = vpop.permute.xlu1 %2212 }
0x15e4   :  { %4042 = vmatmul.mubr.msk.bf16.vlgmr.msra.gmra.mxu0 %vm329_vm14, %v2077_v62  ;;  %v2218_v29 = vsel %vm329_vm14, %v2213_v22, 0  ;;  %v2349_v36 = vsel %vm329_vm14, %v2344_v21, 0 }
0x15e5   :  { %4046 = vmatpush3.bf16.xpose.msra.mxu0 %v2155_v24  ;;  %4047 = vmatprep.mubr.msk.bf16.mxu0 %vm4911_vm5, %v4910_v52 }
0x15e6   :  { %4051 = vmatprep.subr.bf16.mxu0 %v4910_v52 }
0x15e7   :  { %v2211_v27 = vpop.permute.xlu1 %2210  ;;  %v2408_v25 = vpop.permute.xlu0 %2407 }
0x15e8   :  { %v2413_v30 = vsel %vm329_vm14, %v2408_v25, 0 }
0x15eb   :  { %v2274_v26 = vpop.permute.xlu1 %2273  ;;  %v2406_v58 = vpop.permute.xlu0 %2405 }
0x15ec   :  { %4048 = vmatmul.mubr.msk.bf16.vlgmr.msra.gmra.mxu0 %vm329_vm14, %v2148_v20  ;;  %4060 = vmatmul.mubr.msk.bf16.vlgmr.msra.gmra.mxu1 %vm329_vm14, %v2274_v26 }
0x15ed   :  { %4070 = vmatpush3.bf16.xpose.msra.mxu1 %v2413_v30  ;;  %4052 = vmatpush3.bf16.xpose.msra.mxu0 %v2218_v29 }
0x15ee   :  { %4071 = vmatprep.mubr.msk.bf16.mxu1 %vm4911_vm5, %v4910_v52  ;;  %4053 = vmatprep.mubr.msk.bf16.mxu0 %vm4911_vm5, %v4910_v52 }
0x15ef   :  { %v2471_v31 = vpop.permute.xlu1 %2470  ;;  %4063 = vmatprep.subr.bf16.mxu0 %v4910_v52  ;;  %4081 = vmatprep.subr.bf16.mxu1 %v4910_v52  ;;  %v2469_v40 = vpop.permute.xlu0 %2468 }
0x15f0   :  { %v2476_v2 = vsel %vm329_vm14, %v2471_v31, 0 }
0x15f3   :  { %v2534_v35 = vpop.permute.xlu1 %2533 }
0x15f4   :  { %v2539_v37 = vsel %vm329_vm14, %v2534_v35, 0  ;;  %4054 = vmatmul.mubr.msk.bf16.vlgmr.msra.gmra.mxu0 %vm329_vm14, %v2211_v27  ;;  %4072 = vmatmul.mubr.msk.bf16.vlgmr.msra.gmra.mxu1 %vm329_vm14, %v2406_v58 }
0x15f5   :  { %4064 = vmatpush3.bf16.xpose.msra.mxu0 %v2349_v36  ;;  %4082 = vmatpush3.bf16.xpose.msra.mxu1 %v2539_v37 }
0x15f6   :  { %4065 = vmatprep.mubr.msk.bf16.mxu0 %vm4911_vm5, %v4910_v52  ;;  %4083 = vmatprep.mubr.msk.bf16.mxu1 %vm4911_vm5, %v4910_v52 }
0x15f7   :  { %4075 = vmatprep.subr.bf16.mxu0 %v4910_v52  ;;  %4093 = vmatprep.subr.bf16.mxu1 %v4910_v52  ;;  %v2532_v39 = vpop.permute.xlu1 %2531 }
0x15fc   :  { %4066 = vmatmul.mubr.msk.bf16.vlgmr.msra.gmra.mxu0 %vm329_vm14, %v2338_v12  ;;  %4084 = vmatmul.mubr.msk.bf16.vlgmr.msra.gmra.mxu1 %vm329_vm14, %v2532_v39 }
0x15fd   :  { %4076 = vmatpush3.bf16.xpose.msra.mxu0 %v2476_v2  ;;  %4077 = vmatprep.mubr.msk.bf16.mxu0 %vm4911_vm5, %v4910_v52 }
0x15fe   :  { %4087 = vmatprep.subr.bf16.mxu0 %v4910_v52  ;;  %4095 = vmatprep.mubr.msk.bf16.mxu1 %vm4911_vm5, %v4910_v52 }
0x1604   :  { %4078 = vmatmul.mubr.msk.bf16.vlgmr.msra.gmra.mxu0 %vm329_vm14, %v2469_v40 }
0x1605   :  { %4089 = vmatprep.mubr.msk.bf16.mxu0 %vm4911_vm5, %v4910_v52 }
0x1625   :  { %v2054_v42 = vpop.xlane.xlu0 %2053 }
0x1626   :  { %v2055_v43 = vrot.slane %v2054_v42, 4 }
0x1628   :  { %v2056_v44 = vmax.f32 %v2054_v42, %v2055_v43 }
0x162a   :  { %v2057_v33 = vrot.slane %v2056_v44, 2 }
0x162c   :  { %v2058_v45 = vmax.f32 %v2056_v44, %v2057_v33 }
0x162e   :  { %v2059_v46 = vrot.slane %v2058_v45, 1 }
0x1630   :  { %v2060_v47 = vmax.f32 %v2058_v45, %v2059_v46 }
0x1632   :  { %4439 = vpush %v2060_v47 }
0x1663   :  { %s4440_s27 = spop %4439 }
0x1664   :  { %s2062_s22 = smax.f32 %s5839_s17, %s4440_s27 }
0x1665   :  { %v2063_v48 = vstv %s2062_s22 }
0x1666   :  { %4795 = vrcp.f32 %v2063_v48 }
0x1667   :  { %4797 = vrcp.f32 %v5455_v61 }
0x1668   :  { %4799 = vrcp.f32 %v5458_v34 }
0x1673   :  { %v4796_v49 = vpop.eup %4795 }
0x1674   :  { %v4798_v32 = vpop.eup %4797  ;;  %4441 = vpush %v4796_v49 }
0x1675   :  { %v4800_v50 = vpop.eup %4799  ;;  %4443 = vpush %v4798_v32 }
0x1676   :  { %4445 = vpush %v4800_v50 }
0x16a4   :  { %v2125_v53 = vpop.f32.mrf.mxu0 }
0x16a5   :  { %s5524_s23 = spop %4441 }
0x16a6   :  { %s4444_s24 = spop %4443  ;;  %v4043_v28 = vpop.f32.mrf.mxu0  ;;  %s2066_s3 = smul.f32 127.5, %s5524_s23 }
0x16a7   :  { %s4446_s7 = spop %4445 }
0x16a8   :  { %s2073_s30 = smul.f32 %s4446_s7, %s4444_s24  ;;  %v2128_v54 = vpop.f32.mrf.mxu0 }
0x16aa   :  { %s2131_s2 = smul.f32 0.35355338, %s2073_s30  ;;  %v4044_v55 = vpop.f32.mrf.mxu0 }
0x16ac   :  { %v2132_v56 = vstv %s2131_s2  ;;  %v2191_v61 = vpop.f32.mrf.mxu0  ;;  %v2317_v57 = vpop.f32.mrf.mxu1 }
0x16ad   :  { %v2197_v34 = vmul.f32 %v2191_v61, %v2132_v56  ;;  %v2323_v59 = vmul.f32 %v2317_v57, %v2132_v56  ;;  %v2133_v1 = vmul.f32 %v2132_v56, %v2125_v53 }
0x16ae   :  { %v4049_v60 = vpop.f32.mrf.mxu0  ;;  %v4061_v62 = vpop.f32.mrf.mxu1 }
0x16af   :  { %v2324_v3 = vadd.f32 %v2323_v59, %v5149_v38  ;;  %v2134_v4 = vadd.f32 %v2133_v1, %v5149_v38  ;;  %v2198_v8 = vadd.f32 %v2197_v34, %v5149_v38 }
0x16b0   :  { %v2194_v5 = vpop.f32.mrf.mxu0  ;;  %v2320_v6 = vpop.f32.mrf.mxu1 }
0x16b1   :  { %v2325_v7 = vsel %vm329_vm14, %v2324_v3, -inf  ;;  %v2135_v12 = vsel %vm329_vm14, %v2134_v4, -inf  ;;  %v2199_v19 = vsel %vm329_vm14, %v2198_v8, -inf }
0x16b2   :  { %v4050_v13 = vpop.f32.mrf.mxu0  ;;  %2326 = vmax.xlane.f32.xlu0 %v2325_v7  ;;  %v4062_v14 = vpop.f32.mrf.mxu1  ;;  %2136 = vmax.xlane.f32.xlu1 %v2135_v12 }
0x16b4   :  { %v2254_v11 = vpop.f32.mrf.mxu0  ;;  %v2449_v17 = vpop.f32.mrf.mxu1 }
0x16b5   :  { %v2260_v16 = vmul.f32 %v2254_v11, %v2132_v56  ;;  %v2455_v18 = vmul.f32 %v2449_v17, %v2132_v56 }
0x16b6   :  { %v4055_v15 = vpop.f32.mrf.mxu0  ;;  %2200 = vmax.xlane.f32.xlu0 %v2199_v19  ;;  %v4073_v10 = vpop.f32.mrf.mxu1 }
0x16b7   :  { %v2261_v20 = vadd.f32 %v2260_v16, %v5149_v38  ;;  %v2456_v24 = vadd.f32 %v2455_v18, %v5151_v41 }
0x16b8   :  { %v2257_v9 = vpop.f32.mrf.mxu0  ;;  %v2452_v21 = vpop.f32.mrf.mxu1 }
0x16b9   :  { %v2262_v22 = vsel %vm329_vm14, %v2261_v20, -inf  ;;  %v2457_v58 = vsel %vm329_vm14, %v2456_v24, -inf }
0x16ba   :  { %v4056_v27 = vpop.f32.mrf.mxu0  ;;  %2263 = vmax.xlane.f32.xlu0 %v2262_v22  ;;  %v4074_v25 = vpop.f32.mrf.mxu1 }
0x16bc   :  { %v2385_v26 = vpop.f32.mrf.mxu0  ;;  %v2575_v29 = vpop.f32.mrf.mxu1 }
0x16bd   :  { %v2391_v30 = vmul.f32 %v2385_v26, %v2132_v56  ;;  %v2581_v31 = vmul.f32 %v2575_v29, %v2132_v56 }
0x16be   :  { %v4067_v35 = vpop.f32.mrf.mxu0  ;;  %2458 = vmax.xlane.f32.xlu0 %v2457_v58  ;;  %v4085_v36 = vpop.f32.mrf.mxu1 }
0x16bf   :  { %v2392_v38 = vadd.f32 %v2391_v30, %v5151_v41  ;;  %v2582_v37 = vadd.f32 %v2581_v31, %v5151_v41 }
0x16c0   :  { %v2388_v39 = vpop.f32.mrf.mxu0  ;;  %v2578_v2 = vpop.f32.mrf.mxu1 }
0x16c1   :  { %v2393_v40 = vsel %vm329_vm14, %v2392_v38, -inf  ;;  %v2583_v42 = vsel %vm329_vm14, %v2582_v37, -inf }
0x16c2   :  { %2394 = vmax.xlane.f32.xlu1 %v2393_v40  ;;  %v4068_v43 = vpop.f32.mrf.mxu0  ;;  %2584 = vmax.xlane.f32.xlu0 %v2583_v42  ;;  %v4086_v44 = vpop.f32.mrf.mxu1 }
0x16c4   :  { %v2512_v33 = vpop.f32.mrf.mxu0 }
0x16c5   :  { %v2518_v45 = vmul.f32 %v2512_v33, %v2132_v56 }
0x16c6   :  { %v4079_v46 = vpop.f32.mrf.mxu0 }
0x16c7   :  { %v2519_v47 = vadd.f32 %v2518_v45, %v5151_v41 }
0x16c8   :  { %v2515_v48 = vpop.f32.mrf.mxu0 }
0x16c9   :  { %v2520_v49 = vsel %vm329_vm14, %v2519_v47, -inf }
0x16ca   :  { %2521 = vmax.xlane.f32.xlu1 %v2520_v49  ;;  %v4080_v32 = vpop.f32.mrf.mxu0 }
0x173b   :  { %v2327_v50 = vpop.xlane.xlu0 %2326  ;;  %v2137_v53 = vpop.xlane.xlu1 %2136 }
0x173c   :  { %v2328_v28 = vsub.f32 %v2324_v3, %v2327_v50  ;;  %v2138_v54 = vsub.f32 %v2134_v4, %v2137_v53 }
0x173e   :  { %v2329_v55 = vmul.f32 1.442695, %v2328_v28  ;;  %v2139_v61 = vmul.f32 1.442695, %v2138_v54  ;;  %v5569_v54 = vstv %s2066_s3 }
0x173f   :  { %v2201_v57 = vpop.xlane.xlu0 %2200 }
0x1740   :  { %4801 = vpow2.f32 %v2329_v55  ;;  %v2202_v34 = vsub.f32 %v2198_v8, %v2201_v57 }
0x1741   :  { %4803 = vpow2.f32 %v2139_v61 }
0x1742   :  { %v2203_v59 = vmul.f32 1.442695, %v2202_v34 }
0x1743   :  { %v2264_v56 = vpop.xlane.xlu0 %2263 }
0x1744   :  { %4805 = vpow2.f32 %v2203_v59  ;;  %v2265_v60 = vsub.f32 %v2261_v20, %v2264_v56  ;;  %v2698_v59 = vmul.f32 %v5569_v54, %v5445_v51 }
0x1746   :  { %v2266_v41 = vmul.f32 1.442695, %v2265_v60 }
0x1747   :  { %v2459_v62 = vpop.xlane.xlu0 %2458 }
0x1748   :  { %4807 = vpow2.f32 %v2266_v41  ;;  %v2460_v1 = vsub.f32 %v2456_v24, %v2459_v62  ;;  %v4511_v62 = vcvt.f32.s32 %v2698_v59 }
0x174a   :  { %v2461_v5 = vmul.f32 1.442695, %v2460_v1  ;;  %v2927_v1 = vmul.f32 %v5569_v54, %v5447_v63 }
0x174b   :  { %v2395_v6 = vpop.xlane.xlu1 %2394  ;;  %v2585_v7 = vpop.xlane.xlu0 %2584 }
0x174c   :  { %4809 = vpow2.f32 %v2461_v5  ;;  %v2396_v3 = vsub.f32 %v2392_v38, %v2395_v6  ;;  %v2586_v4 = vsub.f32 %v2582_v37, %v2585_v7  ;;  %v4512_v7 = vcvt.s32.f32 %v4511_v62 }
0x174d   :  { %v4802_v12 = vpop.eup %4801 }
0x174e   :  { %v4804_v13 = vpop.eup %4803  ;;  %v2397_v14 = vmul.f32 1.442695, %v2396_v3  ;;  %v2587_v11 = vmul.f32 1.442695, %v2586_v4  ;;  %v2331_v8 = vsel %vm329_vm14, %v4802_v12, 0.0  ;;  %v4551_v3 = vcvt.f32.s32 %v2927_v1 }
0x174f   :  { %v2141_v17 = vsel %vm329_vm14, %v4804_v13, 0.0  ;;  %2332 = vadd.xlane.f32.xlu0 %v2331_v8  ;;  %v4513_v4 = vand.u32 2147483647, %v4512_v7 }
0x1750   :  { %4811 = vpow2.f32 %v2397_v14  ;;  %2142 = vadd.xlane.f32.xlu1 %v2141_v17  ;;  %v4509_v14 = vand.u32 2147483647, %v2698_v59  ;;  %v4554_v17 = vand.u32 2147483648, %v2927_v1 }
0x1751   :  { %v4806_v16 = vpop.eup %4805  ;;  %4813 = vpow2.f32 %v2587_v11 }
0x1752   :  { %v2205_v18 = vsel %vm329_vm14, %v4806_v16, 0.0  ;;  %vm4510_vm13 = vcmp.lt.f32.partialorder %v4509_v14, 8388608.0 }
0x1753   :  { %v2522_v19 = vpop.xlane.xlu1 %2521  ;;  %2206 = vadd.xlane.f32.xlu0 %v2205_v18 }
0x1754   :  { %v2523_v15 = vsub.f32 %v2519_v47, %v2522_v19 }
0x1755   :  { %v4808_v10 = vpop.eup %4807 }
0x1756   :  { %v2524_v20 = vmul.f32 1.442695, %v2523_v15  ;;  %v2268_v9 = vsel %vm329_vm14, %v4808_v10, 0.0 }
0x1757   :  { %2269 = vadd.xlane.f32.xlu1 %v2268_v9 }
0x1758   :  { %4815 = vpow2.f32 %v2524_v20 }
0x1759   :  { %v4810_v21 = vpop.eup %4809 }
0x175a   :  { %v2463_v22 = vsel %vm329_vm14, %v4810_v21, 0.0 }
0x175b   :  { %2464 = vadd.xlane.f32.xlu0 %v2463_v22 }
0x175d   :  { %v4812_v24 = vpop.eup %4811 }
0x175e   :  { %v4814_v27 = vpop.eup %4813  ;;  %v2399_v25 = vsel %vm329_vm14, %v4812_v24, 0.0 }
0x175f   :  { %2400 = vadd.xlane.f32.xlu1 %v2399_v25  ;;  %v2589_v26 = vsel %vm329_vm14, %v4814_v27, 0.0 }
0x1760   :  { %2590 = vadd.xlane.f32.xlu0 %v2589_v26 }
0x1765   :  { %v4816_v29 = vpop.eup %4815 }
0x1766   :  { %v2526_v30 = vsel %vm329_vm14, %v4816_v29, 0.0 }
0x1767   :  { %2527 = vadd.xlane.f32.xlu1 %v2526_v30 }
0x17d8   :  { %v2333_v31 = vpop.xlane.xlu0 %2332 }
0x17d9   :  { %v2143_v58 = vpop.xlane.xlu1 %2142  ;;  %4817 = vrcp.f32 %v2333_v31 }
0x17da   :  { %4819 = vrcp.f32 %v2143_v58 }
0x17dc   :  { %v2207_v35 = vpop.xlane.xlu0 %2206 }
0x17dd   :  { %4821 = vrcp.f32 %v2207_v35 }
0x17e0   :  { %v2270_v36 = vpop.xlane.xlu1 %2269 }
0x17e1   :  { %4823 = vrcp.f32 %v2270_v36 }
0x17e4   :  { %v2465_v38 = vpop.xlane.xlu0 %2464 }
0x17e5   :  { %4825 = vrcp.f32 %v2465_v38 }
0x17e6   :  { %v4818_v37 = vpop.eup %4817 }
0x17e7   :  { %v4820_v39 = vpop.eup %4819  ;;  %v5550_v2 = vmul.f32 %v4818_v37, %v4802_v12  ;;  %v4552_v12 = vcvt.s32.f32 %v4551_v3 }
0x17e8   :  { %v5552_v40 = vmul.f32 %v4820_v39, %v4804_v13  ;;  %v2401_v42 = vpop.xlane.xlu1 %2400  ;;  %v4514_v13 = vand.u32 2147483648, %v2698_v59 }
0x17e9   :  { %4827 = vrcp.f32 %v2401_v42  ;;  %v2591_v43 = vpop.xlane.xlu0 %2590  ;;  %v2626_v44 = vsel %vm329_vm14, %v5550_v2, -inf  ;;  %v4553_v11 = vand.u32 2147483647, %v4552_v12 }
0x17ea   :  { %v4822_v33 = vpop.eup %4821  ;;  %v2594_v45 = vsel %vm329_vm14, %v5552_v40, -inf  ;;  %4829 = vrcp.f32 %v2591_v43  ;;  %2627 = vmax.xlane.f32.xlu0 %v2626_v44  ;;  %v4515_v8 = vor.u32 %v4514_v13, %v4513_v4 }
0x17eb   :  { %2595 = vmax.xlane.f32.xlu1 %v2594_v45  ;;  %v5558_v46 = vmul.f32 %v4822_v33, %v4806_v16  ;;  %v4549_v16 = vand.u32 2147483647, %v2927_v1  ;;  %v4555_v63 = vor.u32 %v4554_v17, %v4553_v11 }
0x17ec   :  { %v4516_v18 = vsel %vm4510_vm13, %v4515_v8, %v2698_v59 }
0x17ed   :  { %v2604_v47 = vsel %vm329_vm14, %v5558_v46, -inf  ;;  %v2700_v19 = vpack.c.bf16 %v4516_v18, %v4516_v18  ;;  %vm4550_vm11 = vcmp.lt.f32.partialorder %v4549_v16, 8388608.0 }
0x17ee   :  { %v4824_v48 = vpop.eup %4823  ;;  %2605 = vmax.xlane.f32.xlu0 %v2604_v47  ;;  %v4556_v15 = vsel %vm4550_vm11, %v4555_v63, %v2927_v1 }
0x17ef   :  { %v5562_v49 = vmul.f32 %v4824_v48, %v4808_v10  ;;  %v2929_v10 = vpack.c.bf16 %v4556_v15, %v4556_v15 }
0x17f0   :  { %v2528_v32 = vpop.xlane.xlu1 %2527 }
0x17f1   :  { %4831 = vrcp.f32 %v2528_v32  ;;  %v2615_v50 = vsel %vm329_vm14, %v5562_v49, -inf }
0x17f2   :  { %v4826_v53 = vpop.eup %4825  ;;  %2616 = vmax.xlane.f32.xlu1 %v2615_v50 }
0x17f3   :  { %v5567_v28 = vmul.f32 %v4826_v53, %v4810_v21 }
0x17f5   :  { %v2648_v55 = vsel %vm329_vm14, %v5567_v28, -inf }
0x17f6   :  { %v4828_v61 = vpop.eup %4827  ;;  %2649 = vmax.xlane.f32.xlu0 %v2648_v55 }
0x17f7   :  { %v4830_v57 = vpop.eup %4829  ;;  %v5573_v34 = vmul.f32 %v4828_v61, %v4812_v24 }
0x17f8   :  { %v5577_v56 = vmul.f32 %v4830_v57, %v4814_v27 }
0x17f9   :  { %v2637_v60 = vsel %vm329_vm14, %v5573_v34, -inf }
0x17fa   :  { %2638 = vmax.xlane.f32.xlu1 %v2637_v60  ;;  %v2670_v41 = vsel %vm329_vm14, %v5577_v56, -inf }
0x17fb   :  { %2671 = vmax.xlane.f32.xlu0 %v2670_v41 }
0x17fe   :  { %v4832_v5 = vpop.eup %4831 }
0x17ff   :  { %v5585_v6 = vmul.f32 %v4832_v5, %v4816_v29 }
0x1801   :  { %v2659_v51 = vsel %vm329_vm14, %v5585_v6, -inf }
0x1802   :  { %2660 = vmax.xlane.f32.xlu1 %v2659_v51 }
0x1811   :  { %2756 = vrot.lane.b32.xlu0 %v2700_v19, %s5847_s25 }
0x1813   :  { %2702 = vrot.lane.b32.xlu1 %v2700_v19, %s5848_s18 }
0x1815   :  { %2984 = vrot.lane.b32.xlu0 %v2929_v10, %s5847_s25 }
0x1817   :  { %2813 = vrot.lane.b32.xlu1 %v2700_v19, %s5849_s16 }
0x1819   :  { %3098 = vrot.lane.b32.xlu0 %v2929_v10, %s5850_s19 }
0x181b   :  { %2870 = vrot.lane.b32.xlu1 %v2700_v19, %s5850_s19 }
0x181f   :  { %2931 = vrot.lane.b32.xlu1 %v2929_v10, %s5848_s18 }
0x1823   :  { %3041 = vrot.lane.b32.xlu1 %v2929_v10, %s5849_s16 }
0x1873   :  { %v2628_v20 = vpop.xlane.xlu0 %2627 }
0x1874   :  { %v2596_v9 = vpop.xlane.xlu1 %2595  ;;  %v2629_v21 = vrot.slane %v2628_v20, 4 }
0x1875   :  { %v2597_v22 = vrot.slane %v2596_v9, 4 }
0x1876   :  { %v2630_v27 = vmax.f32 %v2628_v20, %v2629_v21 }
0x1877   :  { %v2598_v24 = vmax.f32 %v2596_v9, %v2597_v22  ;;  %v2606_v25 = vpop.xlane.xlu0 %2605 }
0x1878   :  { %v2607_v26 = vrot.slane %v2606_v25, 4  ;;  %v2631_v31 = vrot.slane %v2630_v27, 2 }
0x1879   :  { %v2599_v29 = vrot.slane %v2598_v24, 2 }
0x187a   :  { %v2608_v30 = vmax.f32 %v2606_v25, %v2607_v26  ;;  %v2632_v33 = vmax.f32 %v2630_v27, %v2631_v31 }
0x187b   :  { %v2617_v58 = vpop.xlane.xlu1 %2616  ;;  %v2600_v35 = vmax.f32 %v2598_v24, %v2599_v29 }
0x187c   :  { %v2609_v36 = vrot.slane %v2608_v30, 2  ;;  %v2618_v38 = vrot.slane %v2617_v58, 4  ;;  %v2633_v61 = vrot.slane %v2632_v33, 1 }
0x187d   :  { %v2601_v37 = vrot.slane %v2600_v35, 1 }
0x187e   :  { %v2619_v39 = vmax.f32 %v2617_v58, %v2618_v38  ;;  %v2610_v42 = vmax.f32 %v2608_v30, %v2609_v36  ;;  %v2634_v3 = vmax.f32 %v2632_v33, %v2633_v61 }
0x187f   :  { %v2602_v43 = vmax.f32 %v2600_v35, %v2601_v37  ;;  %v2650_v44 = vpop.xlane.xlu0 %2649 }
0x1880   :  { %v2620_v45 = vrot.slane %v2619_v39, 2  ;;  %v2651_v47 = vrot.slane %v2650_v44, 4  ;;  %v2611_v48 = vrot.slane %v2610_v42, 1 }
0x1881   :  { %4479 = vpush %v2602_v43 }
0x1882   :  { %v2652_v32 = vmax.f32 %v2650_v44, %v2651_v47  ;;  %v2612_v50 = vmax.f32 %v2610_v42, %v2611_v48  ;;  %v2621_v53 = vmax.f32 %v2619_v39, %v2620_v45 }
0x1883   :  { %v2639_v55 = vpop.xlane.xlu1 %2638 }
0x1884   :  { %v2653_v57 = vrot.slane %v2652_v32, 2  ;;  %v2640_v59 = vrot.slane %v2639_v55, 4  ;;  %v2672_v60 = vpop.xlane.xlu0 %2671  ;;  %4481 = vpush %v2612_v50  ;;  %v2622_v41 = vrot.slane %v2621_v53, 1 }
0x1885   :  { %v2673_v62 = vrot.slane %v2672_v60, 4 }
0x1886   :  { %v2641_v1 = vmax.f32 %v2639_v55, %v2640_v59  ;;  %v2623_v5 = vmax.f32 %v2621_v53, %v2622_v41  ;;  %v2654_v51 = vmax.f32 %v2652_v32, %v2653_v57 }
0x1887   :  { %v2674_v7 = vmax.f32 %v2672_v60, %v2673_v62 }
0x1888   :  { %v2642_v4 = vrot.slane %v2641_v1, 2  ;;  %v2757_v12 = vpop.permute.xlu0 %2756  ;;  %4483 = vpush %v2623_v5  ;;  %v2655_v17 = vrot.slane %v2654_v51, 1 }
0x1889   :  { %v2762_v13 = vsel %vm960_vm2, %v2757_v12, 0  ;;  %4485 = vpush %v2634_v3  ;;  %v2675_v11 = vrot.slane %v2674_v7, 2 }
0x188a   :  { %4094 = vmatpush3.bf16.msra.mxu1 %v2762_v13  ;;  %v2643_v14 = vmax.f32 %v2641_v1, %v2642_v4  ;;  %v2656_v10 = vmax.f32 %v2654_v51, %v2655_v17 }
0x188b   :  { %v2661_v8 = vpop.xlane.xlu1 %2660  ;;  %4105 = vmatprep.subr.bf16.mxu1 %v4910_v52  ;;  %v2676_v20 = vmax.f32 %v2674_v7, %v2675_v11 }
0x188c   :  { %v2662_v16 = vrot.slane %v2661_v8, 4  ;;  %v2644_v18 = vrot.slane %v2643_v14, 1 }
0x188d   :  { %v2677_v24 = vrot.slane %v2676_v20, 1 }
0x188e   :  { %v2663_v63 = vmax.f32 %v2661_v8, %v2662_v16  ;;  %v2645_v19 = vmax.f32 %v2643_v14, %v2644_v18 }
0x188f   :  { %v2703_v15 = vpop.permute.xlu1 %2702  ;;  %v2678_v26 = vmax.f32 %v2676_v20, %v2677_v24  ;;  %v2985_v24 = vpop.permute.xlu0 %2984 }
0x1890   :  { %v2664_v9 = vrot.slane %v2663_v63, 2  ;;  %v2708_v21 = vsel %vm960_vm2, %v2703_v15, 0  ;;  %4487 = vpush %v2645_v19 }
0x1891   :  { %4489 = vpush %v2656_v10  ;;  %4088 = vmatpush3.bf16.msra.mxu0 %v2708_v21 }
0x1892   :  { %v2665_v22 = vmax.f32 %v2663_v63, %v2664_v9  ;;  %4099 = vmatprep.subr.bf16.mxu0 %v4910_v52 }
0x1893   :  { %v2814_v33 = vpop.permute.xlu1 %2813 }
0x1894   :  { %v2666_v27 = vrot.slane %v2665_v22, 1  ;;  %v2819_v8 = vsel %vm960_vm2, %v2814_v33, 0 }
0x1896   :  { %v2667_v25 = vmax.f32 %v2665_v22, %v2666_v27 }
0x1898   :  { %4491 = vpush %v2667_v25 }
0x1899   :  { %4493 = vpush %v2678_v26 }
0x18b2   :  { %s4480_s26 = spop %4479 }
0x18b5   :  { %s4482_s29 = spop %4481 }
0x18b6   :  { %s2614_s0 = smax.f32 %s4482_s29, %s4480_s26 }
0x18b9   :  { %s4484_s6 = spop %4483 }
0x18ba   :  { %s2625_s28 = smax.f32 %s4484_s6, %s2614_s0  ;;  %s4486_s14 = spop %4485 }
0x18bb   :  { %s2636_s27 = smax.f32 %s4486_s14, %s2625_s28 }
0x18c1   :  { %s4488_s15 = spop %4487 }
0x18c2   :  { %s2647_s22 = smax.f32 %s4488_s15, %s2636_s27  ;;  %s4490_s23 = spop %4489 }
0x18c3   :  { %s2658_s24 = smax.f32 %s4490_s23, %s2647_s22 }
0x18c9   :  { %s4492_s7 = spop %4491 }
0x18ca   :  { %s2669_s30 = smax.f32 %s4492_s7, %s2658_s24  ;;  %s4494_s2 = spop %4493 }
0x18cb   :  { %s2680_s3 = smax.f32 %s4494_s2, %s2669_s30 }
0x18cc   :  { %s2681_s25 = smax.f32 %s5839_s17, %s2680_s3 }
0x18cd   :  { %v2682_v29 = vstv %s2681_s25 }
0x18ce   :  { %4833 = vrcp.f32 %v2682_v29 }
0x18db   :  { %v4834_v30 = vpop.eup %4833 }
0x18dc   :  { %4495 = vpush %v4834_v30 }
0x190d   :  { %s4496_s18 = spop %4495 }
0x190e   :  { %s2685_s16 = smul.f32 127.5, %s4496_s18 }
0x1910   :  { %v2686_v31 = vstv %s2685_s16 }
0x1911   :  { %v2694_v58 = vmul.f32 %v2686_v31, %v5552_v40  ;;  %v2753_v35 = vmul.f32 %v2686_v31, %v5558_v46  ;;  %4835 = vrcp.f32 %v2686_v31  ;;  %v2810_v36 = vmul.f32 %v2686_v31, %v5562_v49 }
0x1912   :  { %4837 = vrcp.f32 %v5569_v54  ;;  %v2867_v37 = vmul.f32 %v2686_v31, %v5550_v2  ;;  %v5608_v44 = vmul.f32 %v2686_v31, %v5573_v34  ;;  %v5611_v49 = vmul.f32 %v2686_v31, %v5567_v28  ;;  %v2871_v28 = vpop.permute.xlu1 %2870 }
0x1913   :  { %v4503_v38 = vcvt.f32.s32 %v2694_v58  ;;  %v4519_v39 = vcvt.f32.s32 %v2753_v35  ;;  %v4527_v42 = vcvt.f32.s32 %v2810_v36  ;;  %v4501_v45 = vand.u32 2147483647, %v2694_v58 }
0x1914   :  { %v4517_v47 = vand.u32 2147483647, %v2753_v35  ;;  %v4506_v32 = vand.u32 2147483648, %v2694_v58  ;;  %v4535_v50 = vcvt.f32.s32 %v2867_v37  ;;  %v4522_v53 = vand.u32 2147483648, %v2753_v35 }
0x1915   :  { %v4504_v43 = vcvt.s32.f32 %v4503_v38  ;;  %v4520_v40 = vcvt.s32.f32 %v4519_v39  ;;  %v4528_v48 = vcvt.s32.f32 %v4527_v42  ;;  %v4543_v57 = vcvt.f32.s32 %v5608_v44 }
0x1916   :  { %v4536_v61 = vcvt.s32.f32 %v4535_v50  ;;  %vm4502_vm12 = vcmp.lt.f32.partialorder %v4501_v45, 8388608.0  ;;  %vm4518_vm4 = vcmp.lt.f32.partialorder %v4517_v47, 8388608.0  ;;  %v5615_v59 = vmul.f32 %v2686_v31, %v5585_v6  ;;  %v2932_v21 = vpop.permute.xlu1 %2931 }
0x1917   :  { %v4505_v46 = vand.u32 2147483647, %v4504_v43  ;;  %v4521_v54 = vand.u32 2147483647, %v4520_v40  ;;  %v4529_v55 = vand.u32 2147483647, %v4528_v48  ;;  %v4559_v1 = vcvt.f32.s32 %v5611_v49  ;;  %v3099_v40 = vpop.permute.xlu0 %3098 }
0x1918   :  { %v4530_v41 = vand.u32 2147483648, %v2810_v36  ;;  %v4537_v62 = vand.u32 2147483647, %v4536_v61  ;;  %v4525_v3 = vand.u32 2147483647, %v2810_v36  ;;  %v4538_v51 = vand.u32 2147483648, %v2867_v37 }
0x1919   :  { %v4507_v2 = vor.u32 %v4506_v32, %v4505_v46  ;;  %v4523_v34 = vor.u32 %v4522_v53, %v4521_v54  ;;  %v4533_v13 = vand.u32 2147483647, %v2867_v37  ;;  %v4544_v14 = vcvt.s32.f32 %v4543_v57 }
0x191a   :  { %v4531_v12 = vor.u32 %v4530_v41, %v4529_v55  ;;  %v4539_v6 = vor.u32 %v4538_v51, %v4537_v62  ;;  %v4560_v17 = vcvt.s32.f32 %v4559_v1  ;;  %v2876_v18 = vsel %vm960_vm2, %v2871_v28, 0  ;;  %v3042_v45 = vpop.permute.xlu1 %3041 }
0x191b   :  { %v4508_v60 = vsel %vm4502_vm12, %v4507_v2, %v2694_v58  ;;  %v4524_v7 = vsel %vm4518_vm4, %v4523_v34, %v2753_v35  ;;  %v5623_v63 = vmul.f32 %v2686_v31, %v5577_v56  ;;  %vm4526_vm6 = vcmp.lt.f32.partialorder %v4525_v3, 8388608.0 }
0x191c   :  { %v2696_v5 = vpack.c.bf16 %v4508_v60, %v4508_v60  ;;  %v2755_v4 = vpack.c.bf16 %v4524_v7, %v4524_v7  ;;  %v4532_v19 = vsel %vm4526_vm6, %v4531_v12, %v2810_v36  ;;  %vm4534_vm8 = vcmp.lt.f32.partialorder %v4533_v13, 8388608.0 }
0x191d   :  { %v4545_v15 = vand.u32 2147483647, %v4544_v14  ;;  %v4567_v10 = vcvt.f32.s32 %v5615_v59  ;;  %v4540_v56 = vsel %vm4534_vm8, %v4539_v6, %v2867_v37  ;;  %v4561_v20 = vand.u32 2147483647, %v4560_v17 }
0x191e   :  { %v4836_v11 = vpop.eup %4835  ;;  %4090 = vmatmul.mubr.msk.bf16.vlgmr.msra.gmra.mxu0 %vm329_vm14, %v2696_v5  ;;  %4096 = vmatmul.mubr.msk.bf16.vlgmr.msra.gmra.mxu1 %vm329_vm14, %v2755_v4  ;;  %v4575_v9 = vcvt.f32.s32 %v5623_v63  ;;  %v4546_v22 = vand.u32 2147483648, %v5608_v44  ;;  %v2812_v27 = vpack.c.bf16 %v4532_v19, %v4532_v19  ;;  %v4541_v25 = vand.u32 2147483647, %v5608_v44 }
0x191f   :  { %v4838_v16 = vpop.eup %4837  ;;  %4100 = vmatpush3.bf16.msra.mxu0 %v2819_v8  ;;  %4497 = vpush %v4836_v11  ;;  %4106 = vmatpush3.bf16.msra.mxu1 %v2876_v18  ;;  %v4562_v26 = vand.u32 2147483648, %v5611_v49  ;;  %v2869_v29 = vpack.c.bf16 %v4540_v56, %v4540_v56  ;;  %v4557_v31 = vand.u32 2147483647, %v5611_v49  ;;  %v4568_v58 = vcvt.s32.f32 %v4567_v10 }
0x1920   :  { %4499 = vpush %v4838_v16  ;;  %4101 = vmatprep.mubr.msk.bf16.mxu0 %vm4911_vm5, %v4910_v52  ;;  %4107 = vmatprep.mubr.msk.bf16.mxu1 %vm4911_vm5, %v4910_v52  ;;  %v4547_v30 = vor.u32 %v4546_v22, %v4545_v15  ;;  %v2937_v35 = vsel %vm960_vm2, %v2932_v21, 0  ;;  %v4576_v38 = vcvt.s32.f32 %v4575_v9  ;;  %v2990_v37 = vsel %vm960_vm2, %v2985_v24, 0 }
0x1921   :  { %4111 = vmatprep.subr.bf16.mxu0 %v4910_v52  ;;  %4117 = vmatprep.subr.bf16.mxu1 %v4910_v52  ;;  %v4563_v36 = vor.u32 %v4562_v26, %v4561_v20  ;;  %vm4542_vm7 = vcmp.lt.f32.partialorder %v4541_v25, 8388608.0  ;;  %vm4558_vm9 = vcmp.lt.f32.partialorder %v4557_v31, 8388608.0  ;;  %v4569_v42 = vand.u32 2147483647, %v4568_v58 }
0x1922   :  { %v4548_v39 = vsel %vm4542_vm7, %v4547_v30, %v5608_v44  ;;  %v4577_v33 = vand.u32 2147483647, %v4576_v38  ;;  %v4570_v47 = vand.u32 2147483648, %v5615_v59  ;;  %v4565_v46 = vand.u32 2147483647, %v5615_v59 }
0x1923   :  { %v4564_v43 = vsel %vm4558_vm9, %v4563_v36, %v5611_v49  ;;  %v2926_v48 = vpack.c.bf16 %v4548_v39, %v4548_v39  ;;  %v4578_v32 = vand.u32 2147483648, %v5623_v63  ;;  %v4573_v44 = vand.u32 2147483647, %v5623_v63 }
0x1924   :  { %v2983_v50 = vpack.c.bf16 %v4564_v43, %v4564_v43  ;;  %v4571_v54 = vor.u32 %v4570_v47, %v4569_v42  ;;  %v3047_v53 = vsel %vm960_vm2, %v3042_v45, 0  ;;  %v3104_v49 = vsel %vm960_vm2, %v3099_v40, 0 }
0x1925   :  { %v4579_v2 = vor.u32 %v4578_v32, %v4577_v33  ;;  %vm4566_vm10 = vcmp.lt.f32.partialorder %v4565_v46, 8388608.0  ;;  %vm4574_vm13 = vcmp.lt.f32.partialorder %v4573_v44, 8388608.0 }
0x1926   :  { %4102 = vmatmul.mubr.msk.bf16.vlgmr.msra.gmra.mxu0 %vm329_vm14, %v2812_v27  ;;  %4108 = vmatmul.mubr.msk.bf16.vlgmr.msra.gmra.mxu1 %vm329_vm14, %v2869_v29  ;;  %v4572_v55 = vsel %vm4566_vm10, %v4571_v54, %v5615_v59 }
0x1927   :  { %4112 = vmatpush3.bf16.msra.mxu0 %v2937_v35  ;;  %4118 = vmatpush3.bf16.msra.mxu1 %v2990_v37  ;;  %v4580_v61 = vsel %vm4574_vm13, %v4579_v2, %v5623_v63  ;;  %v3040_v57 = vpack.c.bf16 %v4572_v55, %v4572_v55 }
0x1928   :  { %4113 = vmatprep.mubr.msk.bf16.mxu0 %vm4911_vm5, %v4910_v52  ;;  %4119 = vmatprep.mubr.msk.bf16.mxu1 %vm4911_vm5, %v4910_v52  ;;  %v3097_v34 = vpack.c.bf16 %v4580_v61, %v4580_v61 }
0x1929   :  { %4123 = vmatprep.subr.bf16.mxu0 %v4910_v52  ;;  %4129 = vmatprep.subr.bf16.mxu1 %v4910_v52 }
0x192e   :  { %4114 = vmatmul.mubr.msk.bf16.vlgmr.msra.gmra.mxu0 %vm329_vm14, %v2926_v48  ;;  %4120 = vmatmul.mubr.msk.bf16.vlgmr.msra.gmra.mxu1 %vm329_vm14, %v2983_v50 }
0x192f   :  { %4124 = vmatpush3.bf16.msra.mxu0 %v3047_v53  ;;  %4130 = vmatpush3.bf16.msra.mxu1 %v3104_v49 }
0x1930   :  { %4125 = vmatprep.mubr.msk.bf16.mxu0 %vm4911_vm5, %v4910_v52  ;;  %4131 = vmatprep.mubr.msk.bf16.mxu1 %vm4911_vm5, %v4910_v52 }
0x1931   :  { %4135 = vmatprep.subr.bf16.mxu0 %v4910_v52  ;;  %4143 = vmatprep.subr.bf16.mxu1 %v4910_v52 }
0x1936   :  { %4126 = vmatmul.mubr.msk.bf16.vlgmr.msra.gmra.mxu0 %vm329_vm14, %v3040_v57  ;;  %4132 = vmatmul.mubr.msk.bf16.vlgmr.msra.gmra.mxu1 %vm329_vm14, %v3097_v34 }
0x1937   :  { %4139 = vmatprep.mubr.msk.bf16.mxu0 %vm4911_vm5, %v4910_v52  ;;  %4147 = vmatprep.mubr.msk.bf16.mxu1 %vm4911_vm5, %v4910_v52 }
0x1950   :  { %s4498_s19 = spop %4497 }
0x1951   :  { %s4500_s26 = spop %4499 }
0x1952   :  { %s2692_s29 = smul.f32 %s4500_s26, %s4498_s19 }
0x1954   :  { %v2750_v59 = vstv %s2692_s29 }
0x19de   :  { %v2744_v60 = vpop.f32.mrf.mxu0  ;;  %v2798_v62 = vpop.f32.mrf.mxu1 }
0x19df   :  { %v2751_v41 = vmul.f32 %v2750_v59, %v2744_v60  ;;  %v2804_v1 = vmul.f32 %v2798_v62, %v2750_v59  ;;  %v4684_v60 = vld [vmem:[%s5797_s8 + $0x10] sm:$0xff]  }
0x19e0   :  { %v4091_v28 = vpop.f32.mrf.mxu0  ;;  %v4097_v5 = vpop.f32.mrf.mxu1 }
0x19e1   :  { %2752 = vst.msk [vmem:[#allocation2] sm:$0xff] %vm329_vm14, %v2751_v41  ;;  %2806 = vrot.lane.b32.xlu1 %v2804_v1, %s4924_s1 }
0x19e2   :  { %v2747_v7 = vpop.f32.mrf.mxu0  ;;  %v2801_v3 = vpop.f32.mrf.mxu1 }
0x19e4   :  { %v4092_v51 = vpop.f32.mrf.mxu0  ;;  %v4098_v4 = vpop.f32.mrf.mxu1 }
0x19e6   :  { %v2855_v12 = vpop.f32.mrf.mxu0  ;;  %v2912_v14 = vpop.f32.mrf.mxu1 }
0x19e7   :  { %v2861_v13 = vmul.f32 %v2855_v12, %v2750_v59  ;;  %v2918_v17 = vmul.f32 %v2912_v14, %v2750_v59 }
0x19e8   :  { %v4103_v11 = vpop.f32.mrf.mxu0  ;;  %v4109_v8 = vpop.f32.mrf.mxu1 }
0x19e9   :  { %2863 = vrot.lane.b32.xlu1 %v2861_v13, %s4925_s20 }
0x19ea   :  { %v2858_v6 = vpop.f32.mrf.mxu0  ;;  %v2915_v16 = vpop.f32.mrf.mxu1 }
0x19ec   :  { %v4104_v18 = vpop.f32.mrf.mxu0  ;;  %v4110_v63 = vpop.f32.mrf.mxu1 }
0x19ed   :  { %2920 = vrot.lane.b32.xlu1 %v2918_v17, %s4926_s21 }
0x19ee   :  { %v2973_v19 = vpop.f32.mrf.mxu0  ;;  %v3026_v10 = vpop.f32.mrf.mxu1 }
0x19ef   :  { %v2979_v15 = vmul.f32 %v2973_v19, %v2750_v59  ;;  %v3032_v56 = vmul.f32 %v3026_v10, %v2750_v59 }
0x19f0   :  { %v4115_v20 = vpop.f32.mrf.mxu0  ;;  %v4121_v9 = vpop.f32.mrf.mxu1 }
0x19f1   :  { %2980 = vst.msk [vmem:[#allocation2 + $0x8] sm:$0xff] %vm329_vm14, %v2979_v15  ;;  %3034 = vrot.lane.b32.xlu0 %v3032_v56, %s4924_s1  ;;  %v3747_v20 = vld [vmem:[%s5798_s9 + $0x1] ss:$0 sm:$0xff] }
0x19f2   :  { %v2976_v21 = vpop.f32.mrf.mxu0  ;;  %v3029_v22 = vpop.f32.mrf.mxu1 }
0x19f4   :  { %v4116_v24 = vpop.f32.mrf.mxu0  ;;  %v4122_v27 = vpop.f32.mrf.mxu1 }
0x19f6   :  { %v3083_v25 = vpop.f32.mrf.mxu0  ;;  %v3140_v29 = vpop.f32.mrf.mxu1 }
0x19f7   :  { %v3089_v26 = vmul.f32 %v3083_v25, %v2750_v59  ;;  %v3146_v35 = vmul.f32 %v3140_v29, %v2750_v59  ;;  %v4683_v59 = vld [vmem:[%s5797_s8 + $0x18] sm:$0xff]   ;;  %s3742_s8 = sld [smem:[#allocation3 + $0x83]] }
0x19f8   :  { %v4127_v30 = vpop.f32.mrf.mxu0  ;;  %v4133_v31 = vpop.f32.mrf.mxu1  ;;  %4136 = vmatpush3.bf16.msra.mxu0 %v4683_v59 }
0x19f9   :  { %3091 = vrot.lane.b32.xlu0 %v3089_v26, %s4925_s20  ;;  %4137 = vmatprep.subr.bf16.mxu0 %v4910_v52 }
0x19fa   :  { %v3086_v58 = vpop.f32.mrf.mxu0  ;;  %v3143_v36 = vpop.f32.mrf.mxu1 }
0x19fc   :  { %v4128_v38 = vpop.f32.mrf.mxu0  ;;  %v4134_v37 = vpop.f32.mrf.mxu1  ;;  %4138 = vmatpush3.bf16.msra.mxu0 %v4684_v60  ;;  %v3750_v60 = vld [vmem:[%s5793_s4 + $0x1] ss:$0 sm:$0xff] }
0x19fd   :  { %3148 = vrot.lane.b32.xlu0 %v3146_v35, %s4926_s21  ;;  %4151 = vmatprep.subr.bf16.mxu0 %v4910_v52 }
0x1a53   :  { %v2807_v39 = vpop.permute.xlu1 %2806 }
0x1a54   :  { %2809 = vst.msk [vmem:[#allocation2] sm:$0xff] %vm1063_vm15, %v2807_v39 }
0x1a5b   :  { %v2864_v42 = vpop.permute.xlu1 %2863 }
0x1a5c   :  { %2866 = vst.msk [vmem:[#allocation2] sm:$0xff] %vm1121_vm1, %v2864_v42 }
0x1a5f   :  { %v2921_v43 = vpop.permute.xlu1 %2920 }
0x1a60   :  { %2923 = vst.msk [vmem:[#allocation2] sm:$0xff] %vm1179_vm3, %v2921_v43 }
0x1a63   :  { %v3035_v33 = vpop.permute.xlu0 %3034 }
0x1a64   :  { %3037 = vst.msk [vmem:[#allocation2 + $0x8] sm:$0xff] %vm1063_vm15, %v3035_v33 }
0x1a67   :  { %v3152_v40 = vld [vmem:[#allocation2] sm:$0xff] }
0x1a68   :  { %v3154_v48 = vand.u32 2147483647, %v3152_v40 }
0x1a6a   :  { %v3156_v50 = vsel %vm78_vm0, %v3154_v48, -inf }
0x1a6b   :  { %v3092_v45 = vpop.permute.xlu0 %3091 }
0x1a6c   :  { %3094 = vst.msk [vmem:[#allocation2 + $0x8] sm:$0xff] %vm1121_vm1, %v3092_v45 }
0x1a6f   :  { %v3149_v47 = vpop.permute.xlu0 %3148 }
0x1a70   :  { %3151 = vst.msk [vmem:[#allocation2 + $0x8] sm:$0xff] %vm1179_vm3, %v3149_v47 }
0x1a77   :  { %v3153_v46 = vld [vmem:[#allocation2 + $0x8] sm:$0xff] }
0x1a78   :  { %v3155_v32 = vand.u32 2147483647, %v3153_v46 }
0x1a7a   :  { %v3157_v54 = vsel %vm78_vm0, %v3155_v32, -inf }
0x1a7b   :  { %v3158_v44 = vmax.f32 %v3156_v50, %v3157_v54 }
0x1a7d   :  { %3159 = vmax.xlane.f32.xlu1 %v3158_v44 }
0x1b06   :  { %v3160_v53 = vpop.xlane.xlu1 %3159 }
0x1b07   :  { %v3161_v2 = vrot.slane %v3160_v53, 4 }
0x1b09   :  { %v3162_v49 = vmax.f32 %v3160_v53, %v3161_v2 }
0x1b0b   :  { %v3163_v55 = vrot.slane %v3162_v49, 2 }
0x1b0d   :  { %v3164_v61 = vmax.f32 %v3162_v49, %v3163_v55 }
0x1b0f   :  { %v3165_v57 = vrot.slane %v3164_v61, 1 }
0x1b11   :  { %v3166_v34 = vmax.f32 %v3164_v61, %v3165_v57 }
0x1b13   :  { %4581 = vpush %v3166_v34 }
0x1b44   :  { %s4582_s28 = spop %4581 }
0x1b45   :  { %s3168_s14 = smax.f32 %s5839_s17, %s4582_s28  ;;  %s4927_s28 = smov [#allocation6]  }
0x1b46   :  { %v3169_v41 = vstv %s3168_s14  ;;  %s3648_s14 = sshll.u32 %s4927_s28, 4  ;;  %s3649_s14 = int_to_ptr.vmem [resolvable:$true] %s3648_s14 }
0x1b47   :  { %4839 = vrcp.f32 %v3169_v41  ;;  %p4890_p6 = scmp.lt.s32.totalorder %s3649_s14, %s3649_s14 }
0x1b54   :  { %v4840_v62 = vpop.eup %4839 }
0x1b55   :  { %4583 = vpush %v4840_v62  ;;  %v3751_v62 = vld [vmem:[%s5794_s5 + $0x1] ss:$0 sm:$0xff] }
0x1b86   :  { %s4584_s15 = spop %4583 }
0x1b87   :  { %s3172_s27 = smul.f32 127.5, %s4584_s15  ;;  %s4885_s15 = scalar_lea.vmem %s3649_s14, 256 }
0x1b88   :  { %p4886_p5 = scmp.ne.s32.totalorder %s3649_s14, %s4885_s15  ;;  %p4891_p7 = scmp.lt.s32.totalorder %s4885_s15, %s4885_s15 }
0x1b89   :  { %v3179_v1 = vstv %s3172_s27 }
0x1b8a   :  { %v3180_v28 = vmul.f32 %v3179_v1, %v3152_v40  ;;  %v3181_v5 = vmul.f32 %v3179_v1, %v3153_v46  ;;  %4841 = vrcp.f32 %v3179_v1  ;;  %p4892_p8 = por %p4891_p7, %p4890_p6 }
0x1b8c   :  { %v4587_v7 = vcvt.f32.s32 %v3180_v28  ;;  %v4595_v3 = vcvt.f32.s32 %v3181_v5  ;;  %v4585_v4 = vand.u32 2147483647, %v3180_v28  ;;  %v4590_v14 = vand.u32 2147483648, %v3180_v28  ;;  %p4893_p9 = pnand %p4892_p8, %p4886_p5 }
0x1b8d   :  { %v4593_v11 = vand.u32 2147483647, %v3181_v5  ;;  %v4598_v6 = vand.u32 2147483648, %v3181_v5 }
0x1b8e   :  { %v4588_v51 = vcvt.s32.f32 %v4587_v7  ;;  %v4596_v12 = vcvt.s32.f32 %v4595_v3  ;;  %vm4586_vm14 = vcmp.lt.f32.partialorder %v4585_v4, 8388608.0 }
0x1b8f   :  { %vm4594_vm2 = vcmp.lt.f32.partialorder %v4593_v11, 8388608.0 }
0x1b90   :  { %v4589_v13 = vand.u32 2147483647, %v4588_v51  ;;  %v4597_v8 = vand.u32 2147483647, %v4596_v12 }
0x1b92   :  { %v4591_v17 = vor.u32 %v4590_v14, %v4589_v13  ;;  %v4599_v16 = vor.u32 %v4598_v6, %v4597_v8 }
0x1b94   :  { %v4592_v18 = vsel %vm4586_vm14, %v4591_v17, %v3180_v28  ;;  %v4600_v63 = vsel %vm4594_vm2, %v4599_v16, %v3181_v5 }
0x1b95   :  { %v3184_v19 = vpack.c.bf16 %v4600_v63, %v4592_v18 }
0x1b97   :  { %v4842_v15 = vpop.eup %4841  ;;  %4140 = vmatmul.mubr.msk.bf16.vlgmr.msra.gmra.mxu0 %vm78_vm0, %v3184_v19 }
0x1b98   :  { %4601 = vpush %v4842_v15  ;;  %4167 = vmatprep.mubr.msk.bf16.mxu0 %vm4911_vm5, %v4910_v52  ;;  %v4685_v15 = vld [vmem:[%s5799_s10 + $0x18] sm:$0xff]  }
0x1b99   :  { %4144 = vmatpush3.bf16.msra.mxu1 %v4685_v15 }
0x1b9a   :  { %4145 = vmatprep.subr.bf16.mxu1 %v4910_v52 }
0x1bc9   :  { %s4602_s22 = spop %4601 }
0x1bca   :  { %s3244_s23 = smul.f32 %s4602_s22, %s3742_s8 }
0x1bcc   :  { %v3245_v10 = vstv %s3244_s23 }
0x1c57   :  { %v3234_v56 = vpop.f32.mrf.mxu0 }
0x1c58   :  { %v3246_v9 = vmul.f32 %v3245_v10, %v3234_v56 }
0x1c59   :  { %v4141_v21 = vpop.f32.mrf.mxu0 }
0x1c5a   :  { %v3256_v22 = vadd.f32 %v3747_v20, %v3246_v9 }
0x1c5b   :  { %v3237_v24 = vpop.f32.mrf.mxu0 }
0x1c5c   :  { %v5703_v27 = vadd.f32 %v3256_v22, %v5409_v0  ;;  %v3247_v25 = vmul.f32 %v3245_v10, %v3237_v24  ;;  %v4686_v10 = vld [vmem:[%s5799_s10 + $0x10] sm:$0xff]   ;;  %s3756_s10 = sld [smem:[#allocation3 + $0x84]] }
0x1c5d   :  { %v4142_v26 = vpop.f32.mrf.mxu0  ;;  %4146 = vmatpush3.bf16.msra.mxu1 %v4686_v10 }
0x1c5e   :  { %v3257_v29 = vadd.f32 %v3747_v20, %v3247_v25  ;;  %v3264_v30 = vsel %vm78_vm0, %v5703_v27, 0.0 }
0x1c5f   :  { %3265 = vadd.xlane.f32.xlu0 %v3264_v30 }
0x1c60   :  { %v5708_v31 = vadd.f32 %v3257_v29, %v5414_v23 }
0x1c62   :  { %v3267_v58 = vsel %vm78_vm0, %v5708_v31, 0.0 }
0x1c63   :  { %3268 = vadd.xlane.f32.xlu0 %v3267_v58 }
0x1ce8   :  { %v3266_v35 = vpop.xlane.xlu0 %3265 }
0x1ce9   :  { %v3270_v36 = vmul.f32 0.03125, %v3266_v35 }
0x1ceb   :  { %v3272_v38 = vsub.f32 %v5703_v27, %v3270_v36 }
0x1cec   :  { %v3269_v0 = vpop.xlane.xlu0 %3268 }
0x1ced   :  { %v3271_v37 = vmul.f32 0.03125, %v3269_v0  ;;  %v3274_v39 = vmul.f32 %v3272_v38, %v3272_v38 }
0x1cef   :  { %v3273_v42 = vsub.f32 %v5708_v31, %v3271_v37  ;;  %v3276_v43 = vsel %vm78_vm0, %v3274_v39, 0.0 }
0x1cf0   :  { %3277 = vadd.xlane.f32.xlu0 %v3276_v43 }
0x1cf1   :  { %v3275_v33 = vmul.f32 %v3273_v42, %v3273_v42 }
0x1cf3   :  { %v3279_v23 = vsel %vm78_vm0, %v3275_v33, 0.0 }
0x1cf4   :  { %3280 = vadd.xlane.f32.xlu1 %v3279_v23 }
0x1d79   :  { %v3278_v45 = vpop.xlane.xlu0 %3277 }
0x1d7a   :  { %v3282_v47 = vmul.f32 0.03125, %v3278_v45 }
0x1d7c   :  { %v3284_v40 = vadd.f32 1e-12, %v3282_v47 }
0x1d7d   :  { %v3281_v48 = vpop.xlane.xlu1 %3280 }
0x1d7e   :  { %4843 = vrsqrt.f32 %v3284_v40  ;;  %v3283_v46 = vmul.f32 0.03125, %v3281_v48  ;;  %vm3288_vm5 = vcmp.eq.f32.partialorder %v3284_v40, inf  ;;  %v3291_v44 = vand.u32 2147483648, %v3284_v40 }
0x1d7f   :  { %vm3290_vm15 = vcmp.eq.f32.partialorder %v3284_v40, 0.0 }
0x1d80   :  { %v3285_v32 = vadd.f32 1e-12, %v3283_v46 }
0x1d82   :  { %4845 = vrsqrt.f32 %v3285_v32  ;;  %vm3295_vm1 = vcmp.eq.f32.partialorder %v3285_v32, inf  ;;  %v3298_v61 = vand.u32 2147483648, %v3285_v32  ;;  %vm3297_vm3 = vcmp.eq.f32.partialorder %v3285_v32, 0.0 }
0x1d8b   :  { %v4844_v50 = vpop.eup %4843 }
0x1d8c   :  { %v3287_v54 = vmul.f32 %v4844_v50, %v3284_v40 }
0x1d8e   :  { %v3289_v53 = vsel %vm3288_vm5, %v3284_v40, %v3287_v54  ;;  %v3761_v40 = vld [vmem:[%s5800_s11 + $0x1] ss:$0 sm:$0xff]  ;;  %s5852_s11 = sld [smem:[#allocation12_spill]] }
0x1d8f   :  { %v3292_v2 = vsel %vm3290_vm15, %v3291_v44, %v3289_v53  ;;  %v4846_v49 = vpop.eup %4845 }
0x1d90   :  { %4847 = vrcp.f32 %v3292_v2  ;;  %v3294_v55 = vmul.f32 %v4846_v49, %v3285_v32 }
0x1d92   :  { %v3296_v57 = vsel %vm3295_vm1, %v3285_v32, %v3294_v55 }
0x1d93   :  { %v3299_v34 = vsel %vm3297_vm3, %v3298_v61, %v3296_v57 }
0x1d94   :  { %4849 = vrcp.f32 %v3299_v34 }
0x1d9d   :  { %v4848_v59 = vpop.eup %4847 }
0x1d9e   :  { %v3301_v41 = vmul.f32 %v4848_v59, %v3272_v38 }
0x1da0   :  { %v3310_v1 = vmul.f32 %v3750_v60, %v3301_v41 }
0x1da1   :  { %v4850_v28 = vpop.eup %4849 }
0x1da2   :  { %v3303_v5 = vmul.f32 %v4850_v28, %v3273_v42  ;;  %v3318_v7 = vadd.f32 %v3751_v62, %v3310_v1 }
0x1da4   :  { %v3311_v3 = vmul.f32 %v3750_v60, %v3303_v5  ;;  %v3320_v4 = vand.u32 2147483647, %v3318_v7 }
0x1da6   :  { %v3319_v51 = vadd.f32 %v3751_v62, %v3311_v3  ;;  %v3322_v13 = vsel %vm78_vm0, %v3320_v4, -inf  ;;  %v4688_v3 = vld [vmem:[%s5801_s12 + $0x70] sm:$0xff]   ;;  %v4690_v4 = vld [vmem:[%s5801_s12 + $0x60] sm:$0xff]  }
0x1da8   :  { %v3321_v12 = vand.u32 2147483647, %v3319_v51 }
0x1daa   :  { %v3323_v14 = vsel %vm78_vm0, %v3321_v12, -inf }
0x1dab   :  { %v3324_v11 = vmax.f32 %v3322_v13, %v3323_v14 }
0x1dad   :  { %3325 = vmax.xlane.f32.xlu0 %v3324_v11 }
0x1e36   :  { %v3326_v8 = vpop.xlane.xlu0 %3325 }
0x1e37   :  { %v3327_v6 = vrot.slane %v3326_v8, 4 }
0x1e39   :  { %v3328_v17 = vmax.f32 %v3326_v8, %v3327_v6 }
0x1e3b   :  { %v3329_v16 = vrot.slane %v3328_v17, 2 }
0x1e3d   :  { %v3330_v18 = vmax.f32 %v3328_v17, %v3329_v16  ;;  %v4691_v17 = vld [vmem:[%s5801_s12 + $0x58] sm:$0xff]  }
0x1e3f   :  { %v3331_v63 = vrot.slane %v3330_v18, 1 }
0x1e41   :  { %v3332_v19 = vmax.f32 %v3330_v18, %v3331_v63  ;;  %v4692_v18 = vld [vmem:[%s5801_s12 + $0x50] sm:$0xff]   ;;  %v4693_v63 = vld [vmem:[%s5801_s12 + $0x48] sm:$0xff]  }
0x1e43   :  { %4603 = vpush %v3332_v19  ;;  %v4694_v19 = vld [vmem:[%s5801_s12 + $0x40] sm:$0xff]  }
0x1e74   :  { %s4604_s16 = spop %4603 }
0x1e75   :  { %s3334_s19 = smax.f32 %s5839_s17, %s4604_s16 }
0x1e76   :  { %v3335_v56 = vstv %s3334_s19 }
0x1e77   :  { %4851 = vrcp.f32 %v3335_v56 }
0x1e84   :  { %v4852_v20 = vpop.eup %4851 }
0x1e85   :  { %4605 = vpush %v4852_v20 }
0x1eb6   :  { %s4606_s26 = spop %4605 }
0x1eb7   :  { %s3338_s29 = smul.f32 127.5, %s4606_s26 }
0x1eb9   :  { %v3345_v9 = vstv %s3338_s29 }
0x1eba   :  { %v3346_v21 = vmul.f32 %v3345_v9, %v3318_v7  ;;  %v3347_v22 = vmul.f32 %v3345_v9, %v3319_v51  ;;  %4853 = vrcp.f32 %v3345_v9  ;;  %v4687_v7 = vld [vmem:[%s5801_s12 + $0x78] sm:$0xff]   ;;  %v4689_v51 = vld [vmem:[%s5801_s12 + $0x68] sm:$0xff]   ;;  %s3778_s12 = sld [smem:[#allocation3 + $0x85]] }
0x1ebb   :  { %4152 = vmatpush3.bf16.msra.mxu0 %v4687_v7 }
0x1ebc   :  { %v4609_v24 = vcvt.f32.s32 %v3346_v21  ;;  %v4617_v25 = vcvt.f32.s32 %v3347_v22  ;;  %v4607_v29 = vand.u32 2147483647, %v3346_v21  ;;  %v4612_v35 = vand.u32 2147483648, %v3346_v21  ;;  %4153 = vmatprep.subr.bf16.mxu0 %v4910_v52 }
0x1ebd   :  { %v4615_v36 = vand.u32 2147483647, %v3347_v22  ;;  %v4620_v0 = vand.u32 2147483648, %v3347_v22 }
0x1ebe   :  { %v4610_v26 = vcvt.s32.f32 %v4609_v24  ;;  %v4618_v30 = vcvt.s32.f32 %v4617_v25  ;;  %vm4608_vm11 = vcmp.lt.f32.partialorder %v4607_v29, 8388608.0 }
0x1ebf   :  { %vm4616_vm12 = vcmp.lt.f32.partialorder %v4615_v36, 8388608.0  ;;  %4154 = vmatpush3.bf16.msra.mxu0 %v4688_v3 }
0x1ec0   :  { %v4611_v58 = vand.u32 2147483647, %v4610_v26  ;;  %v4619_v38 = vand.u32 2147483647, %v4618_v30  ;;  %4155 = vmatprep.subr.bf16.mxu0 %v4910_v52 }
0x1ec2   :  { %v4613_v37 = vor.u32 %v4612_v35, %v4611_v58  ;;  %v4621_v39 = vor.u32 %v4620_v0, %v4619_v38 }
0x1ec3   :  { %4156 = vmatpush3.bf16.msra.mxu0 %v4689_v51 }
0x1ec4   :  { %v4614_v42 = vsel %vm4608_vm11, %v4613_v37, %v3346_v21  ;;  %v4622_v43 = vsel %vm4616_vm12, %v4621_v39, %v3347_v22  ;;  %4157 = vmatprep.subr.bf16.mxu0 %v4910_v52 }
0x1ec5   :  { %v3350_v33 = vpack.c.bf16 %v4622_v43, %v4614_v42 }
0x1ec7   :  { %v4854_v23 = vpop.eup %4853  ;;  %4148 = vmatmul.mubr.msk.bf16.vlgmr.msra.gmra.mxu1 %vm78_vm0, %v3350_v33  ;;  %4158 = vmatpush3.bf16.msra.mxu0 %v4690_v4 }
0x1ec8   :  { %4623 = vpush %v4854_v23  ;;  %4159 = vmatprep.subr.bf16.mxu0 %v4910_v52  ;;  %v3788_v23 = vld [vmem:[%s5802_s13 + $0x1] ss:$0 sm:$0xff] }
0x1ecb   :  { %4160 = vmatpush3.bf16.msra.mxu0 %v4691_v17 }
0x1ecc   :  { %4161 = vmatprep.subr.bf16.mxu0 %v4910_v52 }
0x1ecf   :  { %4162 = vmatpush3.bf16.msra.mxu0 %v4692_v18 }
0x1ed0   :  { %4163 = vmatprep.subr.bf16.mxu0 %v4910_v52 }
0x1ed3   :  { %4164 = vmatpush3.bf16.msra.mxu0 %v4693_v63 }
0x1ed4   :  { %4165 = vmatprep.subr.bf16.mxu0 %v4910_v52 }
0x1ed7   :  { %4166 = vmatpush3.bf16.msra.mxu0 %v4694_v19 }
0x1ef9   :  { %s4624_s20 = spop %4623 }
0x1efa   :  { %s3410_s21 = smul.f32 %s4624_s20, %s3756_s10 }
0x1efc   :  { %v3411_v45 = vstv %s3410_s21  ;;  %s5851_s21 = sld [smem:[#allocation11_spill]] }
0x1f02   :  { %v3789_v63 = vld [vmem:[%s5851_s21] ss:$0 sm:$0xff] }
0x1f87   :  { %v3400_v47 = vpop.f32.mrf.mxu1 }
0x1f88   :  { %v3412_v48 = vmul.f32 %v3411_v45, %v3400_v47 }
0x1f89   :  { %v4149_v46 = vpop.f32.mrf.mxu1 }
0x1f8a   :  { %v3422_v32 = vadd.f32 %v3761_v40, %v3412_v48 }
0x1f8b   :  { %v3403_v50 = vpop.f32.mrf.mxu1 }
0x1f8c   :  { %v3426_v54 = vmul.f32 0.70710677, %v3422_v32  ;;  %v3413_v44 = vmul.f32 %v3411_v45, %v3403_v50  ;;  %v3424_v57 = vmul.f32 0.5, %v3422_v32 }
0x1f8d   :  { %v4150_v53 = vpop.f32.mrf.mxu1 }
0x1f8e   :  { %4855 = verf.f32 %v3426_v54  ;;  %v3423_v2 = vadd.f32 %v3761_v40, %v3413_v44 }
0x1f90   :  { %v3427_v49 = vmul.f32 0.70710677, %v3423_v2  ;;  %v3425_v60 = vmul.f32 0.5, %v3423_v2 }
0x1f92   :  { %4857 = verf.f32 %v3427_v49 }
0x1f9b   :  { %v4856_v55 = vpop.eup %4855 }
0x1f9c   :  { %v3430_v61 = vadd.f32 1.0, %v4856_v55 }
0x1f9e   :  { %v3432_v59 = vmul.f32 %v3430_v61, %v3424_v57 }
0x1f9f   :  { %v4858_v34 = vpop.eup %4857 }
0x1fa0   :  { %v3431_v41 = vadd.f32 1.0, %v4858_v34  ;;  %v3434_v1 = vand.u32 2147483647, %v3432_v59 }
0x1fa2   :  { %v3433_v62 = vmul.f32 %v3431_v41, %v3425_v60 }
0x1fa4   :  { %v3435_v28 = vand.u32 2147483647, %v3433_v62 }
0x1fa6   :  { %v3436_v5 = vmax.f32.f32 %v3434_v1, %v3435_v28 }
0x1fa8   :  { %3437 = vmax.xlane.f32.xlu1 %v3436_v5 }
0x2031   :  { %v3438_v12 = vpop.xlane.xlu1 %3437 }
0x2032   :  { %v3439_v13 = vrot.slane %v3438_v12, 4 }
0x2034   :  { %v3440_v14 = vmax.f32 %v3438_v12, %v3439_v13 }
0x2036   :  { %v3441_v11 = vrot.slane %v3440_v14, 2 }
0x2038   :  { %v3442_v8 = vmax.f32 %v3440_v14, %v3441_v11 }
0x203a   :  { %v3443_v6 = vrot.slane %v3442_v8, 1 }
0x203c   :  { %v3444_v16 = vmax.f32 %v3442_v8, %v3443_v6 }
0x203e   :  { %4625 = vpush %v3444_v16 }
0x206f   :  { %s4626_s25 = spop %4625 }
0x2070   :  { %s3446_s18 = smax.f32 %s5839_s17, %s4626_s25 }
0x2071   :  { %v3447_v15 = vstv %s3446_s18 }
0x2072   :  { %4859 = vrcp.f32 %v3447_v15  ;;  %v3790_v15 = vld [vmem:[%s5852_s11] ss:$0 sm:$0xff] }
0x207f   :  { %v4860_v10 = vpop.eup %4859 }
0x2080   :  { %4627 = vpush %v4860_v10 }
0x20b1   :  { %s4628_s16 = spop %4627 }
0x20b2   :  { %s3450_s19 = smul.f32 127.5, %s4628_s16 }
0x20b4   :  { %v3469_v56 = vstv %s3450_s19 }
0x20b5   :  { %v3470_v20 = vmul.f32 %v3469_v56, %v3432_v59  ;;  %v3471_v9 = vmul.f32 %v3469_v56, %v3433_v62  ;;  %4861 = vrcp.f32 %v3469_v56 }
0x20b7   :  { %v4631_v21 = vcvt.f32.s32 %v3470_v20  ;;  %v4639_v22 = vcvt.f32.s32 %v3471_v9  ;;  %v4629_v26 = vand.u32 2147483647, %v3470_v20  ;;  %v4637_v52 = vand.u32 2147483647, %v3471_v9 }
0x20b8   :  { %v4634_v30 = vand.u32 2147483648, %v3470_v20  ;;  %v4642_v35 = vand.u32 2147483648, %v3471_v9 }
0x20b9   :  { %v4632_v24 = vcvt.s32.f32 %v4631_v21  ;;  %v4640_v25 = vcvt.s32.f32 %v4639_v22  ;;  %vm4630_vm4 = vcmp.lt.f32.partialorder %v4629_v26, 8388608.0  ;;  %vm4638_vm6 = vcmp.lt.f32.partialorder %v4637_v52, 8388608.0 }
0x20bb   :  { %v4633_v29 = vand.u32 2147483647, %v4632_v24  ;;  %v4641_v58 = vand.u32 2147483647, %v4640_v25 }
0x20bd   :  { %v4635_v36 = vor.u32 %v4634_v30, %v4633_v29  ;;  %v4643_v38 = vor.u32 %v4642_v35, %v4641_v58 }
0x20bf   :  { %v4636_v0 = vsel %vm4630_vm4, %v4635_v36, %v3470_v20  ;;  %v4644_v37 = vsel %vm4638_vm6, %v4643_v38, %v3471_v9 }
0x20c0   :  { %v3474_v39 = vpack.c.bf16 %v4644_v37, %v4636_v0 }
0x20c2   :  { %v4862_v42 = vpop.eup %4861  ;;  %4168 = vmatmul.mubr.bf16.vlgmr.msra.gmra.mxu0 %v3474_v39 }
0x20c3   :  { %4645 = vpush %v4862_v42 }
0x20f4   :  { %s4646_s17 = spop %4645 }
0x20f5   :  { %s3567_s26 = smul.f32 %s4646_s17, %s3778_s12 }
0x20f7   :  { %v3568_v43 = vstv %s3567_s26 }
0x2182   :  { %v3557_v33 = vpop.f32.mrf.mxu0 }
0x2183   :  { %v3569_v45 = vmul.f32 %v3568_v43, %v3557_v33 }
0x2184   :  { %v4169_v47 = vpop.f32.mrf.mxu0 }
0x2185   :  { %v3579_v40 = vadd.f32 %v3788_v23, %v3569_v45 }
0x2186   :  { %v3560_v48 = vpop.f32.mrf.mxu0 }
0x2187   :  { %v3570_v46 = vmul.f32 %v3568_v43, %v3560_v48  ;;  %v3581_v32 = vadd.f32 %v3579_v40, %v5703_v27 }
0x2188   :  { %v4170_v50 = vpop.f32.mrf.mxu0 }
0x2189   :  { %v3580_v54 = vadd.f32 %v3788_v23, %v3570_v46  ;;  %v3585_v44 = vsel %vm78_vm0, %v3581_v32, 0.0 }
0x218a   :  { %3586 = vadd.xlane.f32.xlu0 %v3585_v44 }
0x218b   :  { %v3582_v53 = vadd.f32 %v3580_v54, %v5708_v31 }
0x218d   :  { %v3588_v2 = vsel %vm78_vm0, %v3582_v53, 0.0 }
0x218e   :  { %3589 = vadd.xlane.f32.xlu1 %v3588_v2 }
0x2213   :  { %v3587_v49 = vpop.xlane.xlu0 %3586 }
0x2214   :  { %v3591_v55 = vmul.f32 0.03125, %v3587_v49 }
0x2216   :  { %v3593_v61 = vsub.f32 %v3581_v32, %v3591_v55 }
0x2217   :  { %v3590_v57 = vpop.xlane.xlu1 %3589 }
0x2218   :  { %v3592_v34 = vmul.f32 0.03125, %v3590_v57  ;;  %v3595_v59 = vmul.f32 %v3593_v61, %v3593_v61 }
0x221a   :  { %v3594_v60 = vsub.f32 %v3582_v53, %v3592_v34  ;;  %v3597_v41 = vsel %vm78_vm0, %v3595_v59, 0.0 }
0x221b   :  { %3598 = vadd.xlane.f32.xlu0 %v3597_v41 }
0x221c   :  { %v3596_v27 = vmul.f32 %v3594_v60, %v3594_v60 }
0x221e   :  { %v3600_v62 = vsel %vm78_vm0, %v3596_v27, 0.0 }
0x221f   :  { %3601 = vadd.xlane.f32.xlu1 %v3600_v62 }
0x22a4   :  { %v3599_v1 = vpop.xlane.xlu0 %3598 }
0x22a5   :  { %v3603_v28 = vmul.f32 0.03125, %v3599_v1 }
0x22a7   :  { %v3605_v31 = vadd.f32 1e-12, %v3603_v28 }
0x22a8   :  { %v3602_v5 = vpop.xlane.xlu1 %3601 }
0x22a9   :  { %4863 = vrsqrt.f32 %v3605_v31  ;;  %v3604_v7 = vmul.f32 0.03125, %v3602_v5  ;;  %vm3609_vm8 = vcmp.eq.f32.partialorder %v3605_v31, inf  ;;  %v3612_v12 = vand.u32 2147483648, %v3605_v31 }
0x22aa   :  { %vm3611_vm7 = vcmp.eq.f32.partialorder %v3605_v31, 0.0 }
0x22ab   :  { %v3606_v3 = vadd.f32 1e-12, %v3604_v7 }
0x22ad   :  { %4865 = vrsqrt.f32 %v3606_v3  ;;  %vm3616_vm9 = vcmp.eq.f32.partialorder %v3606_v3, inf  ;;  %v3619_v6 = vand.u32 2147483648, %v3606_v3  ;;  %vm3618_vm10 = vcmp.eq.f32.partialorder %v3606_v3, 0.0 }
0x22b6   :  { %v4864_v51 = vpop.eup %4863 }
0x22b7   :  { %v3608_v4 = vmul.f32 %v4864_v51, %v3605_v31 }
0x22b9   :  { %v3610_v13 = vsel %vm3609_vm8, %v3605_v31, %v3608_v4 }
0x22ba   :  { %v3613_v14 = vsel %vm3611_vm7, %v3612_v12, %v3610_v13  ;;  %v4866_v11 = vpop.eup %4865 }
0x22bb   :  { %4867 = vrcp.f32 %v3613_v14  ;;  %v3615_v8 = vmul.f32 %v4866_v11, %v3606_v3 }
0x22bd   :  { %v3617_v17 = vsel %vm3616_vm9, %v3606_v3, %v3615_v8 }
0x22be   :  { %v3620_v16 = vsel %vm3618_vm10, %v3619_v6, %v3617_v17 }
0x22bf   :  { %4869 = vrcp.f32 %v3620_v16 }
0x22c8   :  { %v4868_v18 = vpop.eup %4867 }
0x22c9   :  { %v3622_v19 = vmul.f32 %v4868_v18, %v3593_v61 }
0x22cb   :  { %v3631_v10 = vmul.f32 %v3789_v63, %v3622_v19 }
0x22cc   :  { %v4870_v56 = vpop.eup %4869 }
0x22cd   :  { %v3639_v20 = vadd.f32 %v3790_v15, %v3631_v10  ;;  %v3624_v9 = vmul.f32 %v4870_v56, %v3594_v60 }
0x22cf   :  { %3641 = vst.msk [vmem:[#allocation6] sm:$0xff] %vm78_vm0, %v3639_v20  ;;  %v3632_v21 = vmul.f32 %v3789_v63, %v3624_v9 }
0x22d1   :  { %v3640_v22 = vadd.f32 %v3790_v15, %v3632_v21 }
0x22d3   :  { %3642 = vst.msk [vmem:[#allocation6 + $0x8] sm:$0xff] %vm78_vm0, %v3640_v22 }
0x22d4   :  { %4896 = shalt.err (!%p4893_p9)
}
0x22d5   :  { %s4928_s27 = smov 128   ;;  %s5853_s23 = sld [smem:[#allocation13_spill]] }
0x22db   :  { %3654 = dma.vmem_to_hbm [thread:$0]  %s3649_s14, 256, %s5853_s23, [#allocation4], %s4928_s27, %s4928_s27, %s4924_s1  }
0x22dc   :  { %4907 = dma.done.wait [#allocation4], 256  }
0x22dd   :  { %4908 = vsyncadd [#allocation4], 4294967040 }
0x22de   :  { %3658 = vsyncpa [#allocation4], 1 }
0x22df   :  { %3659 = vsyncpa [#allocation5], 1 }

</bundles_post_ra>
